<compile_context>
chip_gen: v7x
topology: tpu7x:2x2x1
jax: 0.10.0
libtpu: 0.0.40
codegen_flags: <defaults>
</compile_context>

<pallas_src>
import functools

import jax
import jax.numpy as jnp
from jax import lax
from jax.experimental import pallas as pl
from jax.experimental.pallas import tpu as pltpu


CDT = jnp.bfloat16   # conv1 patch/weight (MXU operand) dtype
ADT = jnp.float32    # accumulation / epilogue dtype


# ------------------------------ Pallas kernel ------------------------------ #

def _conv_rows(pin_ref, w_ref, b_ref, ho, wo, write_row, unroll):
    """One Conv2d(k=2, s=2, p=1) + ReLU layer, one output row at a time.

    pin_ref : zero-padded input activations, shape (2*ho, 2*wo, Cin), f32.
    w_ref   : (4, Cin, Cout) taps ordered [(0,0), (0,1), (1,0), (1,1)].
    b_ref   : (1, Cout) f32 bias.
    """
    two_wo = 2 * wo
    # 0/1 selection matrices that pick even / odd padded columns (the in-kernel
    # "im2col"), built once per layer and applied on the MXU.
    r = lax.broadcasted_iota(jnp.int32, (wo, two_wo), 0)
    c = lax.broadcasted_iota(jnp.int32, (wo, two_wo), 1)
    sel_e = (c == 2 * r).astype(ADT)
    sel_o = (c == 2 * r + 1).astype(ADT)
    w00, w01, w10, w11 = w_ref[0], w_ref[1], w_ref[2], w_ref[3]
    bias = b_ref[...]

    def row_body(i):
        a = pin_ref[2 * i]                      # (2*wo, Cin) padded row 2i
        b = pin_ref[2 * i + 1]                  # (2*wo, Cin) padded row 2i+1
        u = (jnp.dot(a, w00, preferred_element_type=ADT)
             + jnp.dot(b, w10, preferred_element_type=ADT))
        v = (jnp.dot(a, w01, preferred_element_type=ADT)
             + jnp.dot(b, w11, preferred_element_type=ADT))
        row = (jnp.dot(sel_e, u, preferred_element_type=ADT)
               + jnp.dot(sel_o, v, preferred_element_type=ADT))
        row = jnp.maximum(row + bias, 0.0)      # f32 epilogue
        write_row(i, row)

    if unroll:                                  # short fixed trip counts
        for i in range(ho):
            row_body(i)
    else:
        def body(i, carry):
            row_body(i)
            return carry
        lax.fori_loop(0, ho, body, 0)


def _actor_critic_kernel(patches_ref,                      # (1, 43, 43, 16) bf16
                         w1_ref, b1_ref,                   # (16, 32) bf16, (1, 32)
                         w2_ref, b2_ref, w3_ref, b3_ref,   # (4, 32, 32), (1, 32)
                         w4_ref, b4_ref, w5_ref, b5_ref,
                         wfc_ref, bfc_ref,                 # (16, 32, 120), (1, 120)
                         wh_ref, bh_ref,                   # (120, nout+1), (1, nout+1)
                         pol_ref, val_ref,                 # (1, 1, nout), (1, 1, 1)
                         p2_ref, p3_ref, p4_ref, p5_ref,   # padded activations
                         c5_ref,                           # (4, 4, 32) conv5 output
                         *, num_outputs):
    # Zero the padded activation buffers: their 1-pixel borders ARE the conv
    # padding (cheap: all buffers together are < 0.4 MiB of VMEM).
    for ref in (p2_ref, p3_ref, p4_ref, p5_ref):
        ref[...] = jnp.zeros(ref.shape, ref.dtype)

    # ---- conv1: per output row, one (43,16)@(16,32) patch matmul (bf16) ----
    w1 = w1_ref[...]
    b1 = b1_ref[...]

    def conv1_body(i, carry):
        row = jnp.dot(patches_ref[0, i], w1, preferred_element_type=ADT)
        row = jnp.maximum(row + b1, 0.0)
        p2_ref[i + 1, pl.ds(1, 43), :] = row          # interior of padded buf
        return carry
    lax.fori_loop(0, 43, conv1_body, 0)

    # ---- conv2..conv5, activations stay resident in VMEM -------------------
    def write_into(pout_ref, wo):
        def write(i, row):
            pout_ref[i + 1, pl.ds(1, wo), :] = row
        return write

    _conv_rows(p2_ref, w2_ref, b2_ref, 22, 22, write_into(p3_ref, 22), False)
    _conv_rows(p3_ref, w3_ref, b3_ref, 12, 12, write_into(p4_ref, 12), False)
    _conv_rows(p4_ref, w4_ref, b4_ref, 7, 7, write_into(p5_ref, 7), True)

    def write_c5(i, row):
        c5_ref[i] = row                               # (4, 32)
    _conv_rows(p5_ref, w5_ref, b5_ref, 4, 4, write_c5, True)

    # ---- fc1 (+ReLU) + fused policy/value heads, all in-register/VMEM ------
    # torch's channel-major view(-1, 512) is folded into wfc's layout, so the
    # (h, w, c) conv5 output is consumed directly: 16 tiny accumulated matmuls.
    h = bfc_ref[...]                                  # (1, 120), start from bias
    for hh in range(4):
        for ww in range(4):
            s = hh * 4 + ww
            xr = c5_ref[hh, pl.ds(ww, 1), :]          # (1, 32)
            h = h + jnp.dot(xr, wfc_ref[s], preferred_element_type=ADT)
    h = jnp.maximum(h, 0.0)

    hv = jnp.dot(h, wh_ref[...], preferred_element_type=ADT) + bh_ref[...]
    pol_ref[0] = hv[:, 0:num_outputs]
    val_ref[0] = hv[:, num_outputs:num_outputs + 1]


# ------------------------------ host wrappers ------------------------------ #

def prepare_params(params):
    """One-time weight re-layout so the forward pass has no transposes."""
    p = {}
    cin = params["conv1_w"].shape[1]
    # conv1 as an im2col matmul weight: (a, b, ci, co) -> (4*ci, co)
    p["w1"] = (jnp.transpose(params["conv1_w"], (2, 3, 1, 0))
               .reshape(4 * cin, 32).astype(CDT))
    p["b1"] = params["conv1_b"].reshape(1, 32).astype(jnp.float32)
    for l in range(2, 6):
        w = params[f"conv{l}_w"]                       # (co, ci, 2, 2)
        p[f"w{l}"] = (jnp.transpose(w, (2, 3, 1, 0))   # (a, b, ci, co)
                      .reshape(4, 32, 32).astype(jnp.float32))
        p[f"b{l}"] = params[f"conv{l}_b"].reshape(1, 32).astype(jnp.float32)
    # fc1: fold torch's channel-major flatten (c*16 + h*4 + w) into the weight.
    wfc = params["fc1_w"].T.reshape(32, 16, 120).transpose(1, 0, 2)
    p["wfc1"] = wfc.astype(jnp.float32)                # (s=h*4+w, ci, 120)
    p["bfc1"] = params["fc1_b"].reshape(1, 120).astype(jnp.float32)
    # fused heads: columns 0:nout = policy, last column = value.
    wh = jnp.concatenate([params["policy_w"].T, params["value_w"].T], axis=1)
    bh = jnp.concatenate([params["policy_b"], params["value_b"]]).reshape(1, -1)
    p["wh"] = wh.astype(jnp.float32)
    p["bh"] = bh.astype(jnp.float32)
    return p


def _forward_pallas(prep, patches):
    n, _, _, k1 = patches.shape
    nout = prep["wh"].shape[1] - 1

    kernel = functools.partial(_actor_critic_kernel, num_outputs=nout)

    grid_spec = pltpu.PrefetchScalarGridSpec(
        num_scalar_prefetch=0,
        grid=(n,),
        in_specs=[
            pl.BlockSpec((1, 43, 43, k1), lambda b: (b, 0, 0, 0)),   # patches
            pl.BlockSpec((k1, 32), lambda b: (0, 0)),                # w1
            pl.BlockSpec((1, 32), lambda b: (0, 0)),                 # b1
            pl.BlockSpec((4, 32, 32), lambda b: (0, 0, 0)),          # w2
            pl.BlockSpec((1, 32), lambda b: (0, 0)),                 # b2
            pl.BlockSpec((4, 32, 32), lambda b: (0, 0, 0)),          # w3
            pl.BlockSpec((1, 32), lambda b: (0, 0)),                 # b3
            pl.BlockSpec((4, 32, 32), lambda b: (0, 0, 0)),          # w4
            pl.BlockSpec((1, 32), lambda b: (0, 0)),                 # b4
            pl.BlockSpec((4, 32, 32), lambda b: (0, 0, 0)),          # w5
            pl.BlockSpec((1, 32), lambda b: (0, 0)),                 # b5
            pl.BlockSpec((16, 32, 120), lambda b: (0, 0, 0)),        # wfc1
            pl.BlockSpec((1, 120), lambda b: (0, 0)),                # bfc1
            pl.BlockSpec((120, nout + 1), lambda b: (0, 0)),         # whead
            pl.BlockSpec((1, nout + 1), lambda b: (0, 0)),           # bhead
        ],
        out_specs=[
            pl.BlockSpec((1, 1, nout), lambda b: (b, 0, 0)),
            pl.BlockSpec((1, 1, 1), lambda b: (b, 0, 0)),
        ],
        scratch_shapes=[
            pltpu.VMEM((44, 44, 32), jnp.float32),    # conv1 out (padded)
            pltpu.VMEM((24, 24, 32), jnp.float32),    # conv2 out (padded)
            pltpu.VMEM((14, 14, 32), jnp.float32),    # conv3 out (padded)
            pltpu.VMEM((8, 8, 32), jnp.float32),      # conv4 out (padded)
            pltpu.VMEM((4, 4, 32), jnp.float32),      # conv5 out
        ],
    )

    pol, val = pl.pallas_call(
        kernel,
        out_shape=(jax.ShapeDtypeStruct((n, 1, nout), jnp.float32),
                   jax.ShapeDtypeStruct((n, 1, 1), jnp.float32)),
        grid_spec=grid_spec,
        compiler_params=pltpu.CompilerParams(
            dimension_semantics=("parallel",)),       # batch split across TCs
    )(patches,
      prep["w1"], prep["b1"],
      prep["w2"], prep["b2"], prep["w3"], prep["b3"],
      prep["w4"], prep["b4"], prep["w5"], prep["b5"],
      prep["wfc1"], prep["bfc1"], prep["wh"], prep["bh"])
    return pol, val


def actor_critic_forward(prep, x_nchw):
    """Mirrors ActorCritic.forward: returns (policy_logits, value)."""
    n, cin, hgt, wid = x_nchw.shape
    assert (hgt, wid) == (84, 84), "fc1(512) implies 84x84 input frames"
    x = jnp.transpose(x_nchw, (0, 2, 3, 1)).astype(jnp.float32)      # NHWC
    xp = jnp.pad(x, ((0, 0), (1, 1), (1, 1), (0, 0)))                # 86x86
    # One-time im2col of the raw input frame only (everything after conv1 is
    # re-patched inside the kernel, on-chip).
    patches = (xp.reshape(n, 43, 2, 43, 2, cin)
               .transpose(0, 1, 3, 2, 4, 5)
               .reshape(n, 43, 43, 4 * cin)
               .astype(CDT))
    nout = prep["wh"].shape[1] - 1
    pol, val = _forward_pallas(prep, patches)
    return pol.reshape(n, nout), val.reshape(n, 1)


# ------------------------- deterministic parameters ------------------------- #

def init_params(key, num_inputs=4, num_outputs=4):
    params = {}
    keys = jax.random.split(key, 16)
    k = iter(range(16))
    cin = num_inputs
    for i in range(1, 6):
        fan_in = cin * 2 * 2
        params[f"conv{i}_w"] = (
            jax.random.normal(keys[next(k)], (32, cin, 2, 2), jnp.float32)
            / jnp.sqrt(fan_in))
        params[f"conv{i}_b"] = 0.01 * jax.random.normal(
            keys[next(k)], (32,), jnp.float32)
        cin = 32
    params["fc1_w"] = (jax.random.normal(keys[next(k)], (120, 512), jnp.float32)
                       / jnp.sqrt(512.0))
    params["fc1_b"] = 0.01 * jax.random.normal(keys[next(k)], (120,), jnp.float32)
    params["policy_w"] = (jax.random.normal(keys[next(k)], (num_outputs, 120),
                                            jnp.float32) / jnp.sqrt(120.0))
    params["policy_b"] = 0.01 * jax.random.normal(keys[next(k)], (num_outputs,),
                                                  jnp.float32)
    params["value_w"] = (jax.random.normal(keys[next(k)], (1, 120), jnp.float32)
                         / jnp.sqrt(120.0))
    params["value_b"] = 0.01 * jax.random.normal(keys[next(k)], (1,), jnp.float32)
    return params


# --------------------------- pure-JAX reference ----------------------------- #

def reference_forward(params, x_nchw):
    x = x_nchw
    for i in range(1, 6):
        w, b = params[f"conv{i}_w"], params[f"conv{i}_b"]
        x = jax.lax.conv_general_dilated(
            x, w, window_strides=(2, 2), padding=((1, 1), (1, 1)),
            dimension_numbers=("NCHW", "OIHW", "NCHW"))
        x = jnp.maximum(x + b[None, :, None, None], 0.0)
    x = x.reshape(x.shape[0], -1)
    h = jnp.maximum(x @ params["fc1_w"].T + params["fc1_b"], 0.0)
    policy = h @ params["policy_w"].T + params["policy_b"]
    value = h @ params["value_w"].T + params["value_b"]
    return policy, value


# ----------------------------------- main ----------------------------------- #

if __name__ == "__main__":
    key = jax.random.PRNGKey(0)
    pkey, xkey = jax.random.split(key)
    params = init_params(pkey, num_inputs=4, num_outputs=4)
    prep = prepare_params(params)

    # 84x84 frames -> 43 -> 22 -> 12 -> 7 -> 4 spatial; 32*4*4 = 512 = fc1 in.
    x = jax.random.normal(xkey, (2, 4, 84, 84), jnp.float32)

    fwd = jax.jit(actor_critic_forward)
    policy, value = fwd(prep, x)
    jax.block_until_ready((policy, value))

    assert policy.shape == (2, 4) and value.shape == (2, 1)
    ref_policy, ref_value = reference_forward(params, x)
    assert jnp.allclose(policy, ref_policy, rtol=1e-2, atol=1e-2)
    assert jnp.allclose(value, ref_value, rtol=1e-2, atol=1e-2)

    print("KERNEL_OK")
</pallas_src>

<mosaic_0001>
module attributes {stable_mosaic.version = 11 : i64} {
  func.func @_actor_critic_kernel(%arg0: i32, %arg1: memref<1x43x43x16xbf16, #tpu.memory_space<vmem>>, %arg2: memref<16x32xbf16, #tpu.memory_space<vmem>>, %arg3: memref<1x32xf32, #tpu.memory_space<vmem>>, %arg4: memref<4x32x32xf32, #tpu.memory_space<vmem>>, %arg5: memref<1x32xf32, #tpu.memory_space<vmem>>, %arg6: memref<4x32x32xf32, #tpu.memory_space<vmem>>, %arg7: memref<1x32xf32, #tpu.memory_space<vmem>>, %arg8: memref<4x32x32xf32, #tpu.memory_space<vmem>>, %arg9: memref<1x32xf32, #tpu.memory_space<vmem>>, %arg10: memref<4x32x32xf32, #tpu.memory_space<vmem>>, %arg11: memref<1x32xf32, #tpu.memory_space<vmem>>, %arg12: memref<16x32x120xf32, #tpu.memory_space<vmem>>, %arg13: memref<1x120xf32, #tpu.memory_space<vmem>>, %arg14: memref<120x5xf32, #tpu.memory_space<vmem>>, %arg15: memref<1x5xf32, #tpu.memory_space<vmem>>, %arg16: memref<1x1x4xf32, #tpu.memory_space<vmem>>, %arg17: memref<1x1x1xf32, #tpu.memory_space<vmem>>, %arg18: memref<44x44x32xf32, #tpu.memory_space<vmem>>, %arg19: memref<24x24x32xf32, #tpu.memory_space<vmem>>, %arg20: memref<14x14x32xf32, #tpu.memory_space<vmem>>, %arg21: memref<8x8x32xf32, #tpu.memory_space<vmem>>, %arg22: memref<4x4x32xf32, #tpu.memory_space<vmem>>) attributes {dimension_semantics = [#tpu.dimension_semantics<parallel>], iteration_bounds = array<i64: 2>, scalar_prefetch = 0 : i64, scratch_operands = 5 : i64, tpu.core_type = #tpu.core_type<tc>, window_params = [{transform_indices = @transform_0, window_bounds = array<i64: 1, 43, 43, 16>}, {pipeline_mode = #tpu.pipeline_mode<synchronous>, transform_indices = @transform_1, window_bounds = array<i64: 16, 32>}, {pipeline_mode = #tpu.pipeline_mode<synchronous>, transform_indices = @transform_2, window_bounds = array<i64: 1, 32>}, {pipeline_mode = #tpu.pipeline_mode<synchronous>, transform_indices = @transform_3, window_bounds = array<i64: 4, 32, 32>}, {pipeline_mode = #tpu.pipeline_mode<synchronous>, transform_indices = @transform_4, window_bounds = array<i64: 1, 32>}, {pipeline_mode = #tpu.pipeline_mode<synchronous>, transform_indices = @transform_5, window_bounds = array<i64: 4, 32, 32>}, {pipeline_mode = #tpu.pipeline_mode<synchronous>, transform_indices = @transform_6, window_bounds = array<i64: 1, 32>}, {pipeline_mode = #tpu.pipeline_mode<synchronous>, transform_indices = @transform_7, window_bounds = array<i64: 4, 32, 32>}, {pipeline_mode = #tpu.pipeline_mode<synchronous>, transform_indices = @transform_8, window_bounds = array<i64: 1, 32>}, {pipeline_mode = #tpu.pipeline_mode<synchronous>, transform_indices = @transform_9, window_bounds = array<i64: 4, 32, 32>}, {pipeline_mode = #tpu.pipeline_mode<synchronous>, transform_indices = @transform_10, window_bounds = array<i64: 1, 32>}, {pipeline_mode = #tpu.pipeline_mode<synchronous>, transform_indices = @transform_11, window_bounds = array<i64: 16, 32, 120>}, {pipeline_mode = #tpu.pipeline_mode<synchronous>, transform_indices = @transform_12, window_bounds = array<i64: 1, 120>}, {pipeline_mode = #tpu.pipeline_mode<synchronous>, transform_indices = @transform_13, window_bounds = array<i64: 120, 5>}, {pipeline_mode = #tpu.pipeline_mode<synchronous>, transform_indices = @transform_14, window_bounds = array<i64: 1, 5>}, {transform_indices = @transform_15, window_bounds = array<i64: 1, 1, 4>}, {transform_indices = @transform_16, window_bounds = array<i64: 1, 1, 1>}]} {
    %cst = arith.constant 0.000000e+00 : f32
    %0 = vector.broadcast %cst : f32 to vector<44x44x32xf32>
    %c0 = arith.constant 0 : index
    %c0_0 = arith.constant 0 : index
    %c0_1 = arith.constant 0 : index
    %1 = vector.load %arg18[%c0, %c0_0, %c0_1] : memref<44x44x32xf32, #tpu.memory_space<vmem>>, vector<44x44x32xf32>
    tpu.vector_store %arg18[%c0, %c0_0, %c0_1], %0 {strides = array<i32>} : memref<44x44x32xf32, #tpu.memory_space<vmem>>, vector<44x44x32xf32>,
    %cst_2 = arith.constant 0.000000e+00 : f32
    %2 = vector.broadcast %cst_2 : f32 to vector<24x24x32xf32>
    %c0_3 = arith.constant 0 : index
    %c0_4 = arith.constant 0 : index
    %c0_5 = arith.constant 0 : index
    %3 = vector.load %arg19[%c0_3, %c0_4, %c0_5] : memref<24x24x32xf32, #tpu.memory_space<vmem>>, vector<24x24x32xf32>
    tpu.vector_store %arg19[%c0_3, %c0_4, %c0_5], %2 {strides = array<i32>} : memref<24x24x32xf32, #tpu.memory_space<vmem>>, vector<24x24x32xf32>,
    %cst_6 = arith.constant 0.000000e+00 : f32
    %4 = vector.broadcast %cst_6 : f32 to vector<14x14x32xf32>
    %c0_7 = arith.constant 0 : index
    %c0_8 = arith.constant 0 : index
    %c0_9 = arith.constant 0 : index
    %5 = vector.load %arg20[%c0_7, %c0_8, %c0_9] : memref<14x14x32xf32, #tpu.memory_space<vmem>>, vector<14x14x32xf32>
    tpu.vector_store %arg20[%c0_7, %c0_8, %c0_9], %4 {strides = array<i32>} : memref<14x14x32xf32, #tpu.memory_space<vmem>>, vector<14x14x32xf32>,
    %cst_10 = arith.constant 0.000000e+00 : f32
    %6 = vector.broadcast %cst_10 : f32 to vector<8x8x32xf32>
    %c0_11 = arith.constant 0 : index
    %c0_12 = arith.constant 0 : index
    %c0_13 = arith.constant 0 : index
    %7 = vector.load %arg21[%c0_11, %c0_12, %c0_13] : memref<8x8x32xf32, #tpu.memory_space<vmem>>, vector<8x8x32xf32>
    tpu.vector_store %arg21[%c0_11, %c0_12, %c0_13], %6 {strides = array<i32>} : memref<8x8x32xf32, #tpu.memory_space<vmem>>, vector<8x8x32xf32>,
    %c0_14 = arith.constant 0 : index
    %c0_15 = arith.constant 0 : index
    %8 = vector.load %arg2[%c0_14, %c0_15] : memref<16x32xbf16, #tpu.memory_space<vmem>>, vector<16x32xbf16>
    %c0_16 = arith.constant 0 : index
    %c0_17 = arith.constant 0 : index
    %9 = vector.load %arg3[%c0_16, %c0_17] : memref<1x32xf32, #tpu.memory_space<vmem>>, vector<1x32xf32>
    %c0_i32 = arith.constant 0 : i32
    %c43_i32 = arith.constant 43 : i32
    %10 = arith.addi %c0_i32, %c43_i32 : i32
    %c1_i32 = arith.constant 1 : i32
    scf.for %arg23 = %c0_i32 to %10 step %c1_i32  : i32 {
      %c0_379 = arith.constant 0 : index
      %436 = arith.index_cast %arg23 : i32 to index
      %c0_380 = arith.constant 0 : index
      %c0_381 = arith.constant 0 : index
      %437 = vector.load %arg1[%c0_379, %436, %c0_380, %c0_381] : memref<1x43x43x16xbf16, #tpu.memory_space<vmem>>, vector<1x1x43x16xbf16>
      %438 = vector.shape_cast %437 : vector<1x1x43x16xbf16> to vector<43x16xbf16>
      %cst_382 = arith.constant dense<0.000000e+00> : vector<43x32xf32>
      %439 = tpu.matmul %438, %8, %cst_382 {dimension_numbers = #tpu.dot_dimension_numbers<[1], [0], [0], [1], [0, 0, 1, 1], [], []>} : vector<43x16xbf16>, vector<16x32xbf16>, vector<43x32xf32> -> vector<43x32xf32>
      %440 = vector.broadcast %9 : vector<1x32xf32> to vector<43x32xf32>
      %441 = arith.addf %439, %440 : vector<43x32xf32>
      %cst_383 = arith.constant 0.000000e+00 : f32
      %442 = vector.broadcast %cst_383 : f32 to vector<43x32xf32>
      %443 = arith.maximumf %441, %442 : vector<43x32xf32>
      %c1_i32_384 = arith.constant 1 : i32
      %444 = arith.addi %arg23, %c1_i32_384 : i32
      %445 = arith.index_cast %444 : i32 to index
      %c1_385 = arith.constant 1 : index
      %c0_386 = arith.constant 0 : index
      %446 = vector.load %arg18[%445, %c1_385, %c0_386] : memref<44x44x32xf32, #tpu.memory_space<vmem>>, vector<1x43x32xf32>
      %447 = vector.shape_cast %446 : vector<1x43x32xf32> to vector<43x32xf32>
      %448 = vector.shape_cast %443 : vector<43x32xf32> to vector<1x43x32xf32>
      tpu.vector_store %arg18[%445, %c1_385, %c0_386], %448 {strides = array<i32>} : memref<44x44x32xf32, #tpu.memory_space<vmem>>, vector<1x43x32xf32>,
    }
    %c43_i32_18 = arith.constant 43 : i32
    %11 = tpu.iota {dimensions = array<i32: 0>} : vector<22x44xi32>
    %12 = tpu.iota {dimensions = array<i32: 1>} : vector<22x44xi32>
    %c2_i32 = arith.constant 2 : i32
    %13 = vector.broadcast %c2_i32 : i32 to vector<22x44xi32>
    %14 = arith.muli %13, %11 : vector<22x44xi32>
    %15 = arith.cmpi eq, %12, %14 : vector<22x44xi32>
    %16 = arith.extui %15 : vector<22x44xi1> to vector<22x44xi32>
    %17 = arith.sitofp %16 : vector<22x44xi32> to vector<22x44xf32>
    %c2_i32_19 = arith.constant 2 : i32
    %18 = vector.broadcast %c2_i32_19 : i32 to vector<22x44xi32>
    %19 = arith.muli %18, %11 : vector<22x44xi32>
    %c1_i32_20 = arith.constant 1 : i32
    %20 = vector.broadcast %c1_i32_20 : i32 to vector<22x44xi32>
    %21 = arith.addi %19, %20 : vector<22x44xi32>
    %22 = arith.cmpi eq, %12, %21 : vector<22x44xi32>
    %23 = arith.extui %22 : vector<22x44xi1> to vector<22x44xi32>
    %24 = arith.sitofp %23 : vector<22x44xi32> to vector<22x44xf32>
    %c0_21 = arith.constant 0 : index
    %c0_22 = arith.constant 0 : index
    %c0_23 = arith.constant 0 : index
    %25 = vector.load %arg4[%c0_21, %c0_22, %c0_23] : memref<4x32x32xf32, #tpu.memory_space<vmem>>, vector<1x32x32xf32>
    %26 = vector.shape_cast %25 : vector<1x32x32xf32> to vector<32x32xf32>
    %c1 = arith.constant 1 : index
    %c0_24 = arith.constant 0 : index
    %c0_25 = arith.constant 0 : index
    %27 = vector.load %arg4[%c1, %c0_24, %c0_25] : memref<4x32x32xf32, #tpu.memory_space<vmem>>, vector<1x32x32xf32>
    %28 = vector.shape_cast %27 : vector<1x32x32xf32> to vector<32x32xf32>
    %c2 = arith.constant 2 : index
    %c0_26 = arith.constant 0 : index
    %c0_27 = arith.constant 0 : index
    %29 = vector.load %arg4[%c2, %c0_26, %c0_27] : memref<4x32x32xf32, #tpu.memory_space<vmem>>, vector<1x32x32xf32>
    %30 = vector.shape_cast %29 : vector<1x32x32xf32> to vector<32x32xf32>
    %c3 = arith.constant 3 : index
    %c0_28 = arith.constant 0 : index
    %c0_29 = arith.constant 0 : index
    %31 = vector.load %arg4[%c3, %c0_28, %c0_29] : memref<4x32x32xf32, #tpu.memory_space<vmem>>, vector<1x32x32xf32>
    %32 = vector.shape_cast %31 : vector<1x32x32xf32> to vector<32x32xf32>
    %c0_30 = arith.constant 0 : index
    %c0_31 = arith.constant 0 : index
    %33 = vector.load %arg5[%c0_30, %c0_31] : memref<1x32xf32, #tpu.memory_space<vmem>>, vector<1x32xf32>
    %c0_i32_32 = arith.constant 0 : i32
    %c22_i32 = arith.constant 22 : i32
    %34 = arith.addi %c0_i32_32, %c22_i32 : i32
    %c1_i32_33 = arith.constant 1 : i32
    scf.for %arg23 = %c0_i32_32 to %34 step %c1_i32_33  : i32 {
      %c2_i32_379 = arith.constant 2 : i32
      %436 = arith.muli %c2_i32_379, %arg23 : i32
      %437 = arith.index_cast %436 : i32 to index
      %c0_380 = arith.constant 0 : index
      %c0_381 = arith.constant 0 : index
      %438 = vector.load %arg18[%437, %c0_380, %c0_381] : memref<44x44x32xf32, #tpu.memory_space<vmem>>, vector<1x44x32xf32>
      %439 = vector.shape_cast %438 : vector<1x44x32xf32> to vector<44x32xf32>
      %c2_i32_382 = arith.constant 2 : i32
      %440 = arith.muli %c2_i32_382, %arg23 : i32
      %c1_i32_383 = arith.constant 1 : i32
      %441 = arith.addi %440, %c1_i32_383 : i32
      %442 = arith.index_cast %441 : i32 to index
      %c0_384 = arith.constant 0 : index
      %c0_385 = arith.constant 0 : index
      %443 = vector.load %arg18[%442, %c0_384, %c0_385] : memref<44x44x32xf32, #tpu.memory_space<vmem>>, vector<1x44x32xf32>
      %444 = vector.shape_cast %443 : vector<1x44x32xf32> to vector<44x32xf32>
      %cst_386 = arith.constant dense<0.000000e+00> : vector<44x32xf32>
      %445 = tpu.matmul %439, %26, %cst_386 {dimension_numbers = #tpu.dot_dimension_numbers<[1], [0], [0], [1], [0, 0, 1, 1], [], []>} : vector<44x32xf32>, vector<32x32xf32>, vector<44x32xf32> -> vector<44x32xf32>
      %cst_387 = arith.constant dense<0.000000e+00> : vector<44x32xf32>
      %446 = tpu.matmul %444, %30, %cst_387 {dimension_numbers = #tpu.dot_dimension_numbers<[1], [0], [0], [1], [0, 0, 1, 1], [], []>} : vector<44x32xf32>, vector<32x32xf32>, vector<44x32xf32> -> vector<44x32xf32>
      %447 = arith.addf %445, %446 : vector<44x32xf32>
      %cst_388 = arith.constant dense<0.000000e+00> : vector<44x32xf32>
      %448 = tpu.matmul %439, %28, %cst_388 {dimension_numbers = #tpu.dot_dimension_numbers<[1], [0], [0], [1], [0, 0, 1, 1], [], []>} : vector<44x32xf32>, vector<32x32xf32>, vector<44x32xf32> -> vector<44x32xf32>
      %cst_389 = arith.constant dense<0.000000e+00> : vector<44x32xf32>
      %449 = tpu.matmul %444, %32, %cst_389 {dimension_numbers = #tpu.dot_dimension_numbers<[1], [0], [0], [1], [0, 0, 1, 1], [], []>} : vector<44x32xf32>, vector<32x32xf32>, vector<44x32xf32> -> vector<44x32xf32>
      %450 = arith.addf %448, %449 : vector<44x32xf32>
      %cst_390 = arith.constant dense<0.000000e+00> : vector<22x32xf32>
      %451 = tpu.matmul %17, %447, %cst_390 {dimension_numbers = #tpu.dot_dimension_numbers<[1], [0], [0], [1], [0, 0, 1, 1], [], []>} : vector<22x44xf32>, vector<44x32xf32>, vector<22x32xf32> -> vector<22x32xf32>
      %cst_391 = arith.constant dense<0.000000e+00> : vector<22x32xf32>
      %452 = tpu.matmul %24, %450, %cst_391 {dimension_numbers = #tpu.dot_dimension_numbers<[1], [0], [0], [1], [0, 0, 1, 1], [], []>} : vector<22x44xf32>, vector<44x32xf32>, vector<22x32xf32> -> vector<22x32xf32>
      %453 = arith.addf %451, %452 : vector<22x32xf32>
      %454 = vector.broadcast %33 : vector<1x32xf32> to vector<22x32xf32>
      %455 = arith.addf %453, %454 : vector<22x32xf32>
      %cst_392 = arith.constant 0.000000e+00 : f32
      %456 = vector.broadcast %cst_392 : f32 to vector<22x32xf32>
      %457 = arith.maximumf %455, %456 : vector<22x32xf32>
      %c1_i32_393 = arith.constant 1 : i32
      %458 = arith.addi %arg23, %c1_i32_393 : i32
      %459 = arith.index_cast %458 : i32 to index
      %c1_394 = arith.constant 1 : index
      %c0_395 = arith.constant 0 : index
      %460 = vector.load %arg19[%459, %c1_394, %c0_395] : memref<24x24x32xf32, #tpu.memory_space<vmem>>, vector<1x22x32xf32>
      %461 = vector.shape_cast %460 : vector<1x22x32xf32> to vector<22x32xf32>
      %462 = vector.shape_cast %457 : vector<22x32xf32> to vector<1x22x32xf32>
      tpu.vector_store %arg19[%459, %c1_394, %c0_395], %462 {strides = array<i32>} : memref<24x24x32xf32, #tpu.memory_space<vmem>>, vector<1x22x32xf32>,
    }
    %c22_i32_34 = arith.constant 22 : i32
    %35 = tpu.iota {dimensions = array<i32: 0>} : vector<12x24xi32>
    %36 = tpu.iota {dimensions = array<i32: 1>} : vector<12x24xi32>
    %c2_i32_35 = arith.constant 2 : i32
    %37 = vector.broadcast %c2_i32_35 : i32 to vector<12x24xi32>
    %38 = arith.muli %37, %35 : vector<12x24xi32>
    %39 = arith.cmpi eq, %36, %38 : vector<12x24xi32>
    %40 = arith.extui %39 : vector<12x24xi1> to vector<12x24xi32>
    %41 = arith.sitofp %40 : vector<12x24xi32> to vector<12x24xf32>
    %c2_i32_36 = arith.constant 2 : i32
    %42 = vector.broadcast %c2_i32_36 : i32 to vector<12x24xi32>
    %43 = arith.muli %42, %35 : vector<12x24xi32>
    %c1_i32_37 = arith.constant 1 : i32
    %44 = vector.broadcast %c1_i32_37 : i32 to vector<12x24xi32>
    %45 = arith.addi %43, %44 : vector<12x24xi32>
    %46 = arith.cmpi eq, %36, %45 : vector<12x24xi32>
    %47 = arith.extui %46 : vector<12x24xi1> to vector<12x24xi32>
    %48 = arith.sitofp %47 : vector<12x24xi32> to vector<12x24xf32>
    %c0_38 = arith.constant 0 : index
    %c0_39 = arith.constant 0 : index
    %c0_40 = arith.constant 0 : index
    %49 = vector.load %arg6[%c0_38, %c0_39, %c0_40] : memref<4x32x32xf32, #tpu.memory_space<vmem>>, vector<1x32x32xf32>
    %50 = vector.shape_cast %49 : vector<1x32x32xf32> to vector<32x32xf32>
    %c1_41 = arith.constant 1 : index
    %c0_42 = arith.constant 0 : index
    %c0_43 = arith.constant 0 : index
    %51 = vector.load %arg6[%c1_41, %c0_42, %c0_43] : memref<4x32x32xf32, #tpu.memory_space<vmem>>, vector<1x32x32xf32>
    %52 = vector.shape_cast %51 : vector<1x32x32xf32> to vector<32x32xf32>
    %c2_44 = arith.constant 2 : index
    %c0_45 = arith.constant 0 : index
    %c0_46 = arith.constant 0 : index
    %53 = vector.load %arg6[%c2_44, %c0_45, %c0_46] : memref<4x32x32xf32, #tpu.memory_space<vmem>>, vector<1x32x32xf32>
    %54 = vector.shape_cast %53 : vector<1x32x32xf32> to vector<32x32xf32>
    %c3_47 = arith.constant 3 : index
    %c0_48 = arith.constant 0 : index
    %c0_49 = arith.constant 0 : index
    %55 = vector.load %arg6[%c3_47, %c0_48, %c0_49] : memref<4x32x32xf32, #tpu.memory_space<vmem>>, vector<1x32x32xf32>
    %56 = vector.shape_cast %55 : vector<1x32x32xf32> to vector<32x32xf32>
    %c0_50 = arith.constant 0 : index
    %c0_51 = arith.constant 0 : index
    %57 = vector.load %arg7[%c0_50, %c0_51] : memref<1x32xf32, #tpu.memory_space<vmem>>, vector<1x32xf32>
    %c0_i32_52 = arith.constant 0 : i32
    %c12_i32 = arith.constant 12 : i32
    %58 = arith.addi %c0_i32_52, %c12_i32 : i32
    %c1_i32_53 = arith.constant 1 : i32
    scf.for %arg23 = %c0_i32_52 to %58 step %c1_i32_53  : i32 {
      %c2_i32_379 = arith.constant 2 : i32
      %436 = arith.muli %c2_i32_379, %arg23 : i32
      %437 = arith.index_cast %436 : i32 to index
      %c0_380 = arith.constant 0 : index
      %c0_381 = arith.constant 0 : index
      %438 = vector.load %arg19[%437, %c0_380, %c0_381] : memref<24x24x32xf32, #tpu.memory_space<vmem>>, vector<1x24x32xf32>
      %439 = vector.shape_cast %438 : vector<1x24x32xf32> to vector<24x32xf32>
      %c2_i32_382 = arith.constant 2 : i32
      %440 = arith.muli %c2_i32_382, %arg23 : i32
      %c1_i32_383 = arith.constant 1 : i32
      %441 = arith.addi %440, %c1_i32_383 : i32
      %442 = arith.index_cast %441 : i32 to index
      %c0_384 = arith.constant 0 : index
      %c0_385 = arith.constant 0 : index
      %443 = vector.load %arg19[%442, %c0_384, %c0_385] : memref<24x24x32xf32, #tpu.memory_space<vmem>>, vector<1x24x32xf32>
      %444 = vector.shape_cast %443 : vector<1x24x32xf32> to vector<24x32xf32>
      %cst_386 = arith.constant dense<0.000000e+00> : vector<24x32xf32>
      %445 = tpu.matmul %439, %50, %cst_386 {dimension_numbers = #tpu.dot_dimension_numbers<[1], [0], [0], [1], [0, 0, 1, 1], [], []>} : vector<24x32xf32>, vector<32x32xf32>, vector<24x32xf32> -> vector<24x32xf32>
      %cst_387 = arith.constant dense<0.000000e+00> : vector<24x32xf32>
      %446 = tpu.matmul %444, %54, %cst_387 {dimension_numbers = #tpu.dot_dimension_numbers<[1], [0], [0], [1], [0, 0, 1, 1], [], []>} : vector<24x32xf32>, vector<32x32xf32>, vector<24x32xf32> -> vector<24x32xf32>
      %447 = arith.addf %445, %446 : vector<24x32xf32>
      %cst_388 = arith.constant dense<0.000000e+00> : vector<24x32xf32>
      %448 = tpu.matmul %439, %52, %cst_388 {dimension_numbers = #tpu.dot_dimension_numbers<[1], [0], [0], [1], [0, 0, 1, 1], [], []>} : vector<24x32xf32>, vector<32x32xf32>, vector<24x32xf32> -> vector<24x32xf32>
      %cst_389 = arith.constant dense<0.000000e+00> : vector<24x32xf32>
      %449 = tpu.matmul %444, %56, %cst_389 {dimension_numbers = #tpu.dot_dimension_numbers<[1], [0], [0], [1], [0, 0, 1, 1], [], []>} : vector<24x32xf32>, vector<32x32xf32>, vector<24x32xf32> -> vector<24x32xf32>
      %450 = arith.addf %448, %449 : vector<24x32xf32>
      %cst_390 = arith.constant dense<0.000000e+00> : vector<12x32xf32>
      %451 = tpu.matmul %41, %447, %cst_390 {dimension_numbers = #tpu.dot_dimension_numbers<[1], [0], [0], [1], [0, 0, 1, 1], [], []>} : vector<12x24xf32>, vector<24x32xf32>, vector<12x32xf32> -> vector<12x32xf32>
      %cst_391 = arith.constant dense<0.000000e+00> : vector<12x32xf32>
      %452 = tpu.matmul %48, %450, %cst_391 {dimension_numbers = #tpu.dot_dimension_numbers<[1], [0], [0], [1], [0, 0, 1, 1], [], []>} : vector<12x24xf32>, vector<24x32xf32>, vector<12x32xf32> -> vector<12x32xf32>
      %453 = arith.addf %451, %452 : vector<12x32xf32>
      %454 = vector.broadcast %57 : vector<1x32xf32> to vector<12x32xf32>
      %455 = arith.addf %453, %454 : vector<12x32xf32>
      %cst_392 = arith.constant 0.000000e+00 : f32
      %456 = vector.broadcast %cst_392 : f32 to vector<12x32xf32>
      %457 = arith.maximumf %455, %456 : vector<12x32xf32>
      %c1_i32_393 = arith.constant 1 : i32
      %458 = arith.addi %arg23, %c1_i32_393 : i32
      %459 = arith.index_cast %458 : i32 to index
      %c1_394 = arith.constant 1 : index
      %c0_395 = arith.constant 0 : index
      %460 = vector.load %arg20[%459, %c1_394, %c0_395] : memref<14x14x32xf32, #tpu.memory_space<vmem>>, vector<1x12x32xf32>
      %461 = vector.shape_cast %460 : vector<1x12x32xf32> to vector<12x32xf32>
      %462 = vector.shape_cast %457 : vector<12x32xf32> to vector<1x12x32xf32>
      tpu.vector_store %arg20[%459, %c1_394, %c0_395], %462 {strides = array<i32>} : memref<14x14x32xf32, #tpu.memory_space<vmem>>, vector<1x12x32xf32>,
    }
    %c12_i32_54 = arith.constant 12 : i32
    %59 = tpu.iota {dimensions = array<i32: 0>} : vector<7x14xi32>
    %60 = tpu.iota {dimensions = array<i32: 1>} : vector<7x14xi32>
    %c2_i32_55 = arith.constant 2 : i32
    %61 = vector.broadcast %c2_i32_55 : i32 to vector<7x14xi32>
    %62 = arith.muli %61, %59 : vector<7x14xi32>
    %63 = arith.cmpi eq, %60, %62 : vector<7x14xi32>
    %64 = arith.extui %63 : vector<7x14xi1> to vector<7x14xi32>
    %65 = arith.sitofp %64 : vector<7x14xi32> to vector<7x14xf32>
    %c2_i32_56 = arith.constant 2 : i32
    %66 = vector.broadcast %c2_i32_56 : i32 to vector<7x14xi32>
    %67 = arith.muli %66, %59 : vector<7x14xi32>
    %c1_i32_57 = arith.constant 1 : i32
    %68 = vector.broadcast %c1_i32_57 : i32 to vector<7x14xi32>
    %69 = arith.addi %67, %68 : vector<7x14xi32>
    %70 = arith.cmpi eq, %60, %69 : vector<7x14xi32>
    %71 = arith.extui %70 : vector<7x14xi1> to vector<7x14xi32>
    %72 = arith.sitofp %71 : vector<7x14xi32> to vector<7x14xf32>
    %c0_58 = arith.constant 0 : index
    %c0_59 = arith.constant 0 : index
    %c0_60 = arith.constant 0 : index
    %73 = vector.load %arg8[%c0_58, %c0_59, %c0_60] : memref<4x32x32xf32, #tpu.memory_space<vmem>>, vector<1x32x32xf32>
    %74 = vector.shape_cast %73 : vector<1x32x32xf32> to vector<32x32xf32>
    %c1_61 = arith.constant 1 : index
    %c0_62 = arith.constant 0 : index
    %c0_63 = arith.constant 0 : index
    %75 = vector.load %arg8[%c1_61, %c0_62, %c0_63] : memref<4x32x32xf32, #tpu.memory_space<vmem>>, vector<1x32x32xf32>
    %76 = vector.shape_cast %75 : vector<1x32x32xf32> to vector<32x32xf32>
    %c2_64 = arith.constant 2 : index
    %c0_65 = arith.constant 0 : index
    %c0_66 = arith.constant 0 : index
    %77 = vector.load %arg8[%c2_64, %c0_65, %c0_66] : memref<4x32x32xf32, #tpu.memory_space<vmem>>, vector<1x32x32xf32>
    %78 = vector.shape_cast %77 : vector<1x32x32xf32> to vector<32x32xf32>
    %c3_67 = arith.constant 3 : index
    %c0_68 = arith.constant 0 : index
    %c0_69 = arith.constant 0 : index
    %79 = vector.load %arg8[%c3_67, %c0_68, %c0_69] : memref<4x32x32xf32, #tpu.memory_space<vmem>>, vector<1x32x32xf32>
    %80 = vector.shape_cast %79 : vector<1x32x32xf32> to vector<32x32xf32>
    %c0_70 = arith.constant 0 : index
    %c0_71 = arith.constant 0 : index
    %81 = vector.load %arg9[%c0_70, %c0_71] : memref<1x32xf32, #tpu.memory_space<vmem>>, vector<1x32xf32>
    %c0_72 = arith.constant 0 : index
    %c0_73 = arith.constant 0 : index
    %c0_74 = arith.constant 0 : index
    %82 = vector.load %arg20[%c0_72, %c0_73, %c0_74] : memref<14x14x32xf32, #tpu.memory_space<vmem>>, vector<1x14x32xf32>
    %83 = vector.shape_cast %82 : vector<1x14x32xf32> to vector<14x32xf32>
    %c1_75 = arith.constant 1 : index
    %c0_76 = arith.constant 0 : index
    %c0_77 = arith.constant 0 : index
    %84 = vector.load %arg20[%c1_75, %c0_76, %c0_77] : memref<14x14x32xf32, #tpu.memory_space<vmem>>, vector<1x14x32xf32>
    %85 = vector.shape_cast %84 : vector<1x14x32xf32> to vector<14x32xf32>
    %cst_78 = arith.constant dense<0.000000e+00> : vector<14x32xf32>
    %86 = tpu.matmul %83, %74, %cst_78 {dimension_numbers = #tpu.dot_dimension_numbers<[1], [0], [0], [1], [0, 0, 1, 1], [], []>} : vector<14x32xf32>, vector<32x32xf32>, vector<14x32xf32> -> vector<14x32xf32>
    %cst_79 = arith.constant dense<0.000000e+00> : vector<14x32xf32>
    %87 = tpu.matmul %85, %78, %cst_79 {dimension_numbers = #tpu.dot_dimension_numbers<[1], [0], [0], [1], [0, 0, 1, 1], [], []>} : vector<14x32xf32>, vector<32x32xf32>, vector<14x32xf32> -> vector<14x32xf32>
    %88 = arith.addf %86, %87 : vector<14x32xf32>
    %cst_80 = arith.constant dense<0.000000e+00> : vector<14x32xf32>
    %89 = tpu.matmul %83, %76, %cst_80 {dimension_numbers = #tpu.dot_dimension_numbers<[1], [0], [0], [1], [0, 0, 1, 1], [], []>} : vector<14x32xf32>, vector<32x32xf32>, vector<14x32xf32> -> vector<14x32xf32>
    %cst_81 = arith.constant dense<0.000000e+00> : vector<14x32xf32>
    %90 = tpu.matmul %85, %80, %cst_81 {dimension_numbers = #tpu.dot_dimension_numbers<[1], [0], [0], [1], [0, 0, 1, 1], [], []>} : vector<14x32xf32>, vector<32x32xf32>, vector<14x32xf32> -> vector<14x32xf32>
    %91 = arith.addf %89, %90 : vector<14x32xf32>
    %cst_82 = arith.constant dense<0.000000e+00> : vector<7x32xf32>
    %92 = tpu.matmul %65, %88, %cst_82 {dimension_numbers = #tpu.dot_dimension_numbers<[1], [0], [0], [1], [0, 0, 1, 1], [], []>} : vector<7x14xf32>, vector<14x32xf32>, vector<7x32xf32> -> vector<7x32xf32>
    %cst_83 = arith.constant dense<0.000000e+00> : vector<7x32xf32>
    %93 = tpu.matmul %72, %91, %cst_83 {dimension_numbers = #tpu.dot_dimension_numbers<[1], [0], [0], [1], [0, 0, 1, 1], [], []>} : vector<7x14xf32>, vector<14x32xf32>, vector<7x32xf32> -> vector<7x32xf32>
    %94 = arith.addf %92, %93 : vector<7x32xf32>
    %95 = vector.broadcast %81 : vector<1x32xf32> to vector<7x32xf32>
    %96 = arith.addf %94, %95 : vector<7x32xf32>
    %cst_84 = arith.constant 0.000000e+00 : f32
    %97 = vector.broadcast %cst_84 : f32 to vector<7x32xf32>
    %98 = arith.maximumf %96, %97 : vector<7x32xf32>
    %c1_85 = arith.constant 1 : index
    %c1_86 = arith.constant 1 : index
    %c0_87 = arith.constant 0 : index
    %99 = vector.load %arg21[%c1_85, %c1_86, %c0_87] : memref<8x8x32xf32, #tpu.memory_space<vmem>>, vector<1x7x32xf32>
    %100 = vector.shape_cast %99 : vector<1x7x32xf32> to vector<7x32xf32>
    %101 = vector.shape_cast %98 : vector<7x32xf32> to vector<1x7x32xf32>
    tpu.vector_store %arg21[%c1_85, %c1_86, %c0_87], %101 {strides = array<i32>} : memref<8x8x32xf32, #tpu.memory_space<vmem>>, vector<1x7x32xf32>,
    %c2_88 = arith.constant 2 : index
    %c0_89 = arith.constant 0 : index
    %c0_90 = arith.constant 0 : index
    %102 = vector.load %arg20[%c2_88, %c0_89, %c0_90] : memref<14x14x32xf32, #tpu.memory_space<vmem>>, vector<1x14x32xf32>
    %103 = vector.shape_cast %102 : vector<1x14x32xf32> to vector<14x32xf32>
    %c3_91 = arith.constant 3 : index
    %c0_92 = arith.constant 0 : index
    %c0_93 = arith.constant 0 : index
    %104 = vector.load %arg20[%c3_91, %c0_92, %c0_93] : memref<14x14x32xf32, #tpu.memory_space<vmem>>, vector<1x14x32xf32>
    %105 = vector.shape_cast %104 : vector<1x14x32xf32> to vector<14x32xf32>
    %cst_94 = arith.constant dense<0.000000e+00> : vector<14x32xf32>
    %106 = tpu.matmul %103, %74, %cst_94 {dimension_numbers = #tpu.dot_dimension_numbers<[1], [0], [0], [1], [0, 0, 1, 1], [], []>} : vector<14x32xf32>, vector<32x32xf32>, vector<14x32xf32> -> vector<14x32xf32>
    %cst_95 = arith.constant dense<0.000000e+00> : vector<14x32xf32>
    %107 = tpu.matmul %105, %78, %cst_95 {dimension_numbers = #tpu.dot_dimension_numbers<[1], [0], [0], [1], [0, 0, 1, 1], [], []>} : vector<14x32xf32>, vector<32x32xf32>, vector<14x32xf32> -> vector<14x32xf32>
    %108 = arith.addf %106, %107 : vector<14x32xf32>
    %cst_96 = arith.constant dense<0.000000e+00> : vector<14x32xf32>
    %109 = tpu.matmul %103, %76, %cst_96 {dimension_numbers = #tpu.dot_dimension_numbers<[1], [0], [0], [1], [0, 0, 1, 1], [], []>} : vector<14x32xf32>, vector<32x32xf32>, vector<14x32xf32> -> vector<14x32xf32>
    %cst_97 = arith.constant dense<0.000000e+00> : vector<14x32xf32>
    %110 = tpu.matmul %105, %80, %cst_97 {dimension_numbers = #tpu.dot_dimension_numbers<[1], [0], [0], [1], [0, 0, 1, 1], [], []>} : vector<14x32xf32>, vector<32x32xf32>, vector<14x32xf32> -> vector<14x32xf32>
    %111 = arith.addf %109, %110 : vector<14x32xf32>
    %cst_98 = arith.constant dense<0.000000e+00> : vector<7x32xf32>
    %112 = tpu.matmul %65, %108, %cst_98 {dimension_numbers = #tpu.dot_dimension_numbers<[1], [0], [0], [1], [0, 0, 1, 1], [], []>} : vector<7x14xf32>, vector<14x32xf32>, vector<7x32xf32> -> vector<7x32xf32>
    %cst_99 = arith.constant dense<0.000000e+00> : vector<7x32xf32>
    %113 = tpu.matmul %72, %111, %cst_99 {dimension_numbers = #tpu.dot_dimension_numbers<[1], [0], [0], [1], [0, 0, 1, 1], [], []>} : vector<7x14xf32>, vector<14x32xf32>, vector<7x32xf32> -> vector<7x32xf32>
    %114 = arith.addf %112, %113 : vector<7x32xf32>
    %115 = vector.broadcast %81 : vector<1x32xf32> to vector<7x32xf32>
    %116 = arith.addf %114, %115 : vector<7x32xf32>
    %cst_100 = arith.constant 0.000000e+00 : f32
    %117 = vector.broadcast %cst_100 : f32 to vector<7x32xf32>
    %118 = arith.maximumf %116, %117 : vector<7x32xf32>
    %c2_101 = arith.constant 2 : index
    %c1_102 = arith.constant 1 : index
    %c0_103 = arith.constant 0 : index
    %119 = vector.load %arg21[%c2_101, %c1_102, %c0_103] : memref<8x8x32xf32, #tpu.memory_space<vmem>>, vector<1x7x32xf32>
    %120 = vector.shape_cast %119 : vector<1x7x32xf32> to vector<7x32xf32>
    %121 = vector.shape_cast %118 : vector<7x32xf32> to vector<1x7x32xf32>
    tpu.vector_store %arg21[%c2_101, %c1_102, %c0_103], %121 {strides = array<i32>} : memref<8x8x32xf32, #tpu.memory_space<vmem>>, vector<1x7x32xf32>,
    %c4 = arith.constant 4 : index
    %c0_104 = arith.constant 0 : index
    %c0_105 = arith.constant 0 : index
    %122 = vector.load %arg20[%c4, %c0_104, %c0_105] : memref<14x14x32xf32, #tpu.memory_space<vmem>>, vector<1x14x32xf32>
    %123 = vector.shape_cast %122 : vector<1x14x32xf32> to vector<14x32xf32>
    %c5 = arith.constant 5 : index
    %c0_106 = arith.constant 0 : index
    %c0_107 = arith.constant 0 : index
    %124 = vector.load %arg20[%c5, %c0_106, %c0_107] : memref<14x14x32xf32, #tpu.memory_space<vmem>>, vector<1x14x32xf32>
    %125 = vector.shape_cast %124 : vector<1x14x32xf32> to vector<14x32xf32>
    %cst_108 = arith.constant dense<0.000000e+00> : vector<14x32xf32>
    %126 = tpu.matmul %123, %74, %cst_108 {dimension_numbers = #tpu.dot_dimension_numbers<[1], [0], [0], [1], [0, 0, 1, 1], [], []>} : vector<14x32xf32>, vector<32x32xf32>, vector<14x32xf32> -> vector<14x32xf32>
    %cst_109 = arith.constant dense<0.000000e+00> : vector<14x32xf32>
    %127 = tpu.matmul %125, %78, %cst_109 {dimension_numbers = #tpu.dot_dimension_numbers<[1], [0], [0], [1], [0, 0, 1, 1], [], []>} : vector<14x32xf32>, vector<32x32xf32>, vector<14x32xf32> -> vector<14x32xf32>
    %128 = arith.addf %126, %127 : vector<14x32xf32>
    %cst_110 = arith.constant dense<0.000000e+00> : vector<14x32xf32>
    %129 = tpu.matmul %123, %76, %cst_110 {dimension_numbers = #tpu.dot_dimension_numbers<[1], [0], [0], [1], [0, 0, 1, 1], [], []>} : vector<14x32xf32>, vector<32x32xf32>, vector<14x32xf32> -> vector<14x32xf32>
    %cst_111 = arith.constant dense<0.000000e+00> : vector<14x32xf32>
    %130 = tpu.matmul %125, %80, %cst_111 {dimension_numbers = #tpu.dot_dimension_numbers<[1], [0], [0], [1], [0, 0, 1, 1], [], []>} : vector<14x32xf32>, vector<32x32xf32>, vector<14x32xf32> -> vector<14x32xf32>
    %131 = arith.addf %129, %130 : vector<14x32xf32>
    %cst_112 = arith.constant dense<0.000000e+00> : vector<7x32xf32>
    %132 = tpu.matmul %65, %128, %cst_112 {dimension_numbers = #tpu.dot_dimension_numbers<[1], [0], [0], [1], [0, 0, 1, 1], [], []>} : vector<7x14xf32>, vector<14x32xf32>, vector<7x32xf32> -> vector<7x32xf32>
    %cst_113 = arith.constant dense<0.000000e+00> : vector<7x32xf32>
    %133 = tpu.matmul %72, %131, %cst_113 {dimension_numbers = #tpu.dot_dimension_numbers<[1], [0], [0], [1], [0, 0, 1, 1], [], []>} : vector<7x14xf32>, vector<14x32xf32>, vector<7x32xf32> -> vector<7x32xf32>
    %134 = arith.addf %132, %133 : vector<7x32xf32>
    %135 = vector.broadcast %81 : vector<1x32xf32> to vector<7x32xf32>
    %136 = arith.addf %134, %135 : vector<7x32xf32>
    %cst_114 = arith.constant 0.000000e+00 : f32
    %137 = vector.broadcast %cst_114 : f32 to vector<7x32xf32>
    %138 = arith.maximumf %136, %137 : vector<7x32xf32>
    %c3_115 = arith.constant 3 : index
    %c1_116 = arith.constant 1 : index
    %c0_117 = arith.constant 0 : index
    %139 = vector.load %arg21[%c3_115, %c1_116, %c0_117] : memref<8x8x32xf32, #tpu.memory_space<vmem>>, vector<1x7x32xf32>
    %140 = vector.shape_cast %139 : vector<1x7x32xf32> to vector<7x32xf32>
    %141 = vector.shape_cast %138 : vector<7x32xf32> to vector<1x7x32xf32>
    tpu.vector_store %arg21[%c3_115, %c1_116, %c0_117], %141 {strides = array<i32>} : memref<8x8x32xf32, #tpu.memory_space<vmem>>, vector<1x7x32xf32>,
    %c6 = arith.constant 6 : index
    %c0_118 = arith.constant 0 : index
    %c0_119 = arith.constant 0 : index
    %142 = vector.load %arg20[%c6, %c0_118, %c0_119] : memref<14x14x32xf32, #tpu.memory_space<vmem>>, vector<1x14x32xf32>
    %143 = vector.shape_cast %142 : vector<1x14x32xf32> to vector<14x32xf32>
    %c7 = arith.constant 7 : index
    %c0_120 = arith.constant 0 : index
    %c0_121 = arith.constant 0 : index
    %144 = vector.load %arg20[%c7, %c0_120, %c0_121] : memref<14x14x32xf32, #tpu.memory_space<vmem>>, vector<1x14x32xf32>
    %145 = vector.shape_cast %144 : vector<1x14x32xf32> to vector<14x32xf32>
    %cst_122 = arith.constant dense<0.000000e+00> : vector<14x32xf32>
    %146 = tpu.matmul %143, %74, %cst_122 {dimension_numbers = #tpu.dot_dimension_numbers<[1], [0], [0], [1], [0, 0, 1, 1], [], []>} : vector<14x32xf32>, vector<32x32xf32>, vector<14x32xf32> -> vector<14x32xf32>
    %cst_123 = arith.constant dense<0.000000e+00> : vector<14x32xf32>
    %147 = tpu.matmul %145, %78, %cst_123 {dimension_numbers = #tpu.dot_dimension_numbers<[1], [0], [0], [1], [0, 0, 1, 1], [], []>} : vector<14x32xf32>, vector<32x32xf32>, vector<14x32xf32> -> vector<14x32xf32>
    %148 = arith.addf %146, %147 : vector<14x32xf32>
    %cst_124 = arith.constant dense<0.000000e+00> : vector<14x32xf32>
    %149 = tpu.matmul %143, %76, %cst_124 {dimension_numbers = #tpu.dot_dimension_numbers<[1], [0], [0], [1], [0, 0, 1, 1], [], []>} : vector<14x32xf32>, vector<32x32xf32>, vector<14x32xf32> -> vector<14x32xf32>
    %cst_125 = arith.constant dense<0.000000e+00> : vector<14x32xf32>
    %150 = tpu.matmul %145, %80, %cst_125 {dimension_numbers = #tpu.dot_dimension_numbers<[1], [0], [0], [1], [0, 0, 1, 1], [], []>} : vector<14x32xf32>, vector<32x32xf32>, vector<14x32xf32> -> vector<14x32xf32>
    %151 = arith.addf %149, %150 : vector<14x32xf32>
    %cst_126 = arith.constant dense<0.000000e+00> : vector<7x32xf32>
    %152 = tpu.matmul %65, %148, %cst_126 {dimension_numbers = #tpu.dot_dimension_numbers<[1], [0], [0], [1], [0, 0, 1, 1], [], []>} : vector<7x14xf32>, vector<14x32xf32>, vector<7x32xf32> -> vector<7x32xf32>
    %cst_127 = arith.constant dense<0.000000e+00> : vector<7x32xf32>
    %153 = tpu.matmul %72, %151, %cst_127 {dimension_numbers = #tpu.dot_dimension_numbers<[1], [0], [0], [1], [0, 0, 1, 1], [], []>} : vector<7x14xf32>, vector<14x32xf32>, vector<7x32xf32> -> vector<7x32xf32>
    %154 = arith.addf %152, %153 : vector<7x32xf32>
    %155 = vector.broadcast %81 : vector<1x32xf32> to vector<7x32xf32>
    %156 = arith.addf %154, %155 : vector<7x32xf32>
    %cst_128 = arith.constant 0.000000e+00 : f32
    %157 = vector.broadcast %cst_128 : f32 to vector<7x32xf32>
    %158 = arith.maximumf %156, %157 : vector<7x32xf32>
    %c4_129 = arith.constant 4 : index
    %c1_130 = arith.constant 1 : index
    %c0_131 = arith.constant 0 : index
    %159 = vector.load %arg21[%c4_129, %c1_130, %c0_131] : memref<8x8x32xf32, #tpu.memory_space<vmem>>, vector<1x7x32xf32>
    %160 = vector.shape_cast %159 : vector<1x7x32xf32> to vector<7x32xf32>
    %161 = vector.shape_cast %158 : vector<7x32xf32> to vector<1x7x32xf32>
    tpu.vector_store %arg21[%c4_129, %c1_130, %c0_131], %161 {strides = array<i32>} : memref<8x8x32xf32, #tpu.memory_space<vmem>>, vector<1x7x32xf32>,
    %c8 = arith.constant 8 : index
    %c0_132 = arith.constant 0 : index
    %c0_133 = arith.constant 0 : index
    %162 = vector.load %arg20[%c8, %c0_132, %c0_133] : memref<14x14x32xf32, #tpu.memory_space<vmem>>, vector<1x14x32xf32>
    %163 = vector.shape_cast %162 : vector<1x14x32xf32> to vector<14x32xf32>
    %c9 = arith.constant 9 : index
    %c0_134 = arith.constant 0 : index
    %c0_135 = arith.constant 0 : index
    %164 = vector.load %arg20[%c9, %c0_134, %c0_135] : memref<14x14x32xf32, #tpu.memory_space<vmem>>, vector<1x14x32xf32>
    %165 = vector.shape_cast %164 : vector<1x14x32xf32> to vector<14x32xf32>
    %cst_136 = arith.constant dense<0.000000e+00> : vector<14x32xf32>
    %166 = tpu.matmul %163, %74, %cst_136 {dimension_numbers = #tpu.dot_dimension_numbers<[1], [0], [0], [1], [0, 0, 1, 1], [], []>} : vector<14x32xf32>, vector<32x32xf32>, vector<14x32xf32> -> vector<14x32xf32>
    %cst_137 = arith.constant dense<0.000000e+00> : vector<14x32xf32>
    %167 = tpu.matmul %165, %78, %cst_137 {dimension_numbers = #tpu.dot_dimension_numbers<[1], [0], [0], [1], [0, 0, 1, 1], [], []>} : vector<14x32xf32>, vector<32x32xf32>, vector<14x32xf32> -> vector<14x32xf32>
    %168 = arith.addf %166, %167 : vector<14x32xf32>
    %cst_138 = arith.constant dense<0.000000e+00> : vector<14x32xf32>
    %169 = tpu.matmul %163, %76, %cst_138 {dimension_numbers = #tpu.dot_dimension_numbers<[1], [0], [0], [1], [0, 0, 1, 1], [], []>} : vector<14x32xf32>, vector<32x32xf32>, vector<14x32xf32> -> vector<14x32xf32>
    %cst_139 = arith.constant dense<0.000000e+00> : vector<14x32xf32>
    %170 = tpu.matmul %165, %80, %cst_139 {dimension_numbers = #tpu.dot_dimension_numbers<[1], [0], [0], [1], [0, 0, 1, 1], [], []>} : vector<14x32xf32>, vector<32x32xf32>, vector<14x32xf32> -> vector<14x32xf32>
    %171 = arith.addf %169, %170 : vector<14x32xf32>
    %cst_140 = arith.constant dense<0.000000e+00> : vector<7x32xf32>
    %172 = tpu.matmul %65, %168, %cst_140 {dimension_numbers = #tpu.dot_dimension_numbers<[1], [0], [0], [1], [0, 0, 1, 1], [], []>} : vector<7x14xf32>, vector<14x32xf32>, vector<7x32xf32> -> vector<7x32xf32>
    %cst_141 = arith.constant dense<0.000000e+00> : vector<7x32xf32>
    %173 = tpu.matmul %72, %171, %cst_141 {dimension_numbers = #tpu.dot_dimension_numbers<[1], [0], [0], [1], [0, 0, 1, 1], [], []>} : vector<7x14xf32>, vector<14x32xf32>, vector<7x32xf32> -> vector<7x32xf32>
    %174 = arith.addf %172, %173 : vector<7x32xf32>
    %175 = vector.broadcast %81 : vector<1x32xf32> to vector<7x32xf32>
    %176 = arith.addf %174, %175 : vector<7x32xf32>
    %cst_142 = arith.constant 0.000000e+00 : f32
    %177 = vector.broadcast %cst_142 : f32 to vector<7x32xf32>
    %178 = arith.maximumf %176, %177 : vector<7x32xf32>
    %c5_143 = arith.constant 5 : index
    %c1_144 = arith.constant 1 : index
    %c0_145 = arith.constant 0 : index
    %179 = vector.load %arg21[%c5_143, %c1_144, %c0_145] : memref<8x8x32xf32, #tpu.memory_space<vmem>>, vector<1x7x32xf32>
    %180 = vector.shape_cast %179 : vector<1x7x32xf32> to vector<7x32xf32>
    %181 = vector.shape_cast %178 : vector<7x32xf32> to vector<1x7x32xf32>
    tpu.vector_store %arg21[%c5_143, %c1_144, %c0_145], %181 {strides = array<i32>} : memref<8x8x32xf32, #tpu.memory_space<vmem>>, vector<1x7x32xf32>,
    %c10 = arith.constant 10 : index
    %c0_146 = arith.constant 0 : index
    %c0_147 = arith.constant 0 : index
    %182 = vector.load %arg20[%c10, %c0_146, %c0_147] : memref<14x14x32xf32, #tpu.memory_space<vmem>>, vector<1x14x32xf32>
    %183 = vector.shape_cast %182 : vector<1x14x32xf32> to vector<14x32xf32>
    %c11 = arith.constant 11 : index
    %c0_148 = arith.constant 0 : index
    %c0_149 = arith.constant 0 : index
    %184 = vector.load %arg20[%c11, %c0_148, %c0_149] : memref<14x14x32xf32, #tpu.memory_space<vmem>>, vector<1x14x32xf32>
    %185 = vector.shape_cast %184 : vector<1x14x32xf32> to vector<14x32xf32>
    %cst_150 = arith.constant dense<0.000000e+00> : vector<14x32xf32>
    %186 = tpu.matmul %183, %74, %cst_150 {dimension_numbers = #tpu.dot_dimension_numbers<[1], [0], [0], [1], [0, 0, 1, 1], [], []>} : vector<14x32xf32>, vector<32x32xf32>, vector<14x32xf32> -> vector<14x32xf32>
    %cst_151 = arith.constant dense<0.000000e+00> : vector<14x32xf32>
    %187 = tpu.matmul %185, %78, %cst_151 {dimension_numbers = #tpu.dot_dimension_numbers<[1], [0], [0], [1], [0, 0, 1, 1], [], []>} : vector<14x32xf32>, vector<32x32xf32>, vector<14x32xf32> -> vector<14x32xf32>
    %188 = arith.addf %186, %187 : vector<14x32xf32>
    %cst_152 = arith.constant dense<0.000000e+00> : vector<14x32xf32>
    %189 = tpu.matmul %183, %76, %cst_152 {dimension_numbers = #tpu.dot_dimension_numbers<[1], [0], [0], [1], [0, 0, 1, 1], [], []>} : vector<14x32xf32>, vector<32x32xf32>, vector<14x32xf32> -> vector<14x32xf32>
    %cst_153 = arith.constant dense<0.000000e+00> : vector<14x32xf32>
    %190 = tpu.matmul %185, %80, %cst_153 {dimension_numbers = #tpu.dot_dimension_numbers<[1], [0], [0], [1], [0, 0, 1, 1], [], []>} : vector<14x32xf32>, vector<32x32xf32>, vector<14x32xf32> -> vector<14x32xf32>
    %191 = arith.addf %189, %190 : vector<14x32xf32>
    %cst_154 = arith.constant dense<0.000000e+00> : vector<7x32xf32>
    %192 = tpu.matmul %65, %188, %cst_154 {dimension_numbers = #tpu.dot_dimension_numbers<[1], [0], [0], [1], [0, 0, 1, 1], [], []>} : vector<7x14xf32>, vector<14x32xf32>, vector<7x32xf32> -> vector<7x32xf32>
    %cst_155 = arith.constant dense<0.000000e+00> : vector<7x32xf32>
    %193 = tpu.matmul %72, %191, %cst_155 {dimension_numbers = #tpu.dot_dimension_numbers<[1], [0], [0], [1], [0, 0, 1, 1], [], []>} : vector<7x14xf32>, vector<14x32xf32>, vector<7x32xf32> -> vector<7x32xf32>
    %194 = arith.addf %192, %193 : vector<7x32xf32>
    %195 = vector.broadcast %81 : vector<1x32xf32> to vector<7x32xf32>
    %196 = arith.addf %194, %195 : vector<7x32xf32>
    %cst_156 = arith.constant 0.000000e+00 : f32
    %197 = vector.broadcast %cst_156 : f32 to vector<7x32xf32>
    %198 = arith.maximumf %196, %197 : vector<7x32xf32>
    %c6_157 = arith.constant 6 : index
    %c1_158 = arith.constant 1 : index
    %c0_159 = arith.constant 0 : index
    %199 = vector.load %arg21[%c6_157, %c1_158, %c0_159] : memref<8x8x32xf32, #tpu.memory_space<vmem>>, vector<1x7x32xf32>
    %200 = vector.shape_cast %199 : vector<1x7x32xf32> to vector<7x32xf32>
    %201 = vector.shape_cast %198 : vector<7x32xf32> to vector<1x7x32xf32>
    tpu.vector_store %arg21[%c6_157, %c1_158, %c0_159], %201 {strides = array<i32>} : memref<8x8x32xf32, #tpu.memory_space<vmem>>, vector<1x7x32xf32>,
    %c12 = arith.constant 12 : index
    %c0_160 = arith.constant 0 : index
    %c0_161 = arith.constant 0 : index
    %202 = vector.load %arg20[%c12, %c0_160, %c0_161] : memref<14x14x32xf32, #tpu.memory_space<vmem>>, vector<1x14x32xf32>
    %203 = vector.shape_cast %202 : vector<1x14x32xf32> to vector<14x32xf32>
    %c13 = arith.constant 13 : index
    %c0_162 = arith.constant 0 : index
    %c0_163 = arith.constant 0 : index
    %204 = vector.load %arg20[%c13, %c0_162, %c0_163] : memref<14x14x32xf32, #tpu.memory_space<vmem>>, vector<1x14x32xf32>
    %205 = vector.shape_cast %204 : vector<1x14x32xf32> to vector<14x32xf32>
    %cst_164 = arith.constant dense<0.000000e+00> : vector<14x32xf32>
    %206 = tpu.matmul %203, %74, %cst_164 {dimension_numbers = #tpu.dot_dimension_numbers<[1], [0], [0], [1], [0, 0, 1, 1], [], []>} : vector<14x32xf32>, vector<32x32xf32>, vector<14x32xf32> -> vector<14x32xf32>
    %cst_165 = arith.constant dense<0.000000e+00> : vector<14x32xf32>
    %207 = tpu.matmul %205, %78, %cst_165 {dimension_numbers = #tpu.dot_dimension_numbers<[1], [0], [0], [1], [0, 0, 1, 1], [], []>} : vector<14x32xf32>, vector<32x32xf32>, vector<14x32xf32> -> vector<14x32xf32>
    %208 = arith.addf %206, %207 : vector<14x32xf32>
    %cst_166 = arith.constant dense<0.000000e+00> : vector<14x32xf32>
    %209 = tpu.matmul %203, %76, %cst_166 {dimension_numbers = #tpu.dot_dimension_numbers<[1], [0], [0], [1], [0, 0, 1, 1], [], []>} : vector<14x32xf32>, vector<32x32xf32>, vector<14x32xf32> -> vector<14x32xf32>
    %cst_167 = arith.constant dense<0.000000e+00> : vector<14x32xf32>
    %210 = tpu.matmul %205, %80, %cst_167 {dimension_numbers = #tpu.dot_dimension_numbers<[1], [0], [0], [1], [0, 0, 1, 1], [], []>} : vector<14x32xf32>, vector<32x32xf32>, vector<14x32xf32> -> vector<14x32xf32>
    %211 = arith.addf %209, %210 : vector<14x32xf32>
    %cst_168 = arith.constant dense<0.000000e+00> : vector<7x32xf32>
    %212 = tpu.matmul %65, %208, %cst_168 {dimension_numbers = #tpu.dot_dimension_numbers<[1], [0], [0], [1], [0, 0, 1, 1], [], []>} : vector<7x14xf32>, vector<14x32xf32>, vector<7x32xf32> -> vector<7x32xf32>
    %cst_169 = arith.constant dense<0.000000e+00> : vector<7x32xf32>
    %213 = tpu.matmul %72, %211, %cst_169 {dimension_numbers = #tpu.dot_dimension_numbers<[1], [0], [0], [1], [0, 0, 1, 1], [], []>} : vector<7x14xf32>, vector<14x32xf32>, vector<7x32xf32> -> vector<7x32xf32>
    %214 = arith.addf %212, %213 : vector<7x32xf32>
    %215 = vector.broadcast %81 : vector<1x32xf32> to vector<7x32xf32>
    %216 = arith.addf %214, %215 : vector<7x32xf32>
    %cst_170 = arith.constant 0.000000e+00 : f32
    %217 = vector.broadcast %cst_170 : f32 to vector<7x32xf32>
    %218 = arith.maximumf %216, %217 : vector<7x32xf32>
    %c7_171 = arith.constant 7 : index
    %c1_172 = arith.constant 1 : index
    %c0_173 = arith.constant 0 : index
    %219 = vector.load %arg21[%c7_171, %c1_172, %c0_173] : memref<8x8x32xf32, #tpu.memory_space<vmem>>, vector<1x7x32xf32>
    %220 = vector.shape_cast %219 : vector<1x7x32xf32> to vector<7x32xf32>
    %221 = vector.shape_cast %218 : vector<7x32xf32> to vector<1x7x32xf32>
    tpu.vector_store %arg21[%c7_171, %c1_172, %c0_173], %221 {strides = array<i32>} : memref<8x8x32xf32, #tpu.memory_space<vmem>>, vector<1x7x32xf32>,
    %222 = tpu.iota {dimensions = array<i32: 0>} : vector<4x8xi32>
    %223 = tpu.iota {dimensions = array<i32: 1>} : vector<4x8xi32>
    %c2_i32_174 = arith.constant 2 : i32
    %224 = vector.broadcast %c2_i32_174 : i32 to vector<4x8xi32>
    %225 = arith.muli %224, %222 : vector<4x8xi32>
    %226 = arith.cmpi eq, %223, %225 : vector<4x8xi32>
    %227 = arith.extui %226 : vector<4x8xi1> to vector<4x8xi32>
    %228 = arith.sitofp %227 : vector<4x8xi32> to vector<4x8xf32>
    %c2_i32_175 = arith.constant 2 : i32
    %229 = vector.broadcast %c2_i32_175 : i32 to vector<4x8xi32>
    %230 = arith.muli %229, %222 : vector<4x8xi32>
    %c1_i32_176 = arith.constant 1 : i32
    %231 = vector.broadcast %c1_i32_176 : i32 to vector<4x8xi32>
    %232 = arith.addi %230, %231 : vector<4x8xi32>
    %233 = arith.cmpi eq, %223, %232 : vector<4x8xi32>
    %234 = arith.extui %233 : vector<4x8xi1> to vector<4x8xi32>
    %235 = arith.sitofp %234 : vector<4x8xi32> to vector<4x8xf32>
    %c0_177 = arith.constant 0 : index
    %c0_178 = arith.constant 0 : index
    %c0_179 = arith.constant 0 : index
    %236 = vector.load %arg10[%c0_177, %c0_178, %c0_179] : memref<4x32x32xf32, #tpu.memory_space<vmem>>, vector<1x32x32xf32>
    %237 = vector.shape_cast %236 : vector<1x32x32xf32> to vector<32x32xf32>
    %c1_180 = arith.constant 1 : index
    %c0_181 = arith.constant 0 : index
    %c0_182 = arith.constant 0 : index
    %238 = vector.load %arg10[%c1_180, %c0_181, %c0_182] : memref<4x32x32xf32, #tpu.memory_space<vmem>>, vector<1x32x32xf32>
    %239 = vector.shape_cast %238 : vector<1x32x32xf32> to vector<32x32xf32>
    %c2_183 = arith.constant 2 : index
    %c0_184 = arith.constant 0 : index
    %c0_185 = arith.constant 0 : index
    %240 = vector.load %arg10[%c2_183, %c0_184, %c0_185] : memref<4x32x32xf32, #tpu.memory_space<vmem>>, vector<1x32x32xf32>
    %241 = vector.shape_cast %240 : vector<1x32x32xf32> to vector<32x32xf32>
    %c3_186 = arith.constant 3 : index
    %c0_187 = arith.constant 0 : index
    %c0_188 = arith.constant 0 : index
    %242 = vector.load %arg10[%c3_186, %c0_187, %c0_188] : memref<4x32x32xf32, #tpu.memory_space<vmem>>, vector<1x32x32xf32>
    %243 = vector.shape_cast %242 : vector<1x32x32xf32> to vector<32x32xf32>
    %c0_189 = arith.constant 0 : index
    %c0_190 = arith.constant 0 : index
    %244 = vector.load %arg11[%c0_189, %c0_190] : memref<1x32xf32, #tpu.memory_space<vmem>>, vector<1x32xf32>
    %c0_191 = arith.constant 0 : index
    %c0_192 = arith.constant 0 : index
    %c0_193 = arith.constant 0 : index
    %245 = vector.load %arg21[%c0_191, %c0_192, %c0_193] : memref<8x8x32xf32, #tpu.memory_space<vmem>>, vector<1x8x32xf32>
    %246 = vector.shape_cast %245 : vector<1x8x32xf32> to vector<8x32xf32>
    %c1_194 = arith.constant 1 : index
    %c0_195 = arith.constant 0 : index
    %c0_196 = arith.constant 0 : index
    %247 = vector.load %arg21[%c1_194, %c0_195, %c0_196] : memref<8x8x32xf32, #tpu.memory_space<vmem>>, vector<1x8x32xf32>
    %248 = vector.shape_cast %247 : vector<1x8x32xf32> to vector<8x32xf32>
    %cst_197 = arith.constant dense<0.000000e+00> : vector<8x32xf32>
    %249 = tpu.matmul %246, %237, %cst_197 {dimension_numbers = #tpu.dot_dimension_numbers<[1], [0], [0], [1], [0, 0, 1, 1], [], []>} : vector<8x32xf32>, vector<32x32xf32>, vector<8x32xf32> -> vector<8x32xf32>
    %cst_198 = arith.constant dense<0.000000e+00> : vector<8x32xf32>
    %250 = tpu.matmul %248, %241, %cst_198 {dimension_numbers = #tpu.dot_dimension_numbers<[1], [0], [0], [1], [0, 0, 1, 1], [], []>} : vector<8x32xf32>, vector<32x32xf32>, vector<8x32xf32> -> vector<8x32xf32>
    %251 = arith.addf %249, %250 : vector<8x32xf32>
    %cst_199 = arith.constant dense<0.000000e+00> : vector<8x32xf32>
    %252 = tpu.matmul %246, %239, %cst_199 {dimension_numbers = #tpu.dot_dimension_numbers<[1], [0], [0], [1], [0, 0, 1, 1], [], []>} : vector<8x32xf32>, vector<32x32xf32>, vector<8x32xf32> -> vector<8x32xf32>
    %cst_200 = arith.constant dense<0.000000e+00> : vector<8x32xf32>
    %253 = tpu.matmul %248, %243, %cst_200 {dimension_numbers = #tpu.dot_dimension_numbers<[1], [0], [0], [1], [0, 0, 1, 1], [], []>} : vector<8x32xf32>, vector<32x32xf32>, vector<8x32xf32> -> vector<8x32xf32>
    %254 = arith.addf %252, %253 : vector<8x32xf32>
    %cst_201 = arith.constant dense<0.000000e+00> : vector<4x32xf32>
    %255 = tpu.matmul %228, %251, %cst_201 {dimension_numbers = #tpu.dot_dimension_numbers<[1], [0], [0], [1], [0, 0, 1, 1], [], []>} : vector<4x8xf32>, vector<8x32xf32>, vector<4x32xf32> -> vector<4x32xf32>
    %cst_202 = arith.constant dense<0.000000e+00> : vector<4x32xf32>
    %256 = tpu.matmul %235, %254, %cst_202 {dimension_numbers = #tpu.dot_dimension_numbers<[1], [0], [0], [1], [0, 0, 1, 1], [], []>} : vector<4x8xf32>, vector<8x32xf32>, vector<4x32xf32> -> vector<4x32xf32>
    %257 = arith.addf %255, %256 : vector<4x32xf32>
    %258 = vector.broadcast %244 : vector<1x32xf32> to vector<4x32xf32>
    %259 = arith.addf %257, %258 : vector<4x32xf32>
    %cst_203 = arith.constant 0.000000e+00 : f32
    %260 = vector.broadcast %cst_203 : f32 to vector<4x32xf32>
    %261 = arith.maximumf %259, %260 : vector<4x32xf32>
    %c0_204 = arith.constant 0 : index
    %c0_205 = arith.constant 0 : index
    %c0_206 = arith.constant 0 : index
    %262 = vector.load %arg22[%c0_204, %c0_205, %c0_206] : memref<4x4x32xf32, #tpu.memory_space<vmem>>, vector<1x4x32xf32>
    %263 = vector.shape_cast %262 : vector<1x4x32xf32> to vector<4x32xf32>
    %264 = vector.shape_cast %261 : vector<4x32xf32> to vector<1x4x32xf32>
    tpu.vector_store %arg22[%c0_204, %c0_205, %c0_206], %264 {strides = array<i32>} : memref<4x4x32xf32, #tpu.memory_space<vmem>>, vector<1x4x32xf32>,
    %c2_207 = arith.constant 2 : index
    %c0_208 = arith.constant 0 : index
    %c0_209 = arith.constant 0 : index
    %265 = vector.load %arg21[%c2_207, %c0_208, %c0_209] : memref<8x8x32xf32, #tpu.memory_space<vmem>>, vector<1x8x32xf32>
    %266 = vector.shape_cast %265 : vector<1x8x32xf32> to vector<8x32xf32>
    %c3_210 = arith.constant 3 : index
    %c0_211 = arith.constant 0 : index
    %c0_212 = arith.constant 0 : index
    %267 = vector.load %arg21[%c3_210, %c0_211, %c0_212] : memref<8x8x32xf32, #tpu.memory_space<vmem>>, vector<1x8x32xf32>
    %268 = vector.shape_cast %267 : vector<1x8x32xf32> to vector<8x32xf32>
    %cst_213 = arith.constant dense<0.000000e+00> : vector<8x32xf32>
    %269 = tpu.matmul %266, %237, %cst_213 {dimension_numbers = #tpu.dot_dimension_numbers<[1], [0], [0], [1], [0, 0, 1, 1], [], []>} : vector<8x32xf32>, vector<32x32xf32>, vector<8x32xf32> -> vector<8x32xf32>
    %cst_214 = arith.constant dense<0.000000e+00> : vector<8x32xf32>
    %270 = tpu.matmul %268, %241, %cst_214 {dimension_numbers = #tpu.dot_dimension_numbers<[1], [0], [0], [1], [0, 0, 1, 1], [], []>} : vector<8x32xf32>, vector<32x32xf32>, vector<8x32xf32> -> vector<8x32xf32>
    %271 = arith.addf %269, %270 : vector<8x32xf32>
    %cst_215 = arith.constant dense<0.000000e+00> : vector<8x32xf32>
    %272 = tpu.matmul %266, %239, %cst_215 {dimension_numbers = #tpu.dot_dimension_numbers<[1], [0], [0], [1], [0, 0, 1, 1], [], []>} : vector<8x32xf32>, vector<32x32xf32>, vector<8x32xf32> -> vector<8x32xf32>
    %cst_216 = arith.constant dense<0.000000e+00> : vector<8x32xf32>
    %273 = tpu.matmul %268, %243, %cst_216 {dimension_numbers = #tpu.dot_dimension_numbers<[1], [0], [0], [1], [0, 0, 1, 1], [], []>} : vector<8x32xf32>, vector<32x32xf32>, vector<8x32xf32> -> vector<8x32xf32>
    %274 = arith.addf %272, %273 : vector<8x32xf32>
    %cst_217 = arith.constant dense<0.000000e+00> : vector<4x32xf32>
    %275 = tpu.matmul %228, %271, %cst_217 {dimension_numbers = #tpu.dot_dimension_numbers<[1], [0], [0], [1], [0, 0, 1, 1], [], []>} : vector<4x8xf32>, vector<8x32xf32>, vector<4x32xf32> -> vector<4x32xf32>
    %cst_218 = arith.constant dense<0.000000e+00> : vector<4x32xf32>
    %276 = tpu.matmul %235, %274, %cst_218 {dimension_numbers = #tpu.dot_dimension_numbers<[1], [0], [0], [1], [0, 0, 1, 1], [], []>} : vector<4x8xf32>, vector<8x32xf32>, vector<4x32xf32> -> vector<4x32xf32>
    %277 = arith.addf %275, %276 : vector<4x32xf32>
    %278 = vector.broadcast %244 : vector<1x32xf32> to vector<4x32xf32>
    %279 = arith.addf %277, %278 : vector<4x32xf32>
    %cst_219 = arith.constant 0.000000e+00 : f32
    %280 = vector.broadcast %cst_219 : f32 to vector<4x32xf32>
    %281 = arith.maximumf %279, %280 : vector<4x32xf32>
    %c1_220 = arith.constant 1 : index
    %c0_221 = arith.constant 0 : index
    %c0_222 = arith.constant 0 : index
    %282 = vector.load %arg22[%c1_220, %c0_221, %c0_222] : memref<4x4x32xf32, #tpu.memory_space<vmem>>, vector<1x4x32xf32>
    %283 = vector.shape_cast %282 : vector<1x4x32xf32> to vector<4x32xf32>
    %284 = vector.shape_cast %281 : vector<4x32xf32> to vector<1x4x32xf32>
    tpu.vector_store %arg22[%c1_220, %c0_221, %c0_222], %284 {strides = array<i32>} : memref<4x4x32xf32, #tpu.memory_space<vmem>>, vector<1x4x32xf32>,
    %c4_223 = arith.constant 4 : index
    %c0_224 = arith.constant 0 : index
    %c0_225 = arith.constant 0 : index
    %285 = vector.load %arg21[%c4_223, %c0_224, %c0_225] : memref<8x8x32xf32, #tpu.memory_space<vmem>>, vector<1x8x32xf32>
    %286 = vector.shape_cast %285 : vector<1x8x32xf32> to vector<8x32xf32>
    %c5_226 = arith.constant 5 : index
    %c0_227 = arith.constant 0 : index
    %c0_228 = arith.constant 0 : index
    %287 = vector.load %arg21[%c5_226, %c0_227, %c0_228] : memref<8x8x32xf32, #tpu.memory_space<vmem>>, vector<1x8x32xf32>
    %288 = vector.shape_cast %287 : vector<1x8x32xf32> to vector<8x32xf32>
    %cst_229 = arith.constant dense<0.000000e+00> : vector<8x32xf32>
    %289 = tpu.matmul %286, %237, %cst_229 {dimension_numbers = #tpu.dot_dimension_numbers<[1], [0], [0], [1], [0, 0, 1, 1], [], []>} : vector<8x32xf32>, vector<32x32xf32>, vector<8x32xf32> -> vector<8x32xf32>
    %cst_230 = arith.constant dense<0.000000e+00> : vector<8x32xf32>
    %290 = tpu.matmul %288, %241, %cst_230 {dimension_numbers = #tpu.dot_dimension_numbers<[1], [0], [0], [1], [0, 0, 1, 1], [], []>} : vector<8x32xf32>, vector<32x32xf32>, vector<8x32xf32> -> vector<8x32xf32>
    %291 = arith.addf %289, %290 : vector<8x32xf32>
    %cst_231 = arith.constant dense<0.000000e+00> : vector<8x32xf32>
    %292 = tpu.matmul %286, %239, %cst_231 {dimension_numbers = #tpu.dot_dimension_numbers<[1], [0], [0], [1], [0, 0, 1, 1], [], []>} : vector<8x32xf32>, vector<32x32xf32>, vector<8x32xf32> -> vector<8x32xf32>
    %cst_232 = arith.constant dense<0.000000e+00> : vector<8x32xf32>
    %293 = tpu.matmul %288, %243, %cst_232 {dimension_numbers = #tpu.dot_dimension_numbers<[1], [0], [0], [1], [0, 0, 1, 1], [], []>} : vector<8x32xf32>, vector<32x32xf32>, vector<8x32xf32> -> vector<8x32xf32>
    %294 = arith.addf %292, %293 : vector<8x32xf32>
    %cst_233 = arith.constant dense<0.000000e+00> : vector<4x32xf32>
    %295 = tpu.matmul %228, %291, %cst_233 {dimension_numbers = #tpu.dot_dimension_numbers<[1], [0], [0], [1], [0, 0, 1, 1], [], []>} : vector<4x8xf32>, vector<8x32xf32>, vector<4x32xf32> -> vector<4x32xf32>
    %cst_234 = arith.constant dense<0.000000e+00> : vector<4x32xf32>
    %296 = tpu.matmul %235, %294, %cst_234 {dimension_numbers = #tpu.dot_dimension_numbers<[1], [0], [0], [1], [0, 0, 1, 1], [], []>} : vector<4x8xf32>, vector<8x32xf32>, vector<4x32xf32> -> vector<4x32xf32>
    %297 = arith.addf %295, %296 : vector<4x32xf32>
    %298 = vector.broadcast %244 : vector<1x32xf32> to vector<4x32xf32>
    %299 = arith.addf %297, %298 : vector<4x32xf32>
    %cst_235 = arith.constant 0.000000e+00 : f32
    %300 = vector.broadcast %cst_235 : f32 to vector<4x32xf32>
    %301 = arith.maximumf %299, %300 : vector<4x32xf32>
    %c2_236 = arith.constant 2 : index
    %c0_237 = arith.constant 0 : index
    %c0_238 = arith.constant 0 : index
    %302 = vector.load %arg22[%c2_236, %c0_237, %c0_238] : memref<4x4x32xf32, #tpu.memory_space<vmem>>, vector<1x4x32xf32>
    %303 = vector.shape_cast %302 : vector<1x4x32xf32> to vector<4x32xf32>
    %304 = vector.shape_cast %301 : vector<4x32xf32> to vector<1x4x32xf32>
    tpu.vector_store %arg22[%c2_236, %c0_237, %c0_238], %304 {strides = array<i32>} : memref<4x4x32xf32, #tpu.memory_space<vmem>>, vector<1x4x32xf32>,
    %c6_239 = arith.constant 6 : index
    %c0_240 = arith.constant 0 : index
    %c0_241 = arith.constant 0 : index
    %305 = vector.load %arg21[%c6_239, %c0_240, %c0_241] : memref<8x8x32xf32, #tpu.memory_space<vmem>>, vector<1x8x32xf32>
    %306 = vector.shape_cast %305 : vector<1x8x32xf32> to vector<8x32xf32>
    %c7_242 = arith.constant 7 : index
    %c0_243 = arith.constant 0 : index
    %c0_244 = arith.constant 0 : index
    %307 = vector.load %arg21[%c7_242, %c0_243, %c0_244] : memref<8x8x32xf32, #tpu.memory_space<vmem>>, vector<1x8x32xf32>
    %308 = vector.shape_cast %307 : vector<1x8x32xf32> to vector<8x32xf32>
    %cst_245 = arith.constant dense<0.000000e+00> : vector<8x32xf32>
    %309 = tpu.matmul %306, %237, %cst_245 {dimension_numbers = #tpu.dot_dimension_numbers<[1], [0], [0], [1], [0, 0, 1, 1], [], []>} : vector<8x32xf32>, vector<32x32xf32>, vector<8x32xf32> -> vector<8x32xf32>
    %cst_246 = arith.constant dense<0.000000e+00> : vector<8x32xf32>
    %310 = tpu.matmul %308, %241, %cst_246 {dimension_numbers = #tpu.dot_dimension_numbers<[1], [0], [0], [1], [0, 0, 1, 1], [], []>} : vector<8x32xf32>, vector<32x32xf32>, vector<8x32xf32> -> vector<8x32xf32>
    %311 = arith.addf %309, %310 : vector<8x32xf32>
    %cst_247 = arith.constant dense<0.000000e+00> : vector<8x32xf32>
    %312 = tpu.matmul %306, %239, %cst_247 {dimension_numbers = #tpu.dot_dimension_numbers<[1], [0], [0], [1], [0, 0, 1, 1], [], []>} : vector<8x32xf32>, vector<32x32xf32>, vector<8x32xf32> -> vector<8x32xf32>
    %cst_248 = arith.constant dense<0.000000e+00> : vector<8x32xf32>
    %313 = tpu.matmul %308, %243, %cst_248 {dimension_numbers = #tpu.dot_dimension_numbers<[1], [0], [0], [1], [0, 0, 1, 1], [], []>} : vector<8x32xf32>, vector<32x32xf32>, vector<8x32xf32> -> vector<8x32xf32>
    %314 = arith.addf %312, %313 : vector<8x32xf32>
    %cst_249 = arith.constant dense<0.000000e+00> : vector<4x32xf32>
    %315 = tpu.matmul %228, %311, %cst_249 {dimension_numbers = #tpu.dot_dimension_numbers<[1], [0], [0], [1], [0, 0, 1, 1], [], []>} : vector<4x8xf32>, vector<8x32xf32>, vector<4x32xf32> -> vector<4x32xf32>
    %cst_250 = arith.constant dense<0.000000e+00> : vector<4x32xf32>
    %316 = tpu.matmul %235, %314, %cst_250 {dimension_numbers = #tpu.dot_dimension_numbers<[1], [0], [0], [1], [0, 0, 1, 1], [], []>} : vector<4x8xf32>, vector<8x32xf32>, vector<4x32xf32> -> vector<4x32xf32>
    %317 = arith.addf %315, %316 : vector<4x32xf32>
    %318 = vector.broadcast %244 : vector<1x32xf32> to vector<4x32xf32>
    %319 = arith.addf %317, %318 : vector<4x32xf32>
    %cst_251 = arith.constant 0.000000e+00 : f32
    %320 = vector.broadcast %cst_251 : f32 to vector<4x32xf32>
    %321 = arith.maximumf %319, %320 : vector<4x32xf32>
    %c3_252 = arith.constant 3 : index
    %c0_253 = arith.constant 0 : index
    %c0_254 = arith.constant 0 : index
    %322 = vector.load %arg22[%c3_252, %c0_253, %c0_254] : memref<4x4x32xf32, #tpu.memory_space<vmem>>, vector<1x4x32xf32>
    %323 = vector.shape_cast %322 : vector<1x4x32xf32> to vector<4x32xf32>
    %324 = vector.shape_cast %321 : vector<4x32xf32> to vector<1x4x32xf32>
    tpu.vector_store %arg22[%c3_252, %c0_253, %c0_254], %324 {strides = array<i32>} : memref<4x4x32xf32, #tpu.memory_space<vmem>>, vector<1x4x32xf32>,
    %c0_255 = arith.constant 0 : index
    %c0_256 = arith.constant 0 : index
    %325 = vector.load %arg13[%c0_255, %c0_256] : memref<1x120xf32, #tpu.memory_space<vmem>>, vector<1x120xf32>
    %c0_257 = arith.constant 0 : index
    %c0_258 = arith.constant 0 : index
    %c0_259 = arith.constant 0 : index
    %326 = vector.load %arg22[%c0_257, %c0_258, %c0_259] : memref<4x4x32xf32, #tpu.memory_space<vmem>>, vector<1x1x32xf32>
    %327 = vector.shape_cast %326 : vector<1x1x32xf32> to vector<1x32xf32>
    %c0_260 = arith.constant 0 : index
    %c0_261 = arith.constant 0 : index
    %c0_262 = arith.constant 0 : index
    %328 = vector.load %arg12[%c0_260, %c0_261, %c0_262] : memref<16x32x120xf32, #tpu.memory_space<vmem>>, vector<1x32x120xf32>
    %329 = vector.shape_cast %328 : vector<1x32x120xf32> to vector<32x120xf32>
    %cst_263 = arith.constant dense<0.000000e+00> : vector<1x120xf32>
    %330 = tpu.matmul %327, %329, %cst_263 {dimension_numbers = #tpu.dot_dimension_numbers<[1], [0], [0], [1], [0, 0, 1, 1], [], []>} : vector<1x32xf32>, vector<32x120xf32>, vector<1x120xf32> -> vector<1x120xf32>
    %331 = arith.addf %325, %330 : vector<1x120xf32>
    %c0_264 = arith.constant 0 : index
    %c1_265 = arith.constant 1 : index
    %c0_266 = arith.constant 0 : index
    %332 = vector.load %arg22[%c0_264, %c1_265, %c0_266] : memref<4x4x32xf32, #tpu.memory_space<vmem>>, vector<1x1x32xf32>
    %333 = vector.shape_cast %332 : vector<1x1x32xf32> to vector<1x32xf32>
    %c1_267 = arith.constant 1 : index
    %c0_268 = arith.constant 0 : index
    %c0_269 = arith.constant 0 : index
    %334 = vector.load %arg12[%c1_267, %c0_268, %c0_269] : memref<16x32x120xf32, #tpu.memory_space<vmem>>, vector<1x32x120xf32>
    %335 = vector.shape_cast %334 : vector<1x32x120xf32> to vector<32x120xf32>
    %cst_270 = arith.constant dense<0.000000e+00> : vector<1x120xf32>
    %336 = tpu.matmul %333, %335, %cst_270 {dimension_numbers = #tpu.dot_dimension_numbers<[1], [0], [0], [1], [0, 0, 1, 1], [], []>} : vector<1x32xf32>, vector<32x120xf32>, vector<1x120xf32> -> vector<1x120xf32>
    %337 = arith.addf %331, %336 : vector<1x120xf32>
    %c0_271 = arith.constant 0 : index
    %c2_272 = arith.constant 2 : index
    %c0_273 = arith.constant 0 : index
    %338 = vector.load %arg22[%c0_271, %c2_272, %c0_273] : memref<4x4x32xf32, #tpu.memory_space<vmem>>, vector<1x1x32xf32>
    %339 = vector.shape_cast %338 : vector<1x1x32xf32> to vector<1x32xf32>
    %c2_274 = arith.constant 2 : index
    %c0_275 = arith.constant 0 : index
    %c0_276 = arith.constant 0 : index
    %340 = vector.load %arg12[%c2_274, %c0_275, %c0_276] : memref<16x32x120xf32, #tpu.memory_space<vmem>>, vector<1x32x120xf32>
    %341 = vector.shape_cast %340 : vector<1x32x120xf32> to vector<32x120xf32>
    %cst_277 = arith.constant dense<0.000000e+00> : vector<1x120xf32>
    %342 = tpu.matmul %339, %341, %cst_277 {dimension_numbers = #tpu.dot_dimension_numbers<[1], [0], [0], [1], [0, 0, 1, 1], [], []>} : vector<1x32xf32>, vector<32x120xf32>, vector<1x120xf32> -> vector<1x120xf32>
    %343 = arith.addf %337, %342 : vector<1x120xf32>
    %c0_278 = arith.constant 0 : index
    %c3_279 = arith.constant 3 : index
    %c0_280 = arith.constant 0 : index
    %344 = vector.load %arg22[%c0_278, %c3_279, %c0_280] : memref<4x4x32xf32, #tpu.memory_space<vmem>>, vector<1x1x32xf32>
    %345 = vector.shape_cast %344 : vector<1x1x32xf32> to vector<1x32xf32>
    %c3_281 = arith.constant 3 : index
    %c0_282 = arith.constant 0 : index
    %c0_283 = arith.constant 0 : index
    %346 = vector.load %arg12[%c3_281, %c0_282, %c0_283] : memref<16x32x120xf32, #tpu.memory_space<vmem>>, vector<1x32x120xf32>
    %347 = vector.shape_cast %346 : vector<1x32x120xf32> to vector<32x120xf32>
    %cst_284 = arith.constant dense<0.000000e+00> : vector<1x120xf32>
    %348 = tpu.matmul %345, %347, %cst_284 {dimension_numbers = #tpu.dot_dimension_numbers<[1], [0], [0], [1], [0, 0, 1, 1], [], []>} : vector<1x32xf32>, vector<32x120xf32>, vector<1x120xf32> -> vector<1x120xf32>
    %349 = arith.addf %343, %348 : vector<1x120xf32>
    %c1_285 = arith.constant 1 : index
    %c0_286 = arith.constant 0 : index
    %c0_287 = arith.constant 0 : index
    %350 = vector.load %arg22[%c1_285, %c0_286, %c0_287] : memref<4x4x32xf32, #tpu.memory_space<vmem>>, vector<1x1x32xf32>
    %351 = vector.shape_cast %350 : vector<1x1x32xf32> to vector<1x32xf32>
    %c4_288 = arith.constant 4 : index
    %c0_289 = arith.constant 0 : index
    %c0_290 = arith.constant 0 : index
    %352 = vector.load %arg12[%c4_288, %c0_289, %c0_290] : memref<16x32x120xf32, #tpu.memory_space<vmem>>, vector<1x32x120xf32>
    %353 = vector.shape_cast %352 : vector<1x32x120xf32> to vector<32x120xf32>
    %cst_291 = arith.constant dense<0.000000e+00> : vector<1x120xf32>
    %354 = tpu.matmul %351, %353, %cst_291 {dimension_numbers = #tpu.dot_dimension_numbers<[1], [0], [0], [1], [0, 0, 1, 1], [], []>} : vector<1x32xf32>, vector<32x120xf32>, vector<1x120xf32> -> vector<1x120xf32>
    %355 = arith.addf %349, %354 : vector<1x120xf32>
    %c1_292 = arith.constant 1 : index
    %c1_293 = arith.constant 1 : index
    %c0_294 = arith.constant 0 : index
    %356 = vector.load %arg22[%c1_292, %c1_293, %c0_294] : memref<4x4x32xf32, #tpu.memory_space<vmem>>, vector<1x1x32xf32>
    %357 = vector.shape_cast %356 : vector<1x1x32xf32> to vector<1x32xf32>
    %c5_295 = arith.constant 5 : index
    %c0_296 = arith.constant 0 : index
    %c0_297 = arith.constant 0 : index
    %358 = vector.load %arg12[%c5_295, %c0_296, %c0_297] : memref<16x32x120xf32, #tpu.memory_space<vmem>>, vector<1x32x120xf32>
    %359 = vector.shape_cast %358 : vector<1x32x120xf32> to vector<32x120xf32>
    %cst_298 = arith.constant dense<0.000000e+00> : vector<1x120xf32>
    %360 = tpu.matmul %357, %359, %cst_298 {dimension_numbers = #tpu.dot_dimension_numbers<[1], [0], [0], [1], [0, 0, 1, 1], [], []>} : vector<1x32xf32>, vector<32x120xf32>, vector<1x120xf32> -> vector<1x120xf32>
    %361 = arith.addf %355, %360 : vector<1x120xf32>
    %c1_299 = arith.constant 1 : index
    %c2_300 = arith.constant 2 : index
    %c0_301 = arith.constant 0 : index
    %362 = vector.load %arg22[%c1_299, %c2_300, %c0_301] : memref<4x4x32xf32, #tpu.memory_space<vmem>>, vector<1x1x32xf32>
    %363 = vector.shape_cast %362 : vector<1x1x32xf32> to vector<1x32xf32>
    %c6_302 = arith.constant 6 : index
    %c0_303 = arith.constant 0 : index
    %c0_304 = arith.constant 0 : index
    %364 = vector.load %arg12[%c6_302, %c0_303, %c0_304] : memref<16x32x120xf32, #tpu.memory_space<vmem>>, vector<1x32x120xf32>
    %365 = vector.shape_cast %364 : vector<1x32x120xf32> to vector<32x120xf32>
    %cst_305 = arith.constant dense<0.000000e+00> : vector<1x120xf32>
    %366 = tpu.matmul %363, %365, %cst_305 {dimension_numbers = #tpu.dot_dimension_numbers<[1], [0], [0], [1], [0, 0, 1, 1], [], []>} : vector<1x32xf32>, vector<32x120xf32>, vector<1x120xf32> -> vector<1x120xf32>
    %367 = arith.addf %361, %366 : vector<1x120xf32>
    %c1_306 = arith.constant 1 : index
    %c3_307 = arith.constant 3 : index
    %c0_308 = arith.constant 0 : index
    %368 = vector.load %arg22[%c1_306, %c3_307, %c0_308] : memref<4x4x32xf32, #tpu.memory_space<vmem>>, vector<1x1x32xf32>
    %369 = vector.shape_cast %368 : vector<1x1x32xf32> to vector<1x32xf32>
    %c7_309 = arith.constant 7 : index
    %c0_310 = arith.constant 0 : index
    %c0_311 = arith.constant 0 : index
    %370 = vector.load %arg12[%c7_309, %c0_310, %c0_311] : memref<16x32x120xf32, #tpu.memory_space<vmem>>, vector<1x32x120xf32>
    %371 = vector.shape_cast %370 : vector<1x32x120xf32> to vector<32x120xf32>
    %cst_312 = arith.constant dense<0.000000e+00> : vector<1x120xf32>
    %372 = tpu.matmul %369, %371, %cst_312 {dimension_numbers = #tpu.dot_dimension_numbers<[1], [0], [0], [1], [0, 0, 1, 1], [], []>} : vector<1x32xf32>, vector<32x120xf32>, vector<1x120xf32> -> vector<1x120xf32>
    %373 = arith.addf %367, %372 : vector<1x120xf32>
    %c2_313 = arith.constant 2 : index
    %c0_314 = arith.constant 0 : index
    %c0_315 = arith.constant 0 : index
    %374 = vector.load %arg22[%c2_313, %c0_314, %c0_315] : memref<4x4x32xf32, #tpu.memory_space<vmem>>, vector<1x1x32xf32>
    %375 = vector.shape_cast %374 : vector<1x1x32xf32> to vector<1x32xf32>
    %c8_316 = arith.constant 8 : index
    %c0_317 = arith.constant 0 : index
    %c0_318 = arith.constant 0 : index
    %376 = vector.load %arg12[%c8_316, %c0_317, %c0_318] : memref<16x32x120xf32, #tpu.memory_space<vmem>>, vector<1x32x120xf32>
    %377 = vector.shape_cast %376 : vector<1x32x120xf32> to vector<32x120xf32>
    %cst_319 = arith.constant dense<0.000000e+00> : vector<1x120xf32>
    %378 = tpu.matmul %375, %377, %cst_319 {dimension_numbers = #tpu.dot_dimension_numbers<[1], [0], [0], [1], [0, 0, 1, 1], [], []>} : vector<1x32xf32>, vector<32x120xf32>, vector<1x120xf32> -> vector<1x120xf32>
    %379 = arith.addf %373, %378 : vector<1x120xf32>
    %c2_320 = arith.constant 2 : index
    %c1_321 = arith.constant 1 : index
    %c0_322 = arith.constant 0 : index
    %380 = vector.load %arg22[%c2_320, %c1_321, %c0_322] : memref<4x4x32xf32, #tpu.memory_space<vmem>>, vector<1x1x32xf32>
    %381 = vector.shape_cast %380 : vector<1x1x32xf32> to vector<1x32xf32>
    %c9_323 = arith.constant 9 : index
    %c0_324 = arith.constant 0 : index
    %c0_325 = arith.constant 0 : index
    %382 = vector.load %arg12[%c9_323, %c0_324, %c0_325] : memref<16x32x120xf32, #tpu.memory_space<vmem>>, vector<1x32x120xf32>
    %383 = vector.shape_cast %382 : vector<1x32x120xf32> to vector<32x120xf32>
    %cst_326 = arith.constant dense<0.000000e+00> : vector<1x120xf32>
    %384 = tpu.matmul %381, %383, %cst_326 {dimension_numbers = #tpu.dot_dimension_numbers<[1], [0], [0], [1], [0, 0, 1, 1], [], []>} : vector<1x32xf32>, vector<32x120xf32>, vector<1x120xf32> -> vector<1x120xf32>
    %385 = arith.addf %379, %384 : vector<1x120xf32>
    %c2_327 = arith.constant 2 : index
    %c2_328 = arith.constant 2 : index
    %c0_329 = arith.constant 0 : index
    %386 = vector.load %arg22[%c2_327, %c2_328, %c0_329] : memref<4x4x32xf32, #tpu.memory_space<vmem>>, vector<1x1x32xf32>
    %387 = vector.shape_cast %386 : vector<1x1x32xf32> to vector<1x32xf32>
    %c10_330 = arith.constant 10 : index
    %c0_331 = arith.constant 0 : index
    %c0_332 = arith.constant 0 : index
    %388 = vector.load %arg12[%c10_330, %c0_331, %c0_332] : memref<16x32x120xf32, #tpu.memory_space<vmem>>, vector<1x32x120xf32>
    %389 = vector.shape_cast %388 : vector<1x32x120xf32> to vector<32x120xf32>
    %cst_333 = arith.constant dense<0.000000e+00> : vector<1x120xf32>
    %390 = tpu.matmul %387, %389, %cst_333 {dimension_numbers = #tpu.dot_dimension_numbers<[1], [0], [0], [1], [0, 0, 1, 1], [], []>} : vector<1x32xf32>, vector<32x120xf32>, vector<1x120xf32> -> vector<1x120xf32>
    %391 = arith.addf %385, %390 : vector<1x120xf32>
    %c2_334 = arith.constant 2 : index
    %c3_335 = arith.constant 3 : index
    %c0_336 = arith.constant 0 : index
    %392 = vector.load %arg22[%c2_334, %c3_335, %c0_336] : memref<4x4x32xf32, #tpu.memory_space<vmem>>, vector<1x1x32xf32>
    %393 = vector.shape_cast %392 : vector<1x1x32xf32> to vector<1x32xf32>
    %c11_337 = arith.constant 11 : index
    %c0_338 = arith.constant 0 : index
    %c0_339 = arith.constant 0 : index
    %394 = vector.load %arg12[%c11_337, %c0_338, %c0_339] : memref<16x32x120xf32, #tpu.memory_space<vmem>>, vector<1x32x120xf32>
    %395 = vector.shape_cast %394 : vector<1x32x120xf32> to vector<32x120xf32>
    %cst_340 = arith.constant dense<0.000000e+00> : vector<1x120xf32>
    %396 = tpu.matmul %393, %395, %cst_340 {dimension_numbers = #tpu.dot_dimension_numbers<[1], [0], [0], [1], [0, 0, 1, 1], [], []>} : vector<1x32xf32>, vector<32x120xf32>, vector<1x120xf32> -> vector<1x120xf32>
    %397 = arith.addf %391, %396 : vector<1x120xf32>
    %c3_341 = arith.constant 3 : index
    %c0_342 = arith.constant 0 : index
    %c0_343 = arith.constant 0 : index
    %398 = vector.load %arg22[%c3_341, %c0_342, %c0_343] : memref<4x4x32xf32, #tpu.memory_space<vmem>>, vector<1x1x32xf32>
    %399 = vector.shape_cast %398 : vector<1x1x32xf32> to vector<1x32xf32>
    %c12_344 = arith.constant 12 : index
    %c0_345 = arith.constant 0 : index
    %c0_346 = arith.constant 0 : index
    %400 = vector.load %arg12[%c12_344, %c0_345, %c0_346] : memref<16x32x120xf32, #tpu.memory_space<vmem>>, vector<1x32x120xf32>
    %401 = vector.shape_cast %400 : vector<1x32x120xf32> to vector<32x120xf32>
    %cst_347 = arith.constant dense<0.000000e+00> : vector<1x120xf32>
    %402 = tpu.matmul %399, %401, %cst_347 {dimension_numbers = #tpu.dot_dimension_numbers<[1], [0], [0], [1], [0, 0, 1, 1], [], []>} : vector<1x32xf32>, vector<32x120xf32>, vector<1x120xf32> -> vector<1x120xf32>
    %403 = arith.addf %397, %402 : vector<1x120xf32>
    %c3_348 = arith.constant 3 : index
    %c1_349 = arith.constant 1 : index
    %c0_350 = arith.constant 0 : index
    %404 = vector.load %arg22[%c3_348, %c1_349, %c0_350] : memref<4x4x32xf32, #tpu.memory_space<vmem>>, vector<1x1x32xf32>
    %405 = vector.shape_cast %404 : vector<1x1x32xf32> to vector<1x32xf32>
    %c13_351 = arith.constant 13 : index
    %c0_352 = arith.constant 0 : index
    %c0_353 = arith.constant 0 : index
    %406 = vector.load %arg12[%c13_351, %c0_352, %c0_353] : memref<16x32x120xf32, #tpu.memory_space<vmem>>, vector<1x32x120xf32>
    %407 = vector.shape_cast %406 : vector<1x32x120xf32> to vector<32x120xf32>
    %cst_354 = arith.constant dense<0.000000e+00> : vector<1x120xf32>
    %408 = tpu.matmul %405, %407, %cst_354 {dimension_numbers = #tpu.dot_dimension_numbers<[1], [0], [0], [1], [0, 0, 1, 1], [], []>} : vector<1x32xf32>, vector<32x120xf32>, vector<1x120xf32> -> vector<1x120xf32>
    %409 = arith.addf %403, %408 : vector<1x120xf32>
    %c3_355 = arith.constant 3 : index
    %c2_356 = arith.constant 2 : index
    %c0_357 = arith.constant 0 : index
    %410 = vector.load %arg22[%c3_355, %c2_356, %c0_357] : memref<4x4x32xf32, #tpu.memory_space<vmem>>, vector<1x1x32xf32>
    %411 = vector.shape_cast %410 : vector<1x1x32xf32> to vector<1x32xf32>
    %c14 = arith.constant 14 : index
    %c0_358 = arith.constant 0 : index
    %c0_359 = arith.constant 0 : index
    %412 = vector.load %arg12[%c14, %c0_358, %c0_359] : memref<16x32x120xf32, #tpu.memory_space<vmem>>, vector<1x32x120xf32>
    %413 = vector.shape_cast %412 : vector<1x32x120xf32> to vector<32x120xf32>
    %cst_360 = arith.constant dense<0.000000e+00> : vector<1x120xf32>
    %414 = tpu.matmul %411, %413, %cst_360 {dimension_numbers = #tpu.dot_dimension_numbers<[1], [0], [0], [1], [0, 0, 1, 1], [], []>} : vector<1x32xf32>, vector<32x120xf32>, vector<1x120xf32> -> vector<1x120xf32>
    %415 = arith.addf %409, %414 : vector<1x120xf32>
    %c3_361 = arith.constant 3 : index
    %c3_362 = arith.constant 3 : index
    %c0_363 = arith.constant 0 : index
    %416 = vector.load %arg22[%c3_361, %c3_362, %c0_363] : memref<4x4x32xf32, #tpu.memory_space<vmem>>, vector<1x1x32xf32>
    %417 = vector.shape_cast %416 : vector<1x1x32xf32> to vector<1x32xf32>
    %c15 = arith.constant 15 : index
    %c0_364 = arith.constant 0 : index
    %c0_365 = arith.constant 0 : index
    %418 = vector.load %arg12[%c15, %c0_364, %c0_365] : memref<16x32x120xf32, #tpu.memory_space<vmem>>, vector<1x32x120xf32>
    %419 = vector.shape_cast %418 : vector<1x32x120xf32> to vector<32x120xf32>
    %cst_366 = arith.constant dense<0.000000e+00> : vector<1x120xf32>
    %420 = tpu.matmul %417, %419, %cst_366 {dimension_numbers = #tpu.dot_dimension_numbers<[1], [0], [0], [1], [0, 0, 1, 1], [], []>} : vector<1x32xf32>, vector<32x120xf32>, vector<1x120xf32> -> vector<1x120xf32>
    %421 = arith.addf %415, %420 : vector<1x120xf32>
    %cst_367 = arith.constant 0.000000e+00 : f32
    %422 = vector.broadcast %cst_367 : f32 to vector<1x120xf32>
    %423 = arith.maximumf %421, %422 : vector<1x120xf32>
    %c0_368 = arith.constant 0 : index
    %c0_369 = arith.constant 0 : index
    %424 = vector.load %arg14[%c0_368, %c0_369] : memref<120x5xf32, #tpu.memory_space<vmem>>, vector<120x5xf32>
    %cst_370 = arith.constant dense<0.000000e+00> : vector<1x5xf32>
    %425 = tpu.matmul %423, %424, %cst_370 {dimension_numbers = #tpu.dot_dimension_numbers<[1], [0], [0], [1], [0, 0, 1, 1], [], []>} : vector<1x120xf32>, vector<120x5xf32>, vector<1x5xf32> -> vector<1x5xf32>
    %c0_371 = arith.constant 0 : index
    %c0_372 = arith.constant 0 : index
    %426 = vector.load %arg15[%c0_371, %c0_372] : memref<1x5xf32, #tpu.memory_space<vmem>>, vector<1x5xf32>
    %427 = arith.addf %425, %426 : vector<1x5xf32>
    %428 = vector.extract_strided_slice %427 {offsets = [0, 0], sizes = [1, 4], strides = [1, 1]} : vector<1x5xf32> to vector<1x4xf32>
    %c0_373 = arith.constant 0 : index
    %c0_374 = arith.constant 0 : index
    %c0_375 = arith.constant 0 : index
    %429 = vector.load %arg16[%c0_373, %c0_374, %c0_375] : memref<1x1x4xf32, #tpu.memory_space<vmem>>, vector<1x1x4xf32>
    %430 = vector.shape_cast %429 : vector<1x1x4xf32> to vector<1x4xf32>
    %431 = vector.shape_cast %428 : vector<1x4xf32> to vector<1x1x4xf32>
    tpu.vector_store %arg16[%c0_373, %c0_374, %c0_375], %431 {strides = array<i32>} : memref<1x1x4xf32, #tpu.memory_space<vmem>>, vector<1x1x4xf32>,
    %432 = vector.extract_strided_slice %427 {offsets = [0, 4], sizes = [1, 1], strides = [1, 1]} : vector<1x5xf32> to vector<1x1xf32>
    %c0_376 = arith.constant 0 : index
    %c0_377 = arith.constant 0 : index
    %c0_378 = arith.constant 0 : index
    %433 = vector.load %arg17[%c0_376, %c0_377, %c0_378] : memref<1x1x1xf32, #tpu.memory_space<vmem>>, vector<1x1x1xf32>
    %434 = vector.shape_cast %433 : vector<1x1x1xf32> to vector<1x1xf32>
    %435 = vector.shape_cast %432 : vector<1x1xf32> to vector<1x1x1xf32>
    tpu.vector_store %arg17[%c0_376, %c0_377, %c0_378], %435 {strides = array<i32>} : memref<1x1x1xf32, #tpu.memory_space<vmem>>, vector<1x1x1xf32>,
    return
  }
  func.func @transform_0(%arg0: i32) -> (i32, i32, i32, i32) {
    %c0_i32 = arith.constant 0 : i32
    %c0_i32_0 = arith.constant 0 : i32
    %c0_i32_1 = arith.constant 0 : i32
    %c0_i32_2 = arith.constant 0 : i32
    return %arg0, %c0_i32, %c0_i32_0, %c0_i32_1 : i32, i32, i32, i32
  }
  func.func @transform_1(%arg0: i32) -> (i32, i32) {
    %c0_i32 = arith.constant 0 : i32
    %c0_i32_0 = arith.constant 0 : i32
    %c0_i32_1 = arith.constant 0 : i32
    return %c0_i32, %c0_i32_0 : i32, i32
  }
  func.func @transform_2(%arg0: i32) -> (i32, i32) {
    %c0_i32 = arith.constant 0 : i32
    %c0_i32_0 = arith.constant 0 : i32
    %c0_i32_1 = arith.constant 0 : i32
    return %c0_i32, %c0_i32_0 : i32, i32
  }
  func.func @transform_3(%arg0: i32) -> (i32, i32, i32) {
    %c0_i32 = arith.constant 0 : i32
    %c0_i32_0 = arith.constant 0 : i32
    %c0_i32_1 = arith.constant 0 : i32
    %c0_i32_2 = arith.constant 0 : i32
    return %c0_i32, %c0_i32_0, %c0_i32_1 : i32, i32, i32
  }
  func.func @transform_4(%arg0: i32) -> (i32, i32) {
    %c0_i32 = arith.constant 0 : i32
    %c0_i32_0 = arith.constant 0 : i32
    %c0_i32_1 = arith.constant 0 : i32
    return %c0_i32, %c0_i32_0 : i32, i32
  }
  func.func @transform_5(%arg0: i32) -> (i32, i32, i32) {
    %c0_i32 = arith.constant 0 : i32
    %c0_i32_0 = arith.constant 0 : i32
    %c0_i32_1 = arith.constant 0 : i32
    %c0_i32_2 = arith.constant 0 : i32
    return %c0_i32, %c0_i32_0, %c0_i32_1 : i32, i32, i32
  }
  func.func @transform_6(%arg0: i32) -> (i32, i32) {
    %c0_i32 = arith.constant 0 : i32
    %c0_i32_0 = arith.constant 0 : i32
    %c0_i32_1 = arith.constant 0 : i32
    return %c0_i32, %c0_i32_0 : i32, i32
  }
  func.func @transform_7(%arg0: i32) -> (i32, i32, i32) {
    %c0_i32 = arith.constant 0 : i32
    %c0_i32_0 = arith.constant 0 : i32
    %c0_i32_1 = arith.constant 0 : i32
    %c0_i32_2 = arith.constant 0 : i32
    return %c0_i32, %c0_i32_0, %c0_i32_1 : i32, i32, i32
  }
  func.func @transform_8(%arg0: i32) -> (i32, i32) {
    %c0_i32 = arith.constant 0 : i32
    %c0_i32_0 = arith.constant 0 : i32
    %c0_i32_1 = arith.constant 0 : i32
    return %c0_i32, %c0_i32_0 : i32, i32
  }
  func.func @transform_9(%arg0: i32) -> (i32, i32, i32) {
    %c0_i32 = arith.constant 0 : i32
    %c0_i32_0 = arith.constant 0 : i32
    %c0_i32_1 = arith.constant 0 : i32
    %c0_i32_2 = arith.constant 0 : i32
    return %c0_i32, %c0_i32_0, %c0_i32_1 : i32, i32, i32
  }
  func.func @transform_10(%arg0: i32) -> (i32, i32) {
    %c0_i32 = arith.constant 0 : i32
    %c0_i32_0 = arith.constant 0 : i32
    %c0_i32_1 = arith.constant 0 : i32
    return %c0_i32, %c0_i32_0 : i32, i32
  }
  func.func @transform_11(%arg0: i32) -> (i32, i32, i32) {
    %c0_i32 = arith.constant 0 : i32
    %c0_i32_0 = arith.constant 0 : i32
    %c0_i32_1 = arith.constant 0 : i32
    %c0_i32_2 = arith.constant 0 : i32
    return %c0_i32, %c0_i32_0, %c0_i32_1 : i32, i32, i32
  }
  func.func @transform_12(%arg0: i32) -> (i32, i32) {
    %c0_i32 = arith.constant 0 : i32
    %c0_i32_0 = arith.constant 0 : i32
    %c0_i32_1 = arith.constant 0 : i32
    return %c0_i32, %c0_i32_0 : i32, i32
  }
  func.func @transform_13(%arg0: i32) -> (i32, i32) {
    %c0_i32 = arith.constant 0 : i32
    %c0_i32_0 = arith.constant 0 : i32
    %c0_i32_1 = arith.constant 0 : i32
    return %c0_i32, %c0_i32_0 : i32, i32
  }
  func.func @transform_14(%arg0: i32) -> (i32, i32) {
    %c0_i32 = arith.constant 0 : i32
    %c0_i32_0 = arith.constant 0 : i32
    %c0_i32_1 = arith.constant 0 : i32
    return %c0_i32, %c0_i32_0 : i32, i32
  }
  func.func @transform_15(%arg0: i32) -> (i32, i32, i32) {
    %c0_i32 = arith.constant 0 : i32
    %c0_i32_0 = arith.constant 0 : i32
    %c0_i32_1 = arith.constant 0 : i32
    return %arg0, %c0_i32, %c0_i32_0 : i32, i32, i32
  }
  func.func @transform_16(%arg0: i32) -> (i32, i32, i32) {
    %c0_i32 = arith.constant 0 : i32
    %c0_i32_0 = arith.constant 0 : i32
    %c0_i32_1 = arith.constant 0 : i32
    return %arg0, %c0_i32, %c0_i32_0 : i32, i32, i32
  }
}

</mosaic_0001>

<bundles_post_ra>
// kernel: actor_critic_forward.1
= control target key start
LH: loop header
LB: loop body
LE: loop exit
PB: predicated region body
PF: predicated region fallthrough
CT: control target
= control target key end

     0   :  { %s13850_s0 = inlined_call_operand.vmem [shape: bf16[2,43,43,16], index: 0, kind: input, shape index: {}]   ;;  %s13851_s1 = inlined_call_operand.vmem [shape: bf16[16,32], index: 1, kind: input, shape index: {}]   ;;  %s13852_s2 = inlined_call_operand.vmem [shape: f32[1,32], index: 2, kind: input, shape index: {}]   ;;  %s13853_s3 = inlined_call_operand.vmem [shape: f32[4,32,32], index: 3, kind: input, shape index: {}]   ;;  %s13854_s4 = inlined_call_operand.vmem [shape: f32[1,32], index: 4, kind: input, shape index: {}]   ;;  %s13855_s5 = inlined_call_operand.vmem [shape: f32[4,32,32], index: 5, kind: input, shape index: {}]   ;;  %s13856_s6 = inlined_call_operand.vmem [shape: f32[1,32], index: 6, kind: input, shape index: {}]   ;;  %s13857_s7 = inlined_call_operand.vmem [shape: f32[4,32,32], index: 7, kind: input, shape index: {}]   ;;  %s13858_s8 = inlined_call_operand.vmem [shape: f32[1,32], index: 8, kind: input, shape index: {}]   ;;  %s13859_s9 = inlined_call_operand.vmem [shape: f32[4,32,32], index: 9, kind: input, shape index: {}]   ;;  %s13860_s10 = inlined_call_operand.vmem [shape: f32[1,32], index: 10, kind: input, shape index: {}]   ;;  %s13861_s11 = inlined_call_operand.vmem [shape: f32[16,32,120], index: 11, kind: input, shape index: {}]   ;;  %s13862_s12 = inlined_call_operand.vmem [shape: f32[1,120], index: 12, kind: input, shape index: {}]   ;;  %s13863_s13 = inlined_call_operand.vmem [shape: f32[120,5], index: 13, kind: input, shape index: {}]   ;;  %s13864_s14 = inlined_call_operand.vmem [shape: f32[1,5], index: 14, kind: input, shape index: {}]   ;;  %s13865_s15 = inlined_call_operand.hbm [shape: f32[2,1,4], index: 15, kind: output, shape index: {0}]   ;;  %s13866_s16 = inlined_call_operand.vmem [shape: f32[2,1,1], index: 16, kind: output, shape index: {1}]  }
   0x1   :  { %13871 = sst [smem:[#allocation14_spill]] %s13850_s0 }
   0x2   :  { %13872 = sst [smem:[#allocation15_spill]] %s13851_s1 }
   0x3   :  { %13873 = sst [smem:[#allocation16_spill]] %s13852_s2 }
   0x4   :  { %22 = vsyncpa [#allocation8], 0 }
   0x5   :  { %24 = vsyncpa [#allocation8 + $0x1], 0  ;;  %s11688_s21 = smov 0   ;;  %s11690_s22 = smov 0  }
   0x6   :  { %s11692_s23 = smov 0   ;;  %s11694_s24 = smov 0  }
   0x7 LB: > { %13874 = sst [smem:[#allocation10_spill]] %s11570_s23  ;;  %s11709_s25 = sadd.s32 4294967295, %s11574_s24   ;;  %s11574_s24 = sphi %s11694_s24, %s13889_s24   ;;  %s11570_s23 = sphi %s11692_s23, %s13891_s23   ;;  %s11566_s22 = sphi %s11690_s22, %s13893_s22   ;;  %s11562_s21 = sphi %s11688_s21, %s13892_s21  }
   0x8   : > { %s8858_s26 = sadd.s32 4294967294, %s11574_s24   ;;  %s11713_s27 = sadd.s32 1, %s11574_s24  }
   0x9   : > { %13875 = sst [smem:[#allocation11_spill]] %s11713_s27  ;;  %s357_s28 = sadd.s32 1, %s11570_s23 }
   0xa   : > { %s354_s29 = ssub.s32 %s11574_s24, %s11713_s27  ;;  %p367_p0 = scmp.ne.s32.totalorder %s11570_s23, %s11566_s22 }
   0xb   : > { %p355_p1 = scmp.eq.s32.totalorder %s354_s29, 0  ;;  %p368_p2 = scmp.eq.s32.totalorder %s11709_s25, 1 }
   0xc   : > { %p373_p3 = scmp.ne.s32.totalorder %s11566_s22, %s11562_s21  ;;  %p374_p4 = scmp.eq.s32.totalorder %s8858_s26, 1 }
   0xd   : > { %s11724_s30 = scalar_select %p355_p1, %s11570_s23, %s357_s28  }
   0xe   : > { %p11726_p5 = por %p368_p2, %p367_p0  ;;  %p11730_p6 = por %p374_p4, %p373_p3 }
   0xf   : > { %13876 = sst [smem:[#allocation12_spill]] %s11724_s30  ;;  %p8861_p7 = scmp.ge.s32.totalorder %s11574_s24, 1 }
  0x10   : > { %s13878_s17 = scalar_select %p11730_p6, 1, 0 }
  0x11   : > { %p468_p8 = scmp.lt.s32.totalorder %s11574_s24, 3 }
  0x12   : > { %13879 = sst [smem:[#allocation13_spill]] %s13878_s17 }
  0x13   : > { %p469_p9 = pnand %p8861_p7, %p468_p8 }
  0x14   : > { %p520_p10 = scmp.lt.s32.totalorder (!%p469_p9), %s11709_s25, 1  ;;  %vm529_vm0 = vcmask (!%p469_p9), 261120   ;;  %s13880_s1 = sld [smem:[#allocation15_spill]] (!%p469_p9)  ;;  %v11588_v1 = vmov (!%p469_p9), 0.0   ;;  %vm535_vm1 = vcmask (!%p469_p9), 257024   ;;  %vm868_vm2 = vcmask (!%p469_p9), 259072  }
  0x15   : > { %472 = sbr.rel (%p469_p9) target bundleno = 4747 (0x128b), region = 80  ;;  %530 = vst.msk [vmem:[#allocation2] sm:$0xff] (!%p469_p9), %vm529_vm0, %v11588_v1  ;;  %531 = vst.msk [vmem:[#allocation2 + $0x8] sm:$0xff] (!%p469_p9), %vm529_vm0, %v11588_v1  ;;  %s13881_s2 = sld [smem:[#allocation16_spill]] (!%p469_p9) }
  0x16   : > { %532 = vst.msk [vmem:[#allocation2 + $0x10] sm:$0xff] (!%p469_p9), %vm529_vm0, %v11588_v1  ;;  %533 = vst.msk [vmem:[#allocation2 + $0x18] sm:$0xff] (!%p469_p9), %vm529_vm0, %v11588_v1  ;;  %s13883_s23 = sand.u32 (!%p469_p9), 1, %s11566_s22   ;;  %s12516_s17 = smov (!%p469_p9), 0  }
  0x17   : > { %534 = vst.msk [vmem:[#allocation2 + $0x20] sm:$0xff] (!%p469_p9), %vm529_vm0, %v11588_v1  ;;  %537 = vst.msk [vmem:[#allocation2 + $0x30] sm:$0xff] (!%p469_p9), %vm529_vm0, %v11588_v1  ;;  %s12514_s27 = scalar_lea.vmem (!%p469_p9), [#allocation7], %s13883_s23 }
  0x18   : > { %538 = vst.msk [vmem:[#allocation2 + $0x38] sm:$0xff] (!%p469_p9), %vm529_vm0, %v11588_v1  ;;  %539 = vst.msk [vmem:[#allocation2 + $0x40] sm:$0xff] (!%p469_p9), %vm529_vm0, %v11588_v1 }
  0x19   : > { %540 = vst.msk [vmem:[#allocation2 + $0x48] sm:$0xff] (!%p469_p9), %vm529_vm0, %v11588_v1  ;;  %541 = vst.msk [vmem:[#allocation2 + $0x50] sm:$0xff] (!%p469_p9), %vm529_vm0, %v11588_v1 }
  0x1a   : > { %v11741_v0 = vld [vmem:[%s13880_s1] sm:$0xf] (!%p469_p9)  ;;  %543 = vst.msk [vmem:[#allocation2 + $0x60] sm:$0xff] (!%p469_p9), %vm529_vm0, %v11588_v1  ;;  %544 = vst.msk [vmem:[#allocation2 + $0x68] sm:$0xff] (!%p469_p9), %vm529_vm0, %v11588_v1  ;;  %v12374_v2 = vld [vmem:[%s13880_s1 + $0x4] sm:$0xf] (!%p469_p9) }
  0x1b   : > { %545 = vst.msk [vmem:[#allocation2 + $0x70] sm:$0xff] (!%p469_p9), %vm529_vm0, %v11588_v1  ;;  %546 = vst.msk [vmem:[#allocation2 + $0x78] sm:$0xff] (!%p469_p9), %vm529_vm0, %v11588_v1  ;;  %v12379_v3 = vld [vmem:[%s13881_s2] ss:$0 sm:$0xff] (!%p469_p9)  ;;  %s13882_s2 = sld [smem:[#allocation14_spill]] (!%p469_p9) }
  0x1c   : > { %547 = vst.msk [vmem:[#allocation2 + $0x80] sm:$0xff] %vm529_vm0, %v11588_v1  ;;  %549 = vst.msk [vmem:[#allocation2 + $0x90] sm:$0xff] %vm529_vm0, %v11588_v1  ;;  %s12384_s20 = scalar_select %p520_p10, %s11709_s25, 1 }
  0x1d   : > { %550 = vst.msk [vmem:[#allocation2 + $0x98] sm:$0xff] %vm529_vm0, %v11588_v1  ;;  %551 = vst.msk [vmem:[#allocation2 + $0xa0] sm:$0xff] %vm529_vm0, %v11588_v1 }
  0x1e   : > { %552 = vst.msk [vmem:[#allocation2 + $0xa8] sm:$0xff] %vm529_vm0, %v11588_v1  ;;  %553 = vst.msk [vmem:[#allocation2 + $0xb0] sm:$0xff] %vm529_vm0, %v11588_v1  ;;  %s11419_s26 = smul.u32 1032, %s12384_s20 }
  0x1f   : > { %555 = vst.msk [vmem:[#allocation2 + $0xc0] sm:$0xff] %vm529_vm0, %v11588_v1  ;;  %556 = vst.msk [vmem:[#allocation2 + $0xc8] sm:$0xff] %vm529_vm0, %v11588_v1 }
  0x20   : > { %557 = vst.msk [vmem:[#allocation2 + $0xd0] sm:$0xff] %vm529_vm0, %v11588_v1  ;;  %558 = vst.msk [vmem:[#allocation2 + $0xd8] sm:$0xff] %vm529_vm0, %v11588_v1 }
  0x21   : > { %559 = vst.msk [vmem:[#allocation2 + $0xe0] sm:$0xff] %vm529_vm0, %v11588_v1  ;;  %561 = vst.msk [vmem:[#allocation2 + $0xf0] sm:$0xff] %vm529_vm0, %v11588_v1  ;;  %s12510_s30 = scalar_lea.vmem %s13882_s2, %s11419_s26 }
  0x22   : > { %562 = vst.msk [vmem:[#allocation2 + $0xf8] sm:$0xff] %vm529_vm0, %v11588_v1  ;;  %563 = vst.msk [vmem:[#allocation2 + $0x100] sm:$0xff] %vm529_vm0, %v11588_v1 }
  0x23   : > { %564 = vst.msk [vmem:[#allocation2 + $0x108] sm:$0xff] %vm529_vm0, %v11588_v1  ;;  %565 = vst.msk [vmem:[#allocation2 + $0x110] sm:$0xff] %vm529_vm0, %v11588_v1 }
  0x24   : > { %567 = vst.msk [vmem:[#allocation2 + $0x120] sm:$0xff] %vm529_vm0, %v11588_v1  ;;  %568 = vst.msk [vmem:[#allocation2 + $0x128] sm:$0xff] %vm529_vm0, %v11588_v1 }
  0x25   : > { %569 = vst.msk [vmem:[#allocation2 + $0x130] sm:$0xff] %vm529_vm0, %v11588_v1  ;;  %570 = vst.msk [vmem:[#allocation2 + $0x138] sm:$0xff] %vm529_vm0, %v11588_v1 }
  0x26   : > { %571 = vst.msk [vmem:[#allocation2 + $0x140] sm:$0xff] %vm529_vm0, %v11588_v1  ;;  %573 = vst.msk [vmem:[#allocation2 + $0x150] sm:$0xff] %vm529_vm0, %v11588_v1 }
  0x27   : > { %574 = vst.msk [vmem:[#allocation2 + $0x158] sm:$0xff] %vm529_vm0, %v11588_v1  ;;  %575 = vst.msk [vmem:[#allocation2 + $0x160] sm:$0xff] %vm529_vm0, %v11588_v1 }
  0x28   : > { %576 = vst.msk [vmem:[#allocation2 + $0x168] sm:$0xff] %vm529_vm0, %v11588_v1  ;;  %577 = vst.msk [vmem:[#allocation2 + $0x170] sm:$0xff] %vm529_vm0, %v11588_v1 }
  0x29   : > { %579 = vst.msk [vmem:[#allocation2 + $0x180] sm:$0xff] %vm529_vm0, %v11588_v1  ;;  %580 = vst.msk [vmem:[#allocation2 + $0x188] sm:$0xff] %vm529_vm0, %v11588_v1 }
  0x2a   : > { %581 = vst.msk [vmem:[#allocation2 + $0x190] sm:$0xff] %vm529_vm0, %v11588_v1  ;;  %582 = vst.msk [vmem:[#allocation2 + $0x198] sm:$0xff] %vm529_vm0, %v11588_v1 }
  0x2b   : > { %583 = vst.msk [vmem:[#allocation2 + $0x1a0] sm:$0xff] %vm529_vm0, %v11588_v1  ;;  %585 = vst.msk [vmem:[#allocation2 + $0x1b0] sm:$0xff] %vm529_vm0, %v11588_v1 }
  0x2c   : > { %586 = vst.msk [vmem:[#allocation2 + $0x1b8] sm:$0xff] %vm529_vm0, %v11588_v1  ;;  %587 = vst.msk [vmem:[#allocation2 + $0x1c0] sm:$0xff] %vm529_vm0, %v11588_v1 }
  0x2d   : > { %588 = vst.msk [vmem:[#allocation2 + $0x1c8] sm:$0xff] %vm529_vm0, %v11588_v1  ;;  %589 = vst.msk [vmem:[#allocation2 + $0x1d0] sm:$0xff] %vm529_vm0, %v11588_v1 }
  0x2e   : > { %591 = vst.msk [vmem:[#allocation2 + $0x1e0] sm:$0xff] %vm529_vm0, %v11588_v1  ;;  %592 = vst.msk [vmem:[#allocation2 + $0x1e8] sm:$0xff] %vm529_vm0, %v11588_v1 }
  0x2f   : > { %593 = vst.msk [vmem:[#allocation2 + $0x1f0] sm:$0xff] %vm529_vm0, %v11588_v1  ;;  %594 = vst.msk [vmem:[#allocation2 + $0x1f8] sm:$0xff] %vm529_vm0, %v11588_v1 }
  0x30   : > { %595 = vst.msk [vmem:[#allocation2 + $0x200] sm:$0xff] %vm529_vm0, %v11588_v1  ;;  %597 = vst.msk [vmem:[#allocation2 + $0x210] sm:$0xff] %vm529_vm0, %v11588_v1 }
  0x31   : > { %598 = vst.msk [vmem:[#allocation2 + $0x218] sm:$0xff] %vm529_vm0, %v11588_v1  ;;  %599 = vst.msk [vmem:[#allocation2 + $0x220] sm:$0xff] %vm529_vm0, %v11588_v1 }
  0x32   : > { %600 = vst.msk [vmem:[#allocation2 + $0x228] sm:$0xff] %vm529_vm0, %v11588_v1  ;;  %601 = vst.msk [vmem:[#allocation2 + $0x230] sm:$0xff] %vm529_vm0, %v11588_v1 }
  0x33   : > { %603 = vst.msk [vmem:[#allocation2 + $0x240] sm:$0xff] %vm529_vm0, %v11588_v1  ;;  %604 = vst.msk [vmem:[#allocation2 + $0x248] sm:$0xff] %vm529_vm0, %v11588_v1 }
  0x34   : > { %605 = vst.msk [vmem:[#allocation2 + $0x250] sm:$0xff] %vm529_vm0, %v11588_v1  ;;  %606 = vst.msk [vmem:[#allocation2 + $0x258] sm:$0xff] %vm529_vm0, %v11588_v1 }
  0x35   : > { %607 = vst.msk [vmem:[#allocation2 + $0x260] sm:$0xff] %vm529_vm0, %v11588_v1  ;;  %609 = vst.msk [vmem:[#allocation2 + $0x270] sm:$0xff] %vm529_vm0, %v11588_v1 }
  0x36   : > { %610 = vst.msk [vmem:[#allocation2 + $0x278] sm:$0xff] %vm529_vm0, %v11588_v1  ;;  %611 = vst.msk [vmem:[#allocation2 + $0x280] sm:$0xff] %vm529_vm0, %v11588_v1 }
  0x37   : > { %612 = vst.msk [vmem:[#allocation2 + $0x288] sm:$0xff] %vm529_vm0, %v11588_v1  ;;  %613 = vst.msk [vmem:[#allocation2 + $0x290] sm:$0xff] %vm529_vm0, %v11588_v1 }
  0x38   : > { %615 = vst.msk [vmem:[#allocation2 + $0x2a0] sm:$0xff] %vm529_vm0, %v11588_v1  ;;  %616 = vst.msk [vmem:[#allocation2 + $0x2a8] sm:$0xff] %vm529_vm0, %v11588_v1 }
  0x39   : > { %617 = vst.msk [vmem:[#allocation2 + $0x2b0] sm:$0xff] %vm529_vm0, %v11588_v1  ;;  %618 = vst.msk [vmem:[#allocation2 + $0x2b8] sm:$0xff] %vm529_vm0, %v11588_v1 }
  0x3a   : > { %619 = vst.msk [vmem:[#allocation2 + $0x2c0] sm:$0xff] %vm529_vm0, %v11588_v1  ;;  %621 = vst.msk [vmem:[#allocation2 + $0x2d0] sm:$0xff] %vm529_vm0, %v11588_v1 }
  0x3b   : > { %622 = vst.msk [vmem:[#allocation2 + $0x2d8] sm:$0xff] %vm529_vm0, %v11588_v1  ;;  %623 = vst.msk [vmem:[#allocation2 + $0x2e0] sm:$0xff] %vm529_vm0, %v11588_v1 }
  0x3c   : > { %624 = vst.msk [vmem:[#allocation2 + $0x2e8] sm:$0xff] %vm529_vm0, %v11588_v1  ;;  %625 = vst.msk [vmem:[#allocation2 + $0x2f0] sm:$0xff] %vm529_vm0, %v11588_v1 }
  0x3d   : > { %627 = vst.msk [vmem:[#allocation2 + $0x300] sm:$0xff] %vm529_vm0, %v11588_v1  ;;  %628 = vst.msk [vmem:[#allocation2 + $0x308] sm:$0xff] %vm529_vm0, %v11588_v1 }
  0x3e   : > { %629 = vst.msk [vmem:[#allocation2 + $0x310] sm:$0xff] %vm529_vm0, %v11588_v1  ;;  %630 = vst.msk [vmem:[#allocation2 + $0x318] sm:$0xff] %vm529_vm0, %v11588_v1 }
  0x3f   : > { %631 = vst.msk [vmem:[#allocation2 + $0x320] sm:$0xff] %vm529_vm0, %v11588_v1  ;;  %633 = vst.msk [vmem:[#allocation2 + $0x330] sm:$0xff] %vm529_vm0, %v11588_v1 }
  0x40   : > { %634 = vst.msk [vmem:[#allocation2 + $0x338] sm:$0xff] %vm529_vm0, %v11588_v1  ;;  %635 = vst.msk [vmem:[#allocation2 + $0x340] sm:$0xff] %vm529_vm0, %v11588_v1 }
  0x41   : > { %636 = vst.msk [vmem:[#allocation2 + $0x348] sm:$0xff] %vm529_vm0, %v11588_v1  ;;  %637 = vst.msk [vmem:[#allocation2 + $0x350] sm:$0xff] %vm529_vm0, %v11588_v1 }
  0x42   : > { %639 = vst.msk [vmem:[#allocation2 + $0x360] sm:$0xff] %vm529_vm0, %v11588_v1  ;;  %640 = vst.msk [vmem:[#allocation2 + $0x368] sm:$0xff] %vm529_vm0, %v11588_v1 }
  0x43   : > { %641 = vst.msk [vmem:[#allocation2 + $0x370] sm:$0xff] %vm529_vm0, %v11588_v1  ;;  %642 = vst.msk [vmem:[#allocation2 + $0x378] sm:$0xff] %vm529_vm0, %v11588_v1 }
  0x44   : > { %643 = vst.msk [vmem:[#allocation2 + $0x380] sm:$0xff] %vm529_vm0, %v11588_v1  ;;  %645 = vst.msk [vmem:[#allocation2 + $0x390] sm:$0xff] %vm529_vm0, %v11588_v1 }
  0x45   : > { %646 = vst.msk [vmem:[#allocation2 + $0x398] sm:$0xff] %vm529_vm0, %v11588_v1  ;;  %647 = vst.msk [vmem:[#allocation2 + $0x3a0] sm:$0xff] %vm529_vm0, %v11588_v1 }
  0x46   : > { %648 = vst.msk [vmem:[#allocation2 + $0x3a8] sm:$0xff] %vm529_vm0, %v11588_v1  ;;  %649 = vst.msk [vmem:[#allocation2 + $0x3b0] sm:$0xff] %vm529_vm0, %v11588_v1 }
  0x47   : > { %651 = vst.msk [vmem:[#allocation2 + $0x3c0] sm:$0xff] %vm529_vm0, %v11588_v1  ;;  %652 = vst.msk [vmem:[#allocation2 + $0x3c8] sm:$0xff] %vm529_vm0, %v11588_v1 }
  0x48   : > { %653 = vst.msk [vmem:[#allocation2 + $0x3d0] sm:$0xff] %vm529_vm0, %v11588_v1  ;;  %654 = vst.msk [vmem:[#allocation2 + $0x3d8] sm:$0xff] %vm529_vm0, %v11588_v1 }
  0x49   : > { %655 = vst.msk [vmem:[#allocation2 + $0x3e0] sm:$0xff] %vm529_vm0, %v11588_v1  ;;  %657 = vst.msk [vmem:[#allocation2 + $0x3f0] sm:$0xff] %vm529_vm0, %v11588_v1 }
  0x4a   : > { %658 = vst.msk [vmem:[#allocation2 + $0x3f8] sm:$0xff] %vm529_vm0, %v11588_v1  ;;  %659 = vst.msk [vmem:[#allocation2 + $0x400] sm:$0xff] %vm529_vm0, %v11588_v1 }
  0x4b   : > { %660 = vst.msk [vmem:[#allocation2 + $0x408] sm:$0xff] %vm529_vm0, %v11588_v1  ;;  %661 = vst.msk [vmem:[#allocation2 + $0x410] sm:$0xff] %vm529_vm0, %v11588_v1 }
  0x4c   : > { %663 = vst.msk [vmem:[#allocation2 + $0x420] sm:$0xff] %vm529_vm0, %v11588_v1  ;;  %664 = vst.msk [vmem:[#allocation2 + $0x428] sm:$0xff] %vm529_vm0, %v11588_v1 }
  0x4d   : > { %665 = vst.msk [vmem:[#allocation2 + $0x430] sm:$0xff] %vm529_vm0, %v11588_v1  ;;  %666 = vst.msk [vmem:[#allocation2 + $0x438] sm:$0xff] %vm529_vm0, %v11588_v1 }
  0x4e   : > { %667 = vst.msk [vmem:[#allocation2 + $0x440] sm:$0xff] %vm529_vm0, %v11588_v1  ;;  %669 = vst.msk [vmem:[#allocation2 + $0x450] sm:$0xff] %vm529_vm0, %v11588_v1 }
  0x4f   : > { %670 = vst.msk [vmem:[#allocation2 + $0x458] sm:$0xff] %vm529_vm0, %v11588_v1  ;;  %671 = vst.msk [vmem:[#allocation2 + $0x460] sm:$0xff] %vm529_vm0, %v11588_v1 }
  0x50   : > { %672 = vst.msk [vmem:[#allocation2 + $0x468] sm:$0xff] %vm529_vm0, %v11588_v1  ;;  %673 = vst.msk [vmem:[#allocation2 + $0x470] sm:$0xff] %vm529_vm0, %v11588_v1 }
  0x51   : > { %675 = vst.msk [vmem:[#allocation2 + $0x480] sm:$0xff] %vm529_vm0, %v11588_v1  ;;  %676 = vst.msk [vmem:[#allocation2 + $0x488] sm:$0xff] %vm529_vm0, %v11588_v1 }
  0x52   : > { %677 = vst.msk [vmem:[#allocation2 + $0x490] sm:$0xff] %vm529_vm0, %v11588_v1  ;;  %678 = vst.msk [vmem:[#allocation2 + $0x498] sm:$0xff] %vm529_vm0, %v11588_v1 }
  0x53   : > { %679 = vst.msk [vmem:[#allocation2 + $0x4a0] sm:$0xff] %vm529_vm0, %v11588_v1  ;;  %681 = vst.msk [vmem:[#allocation2 + $0x4b0] sm:$0xff] %vm529_vm0, %v11588_v1 }
  0x54   : > { %682 = vst.msk [vmem:[#allocation2 + $0x4b8] sm:$0xff] %vm529_vm0, %v11588_v1  ;;  %683 = vst.msk [vmem:[#allocation2 + $0x4c0] sm:$0xff] %vm529_vm0, %v11588_v1 }
  0x55   : > { %684 = vst.msk [vmem:[#allocation2 + $0x4c8] sm:$0xff] %vm529_vm0, %v11588_v1  ;;  %685 = vst.msk [vmem:[#allocation2 + $0x4d0] sm:$0xff] %vm529_vm0, %v11588_v1 }
  0x56   : > { %687 = vst.msk [vmem:[#allocation2 + $0x4e0] sm:$0xff] %vm529_vm0, %v11588_v1  ;;  %688 = vst.msk [vmem:[#allocation2 + $0x4e8] sm:$0xff] %vm529_vm0, %v11588_v1 }
  0x57   : > { %689 = vst.msk [vmem:[#allocation2 + $0x4f0] sm:$0xff] %vm529_vm0, %v11588_v1  ;;  %690 = vst.msk [vmem:[#allocation2 + $0x4f8] sm:$0xff] %vm529_vm0, %v11588_v1 }
  0x58   : > { %691 = vst.msk [vmem:[#allocation2 + $0x500] sm:$0xff] %vm529_vm0, %v11588_v1  ;;  %693 = vst.msk [vmem:[#allocation2 + $0x510] sm:$0xff] %vm529_vm0, %v11588_v1 }
  0x59   : > { %694 = vst.msk [vmem:[#allocation2 + $0x518] sm:$0xff] %vm529_vm0, %v11588_v1  ;;  %695 = vst.msk [vmem:[#allocation2 + $0x520] sm:$0xff] %vm529_vm0, %v11588_v1 }
  0x5a   : > { %696 = vst.msk [vmem:[#allocation2 + $0x528] sm:$0xff] %vm529_vm0, %v11588_v1  ;;  %697 = vst.msk [vmem:[#allocation2 + $0x530] sm:$0xff] %vm529_vm0, %v11588_v1 }
  0x5b   : > { %699 = vst.msk [vmem:[#allocation2 + $0x540] sm:$0xff] %vm529_vm0, %v11588_v1  ;;  %700 = vst.msk [vmem:[#allocation2 + $0x548] sm:$0xff] %vm529_vm0, %v11588_v1 }
  0x5c   : > { %701 = vst.msk [vmem:[#allocation2 + $0x550] sm:$0xff] %vm529_vm0, %v11588_v1  ;;  %702 = vst.msk [vmem:[#allocation2 + $0x558] sm:$0xff] %vm529_vm0, %v11588_v1 }
  0x5d   : > { %703 = vst.msk [vmem:[#allocation2 + $0x560] sm:$0xff] %vm529_vm0, %v11588_v1  ;;  %705 = vst.msk [vmem:[#allocation2 + $0x570] sm:$0xff] %vm529_vm0, %v11588_v1 }
  0x5e   : > { %706 = vst.msk [vmem:[#allocation2 + $0x578] sm:$0xff] %vm529_vm0, %v11588_v1  ;;  %707 = vst.msk [vmem:[#allocation2 + $0x580] sm:$0xff] %vm529_vm0, %v11588_v1 }
  0x5f   : > { %708 = vst.msk [vmem:[#allocation2 + $0x588] sm:$0xff] %vm529_vm0, %v11588_v1  ;;  %709 = vst.msk [vmem:[#allocation2 + $0x590] sm:$0xff] %vm529_vm0, %v11588_v1 }
  0x60   : > { %711 = vst.msk [vmem:[#allocation2 + $0x5a0] sm:$0xff] %vm529_vm0, %v11588_v1  ;;  %712 = vst.msk [vmem:[#allocation2 + $0x5a8] sm:$0xff] %vm529_vm0, %v11588_v1 }
  0x61   : > { %713 = vst.msk [vmem:[#allocation2 + $0x5b0] sm:$0xff] %vm529_vm0, %v11588_v1  ;;  %714 = vst.msk [vmem:[#allocation2 + $0x5b8] sm:$0xff] %vm529_vm0, %v11588_v1 }
  0x62   : > { %715 = vst.msk [vmem:[#allocation2 + $0x5c0] sm:$0xff] %vm529_vm0, %v11588_v1  ;;  %717 = vst.msk [vmem:[#allocation2 + $0x5d0] sm:$0xff] %vm529_vm0, %v11588_v1 }
  0x63   : > { %718 = vst.msk [vmem:[#allocation2 + $0x5d8] sm:$0xff] %vm529_vm0, %v11588_v1  ;;  %719 = vst.msk [vmem:[#allocation2 + $0x5e0] sm:$0xff] %vm529_vm0, %v11588_v1 }
  0x64   : > { %720 = vst.msk [vmem:[#allocation2 + $0x5e8] sm:$0xff] %vm529_vm0, %v11588_v1  ;;  %721 = vst.msk [vmem:[#allocation2 + $0x5f0] sm:$0xff] %vm529_vm0, %v11588_v1 }
  0x65   : > { %723 = vst.msk [vmem:[#allocation2 + $0x600] sm:$0xff] %vm529_vm0, %v11588_v1  ;;  %724 = vst.msk [vmem:[#allocation2 + $0x608] sm:$0xff] %vm529_vm0, %v11588_v1 }
  0x66   : > { %725 = vst.msk [vmem:[#allocation2 + $0x610] sm:$0xff] %vm529_vm0, %v11588_v1  ;;  %726 = vst.msk [vmem:[#allocation2 + $0x618] sm:$0xff] %vm529_vm0, %v11588_v1 }
  0x67   : > { %727 = vst.msk [vmem:[#allocation2 + $0x620] sm:$0xff] %vm529_vm0, %v11588_v1  ;;  %729 = vst.msk [vmem:[#allocation2 + $0x630] sm:$0xff] %vm529_vm0, %v11588_v1 }
  0x68   : > { %730 = vst.msk [vmem:[#allocation2 + $0x638] sm:$0xff] %vm529_vm0, %v11588_v1  ;;  %731 = vst.msk [vmem:[#allocation2 + $0x640] sm:$0xff] %vm529_vm0, %v11588_v1 }
  0x69   : > { %732 = vst.msk [vmem:[#allocation2 + $0x648] sm:$0xff] %vm529_vm0, %v11588_v1  ;;  %733 = vst.msk [vmem:[#allocation2 + $0x650] sm:$0xff] %vm529_vm0, %v11588_v1 }
  0x6a   : > { %735 = vst.msk [vmem:[#allocation2 + $0x660] sm:$0xff] %vm529_vm0, %v11588_v1  ;;  %736 = vst.msk [vmem:[#allocation2 + $0x668] sm:$0xff] %vm529_vm0, %v11588_v1 }
  0x6b   : > { %737 = vst.msk [vmem:[#allocation2 + $0x670] sm:$0xff] %vm529_vm0, %v11588_v1  ;;  %738 = vst.msk [vmem:[#allocation2 + $0x678] sm:$0xff] %vm529_vm0, %v11588_v1 }
  0x6c   : > { %739 = vst.msk [vmem:[#allocation2 + $0x680] sm:$0xff] %vm529_vm0, %v11588_v1  ;;  %741 = vst.msk [vmem:[#allocation2 + $0x690] sm:$0xff] %vm529_vm0, %v11588_v1 }
  0x6d   : > { %742 = vst.msk [vmem:[#allocation2 + $0x698] sm:$0xff] %vm529_vm0, %v11588_v1  ;;  %743 = vst.msk [vmem:[#allocation2 + $0x6a0] sm:$0xff] %vm529_vm0, %v11588_v1 }
  0x6e   : > { %744 = vst.msk [vmem:[#allocation2 + $0x6a8] sm:$0xff] %vm529_vm0, %v11588_v1  ;;  %745 = vst.msk [vmem:[#allocation2 + $0x6b0] sm:$0xff] %vm529_vm0, %v11588_v1 }
  0x6f   : > { %747 = vst.msk [vmem:[#allocation2 + $0x6c0] sm:$0xff] %vm529_vm0, %v11588_v1  ;;  %748 = vst.msk [vmem:[#allocation2 + $0x6c8] sm:$0xff] %vm529_vm0, %v11588_v1 }
  0x70   : > { %749 = vst.msk [vmem:[#allocation2 + $0x6d0] sm:$0xff] %vm529_vm0, %v11588_v1  ;;  %750 = vst.msk [vmem:[#allocation2 + $0x6d8] sm:$0xff] %vm529_vm0, %v11588_v1 }
  0x71   : > { %751 = vst.msk [vmem:[#allocation2 + $0x6e0] sm:$0xff] %vm529_vm0, %v11588_v1  ;;  %753 = vst.msk [vmem:[#allocation2 + $0x6f0] sm:$0xff] %vm529_vm0, %v11588_v1 }
  0x72   : > { %754 = vst.msk [vmem:[#allocation2 + $0x6f8] sm:$0xff] %vm529_vm0, %v11588_v1  ;;  %755 = vst.msk [vmem:[#allocation2 + $0x700] sm:$0xff] %vm529_vm0, %v11588_v1 }
  0x73   : > { %756 = vst.msk [vmem:[#allocation2 + $0x708] sm:$0xff] %vm529_vm0, %v11588_v1  ;;  %757 = vst.msk [vmem:[#allocation2 + $0x710] sm:$0xff] %vm529_vm0, %v11588_v1 }
  0x74   : > { %759 = vst.msk [vmem:[#allocation2 + $0x720] sm:$0xff] %vm529_vm0, %v11588_v1  ;;  %760 = vst.msk [vmem:[#allocation2 + $0x728] sm:$0xff] %vm529_vm0, %v11588_v1 }
  0x75   : > { %761 = vst.msk [vmem:[#allocation2 + $0x730] sm:$0xff] %vm529_vm0, %v11588_v1  ;;  %762 = vst.msk [vmem:[#allocation2 + $0x738] sm:$0xff] %vm529_vm0, %v11588_v1 }
  0x76   : > { %763 = vst.msk [vmem:[#allocation2 + $0x740] sm:$0xff] %vm529_vm0, %v11588_v1  ;;  %765 = vst.msk [vmem:[#allocation2 + $0x750] sm:$0xff] %vm529_vm0, %v11588_v1 }
  0x77   : > { %766 = vst.msk [vmem:[#allocation2 + $0x758] sm:$0xff] %vm529_vm0, %v11588_v1  ;;  %767 = vst.msk [vmem:[#allocation2 + $0x760] sm:$0xff] %vm529_vm0, %v11588_v1 }
  0x78   : > { %768 = vst.msk [vmem:[#allocation2 + $0x768] sm:$0xff] %vm529_vm0, %v11588_v1  ;;  %769 = vst.msk [vmem:[#allocation2 + $0x770] sm:$0xff] %vm529_vm0, %v11588_v1 }
  0x79   : > { %771 = vst.msk [vmem:[#allocation2 + $0x780] sm:$0xff] %vm529_vm0, %v11588_v1  ;;  %772 = vst.msk [vmem:[#allocation2 + $0x788] sm:$0xff] %vm529_vm0, %v11588_v1 }
  0x7a   : > { %773 = vst.msk [vmem:[#allocation2 + $0x790] sm:$0xff] %vm529_vm0, %v11588_v1  ;;  %774 = vst.msk [vmem:[#allocation2 + $0x798] sm:$0xff] %vm529_vm0, %v11588_v1 }
  0x7b   : > { %775 = vst.msk [vmem:[#allocation2 + $0x7a0] sm:$0xff] %vm529_vm0, %v11588_v1  ;;  %777 = vst.msk [vmem:[#allocation2 + $0x7b0] sm:$0xff] %vm529_vm0, %v11588_v1 }
  0x7c   : > { %778 = vst.msk [vmem:[#allocation2 + $0x7b8] sm:$0xff] %vm529_vm0, %v11588_v1  ;;  %779 = vst.msk [vmem:[#allocation2 + $0x7c0] sm:$0xff] %vm529_vm0, %v11588_v1 }
  0x7d   : > { %780 = vst.msk [vmem:[#allocation2 + $0x7c8] sm:$0xff] %vm529_vm0, %v11588_v1  ;;  %781 = vst.msk [vmem:[#allocation2 + $0x7d0] sm:$0xff] %vm529_vm0, %v11588_v1 }
  0x7e   : > { %783 = vst.msk [vmem:[#allocation2 + $0x7e0] sm:$0xff] %vm529_vm0, %v11588_v1  ;;  %784 = vst.msk [vmem:[#allocation2 + $0x7e8] sm:$0xff] %vm529_vm0, %v11588_v1 }
  0x7f   : > { %785 = vst.msk [vmem:[#allocation2 + $0x7f0] sm:$0xff] %vm529_vm0, %v11588_v1  ;;  %786 = vst.msk [vmem:[#allocation2 + $0x7f8] sm:$0xff] %vm529_vm0, %v11588_v1 }
  0x80   : > { %787 = vst.msk [vmem:[#allocation2 + $0x800] sm:$0xff] %vm529_vm0, %v11588_v1  ;;  %789 = vst.msk [vmem:[#allocation2 + $0x810] sm:$0xff] %vm529_vm0, %v11588_v1 }
  0x81   : > { %790 = vst.msk [vmem:[#allocation2 + $0x818] sm:$0xff] %vm529_vm0, %v11588_v1  ;;  %791 = vst.msk [vmem:[#allocation2 + $0x820] sm:$0xff] %vm529_vm0, %v11588_v1 }
  0x82   : > { %792 = vst.msk [vmem:[#allocation2 + $0x828] sm:$0xff] %vm529_vm0, %v11588_v1  ;;  %793 = vst.msk [vmem:[#allocation2 + $0x830] sm:$0xff] %vm529_vm0, %v11588_v1 }
  0x83   : > { %795 = vst.msk [vmem:[#allocation3] sm:$0xff] %vm529_vm0, %v11588_v1  ;;  %796 = vst.msk [vmem:[#allocation3 + $0x8] sm:$0xff] %vm529_vm0, %v11588_v1 }
  0x84   : > { %797 = vst.msk [vmem:[#allocation3 + $0x10] sm:$0xff] %vm529_vm0, %v11588_v1  ;;  %798 = vst.msk [vmem:[#allocation3 + $0x18] sm:$0xff] %vm529_vm0, %v11588_v1 }
  0x85   : > { %799 = vst.msk [vmem:[#allocation3 + $0x20] sm:$0xff] %vm529_vm0, %v11588_v1  ;;  %800 = vst.msk [vmem:[#allocation3 + $0x28] sm:$0xff] %vm529_vm0, %v11588_v1 }
  0x86   : > { %801 = vst.msk [vmem:[#allocation3 + $0x30] sm:$0xff] %vm529_vm0, %v11588_v1  ;;  %802 = vst.msk [vmem:[#allocation3 + $0x38] sm:$0xff] %vm529_vm0, %v11588_v1 }
  0x87   : > { %803 = vst.msk [vmem:[#allocation3 + $0x40] sm:$0xff] %vm529_vm0, %v11588_v1  ;;  %804 = vst.msk [vmem:[#allocation3 + $0x48] sm:$0xff] %vm529_vm0, %v11588_v1 }
  0x88   : > { %805 = vst.msk [vmem:[#allocation3 + $0x50] sm:$0xff] %vm529_vm0, %v11588_v1  ;;  %806 = vst.msk [vmem:[#allocation3 + $0x58] sm:$0xff] %vm529_vm0, %v11588_v1 }
  0x89   : > { %807 = vst.msk [vmem:[#allocation3 + $0x60] sm:$0xff] %vm529_vm0, %v11588_v1  ;;  %808 = vst.msk [vmem:[#allocation3 + $0x68] sm:$0xff] %vm529_vm0, %v11588_v1 }
  0x8a   : > { %809 = vst.msk [vmem:[#allocation3 + $0x70] sm:$0xff] %vm529_vm0, %v11588_v1  ;;  %810 = vst.msk [vmem:[#allocation3 + $0x78] sm:$0xff] %vm529_vm0, %v11588_v1 }
  0x8b   : > { %811 = vst.msk [vmem:[#allocation3 + $0x80] sm:$0xff] %vm529_vm0, %v11588_v1  ;;  %812 = vst.msk [vmem:[#allocation3 + $0x88] sm:$0xff] %vm529_vm0, %v11588_v1 }
  0x8c   : > { %813 = vst.msk [vmem:[#allocation3 + $0x90] sm:$0xff] %vm529_vm0, %v11588_v1  ;;  %814 = vst.msk [vmem:[#allocation3 + $0x98] sm:$0xff] %vm529_vm0, %v11588_v1 }
  0x8d   : > { %815 = vst.msk [vmem:[#allocation3 + $0xa0] sm:$0xff] %vm529_vm0, %v11588_v1  ;;  %816 = vst.msk [vmem:[#allocation3 + $0xa8] sm:$0xff] %vm529_vm0, %v11588_v1 }
  0x8e   : > { %817 = vst.msk [vmem:[#allocation3 + $0xb0] sm:$0xff] %vm529_vm0, %v11588_v1  ;;  %818 = vst.msk [vmem:[#allocation3 + $0xb8] sm:$0xff] %vm529_vm0, %v11588_v1 }
  0x8f   : > { %819 = vst.msk [vmem:[#allocation3 + $0xc0] sm:$0xff] %vm529_vm0, %v11588_v1  ;;  %820 = vst.msk [vmem:[#allocation3 + $0xc8] sm:$0xff] %vm529_vm0, %v11588_v1 }
  0x90   : > { %821 = vst.msk [vmem:[#allocation3 + $0xd0] sm:$0xff] %vm529_vm0, %v11588_v1  ;;  %822 = vst.msk [vmem:[#allocation3 + $0xd8] sm:$0xff] %vm529_vm0, %v11588_v1 }
  0x91   : > { %823 = vst.msk [vmem:[#allocation3 + $0xe0] sm:$0xff] %vm529_vm0, %v11588_v1  ;;  %824 = vst.msk [vmem:[#allocation3 + $0xe8] sm:$0xff] %vm529_vm0, %v11588_v1 }
  0x92   : > { %825 = vst.msk [vmem:[#allocation3 + $0xf0] sm:$0xff] %vm529_vm0, %v11588_v1  ;;  %826 = vst.msk [vmem:[#allocation3 + $0xf8] sm:$0xff] %vm529_vm0, %v11588_v1 }
  0x93   : > { %827 = vst.msk [vmem:[#allocation3 + $0x100] sm:$0xff] %vm529_vm0, %v11588_v1  ;;  %828 = vst.msk [vmem:[#allocation3 + $0x108] sm:$0xff] %vm529_vm0, %v11588_v1 }
  0x94   : > { %829 = vst.msk [vmem:[#allocation3 + $0x110] sm:$0xff] %vm529_vm0, %v11588_v1  ;;  %830 = vst.msk [vmem:[#allocation3 + $0x118] sm:$0xff] %vm529_vm0, %v11588_v1 }
  0x95   : > { %831 = vst.msk [vmem:[#allocation3 + $0x120] sm:$0xff] %vm529_vm0, %v11588_v1  ;;  %832 = vst.msk [vmem:[#allocation3 + $0x128] sm:$0xff] %vm529_vm0, %v11588_v1 }
  0x96   : > { %833 = vst.msk [vmem:[#allocation3 + $0x130] sm:$0xff] %vm529_vm0, %v11588_v1  ;;  %834 = vst.msk [vmem:[#allocation3 + $0x138] sm:$0xff] %vm529_vm0, %v11588_v1 }
  0x97   : > { %835 = vst.msk [vmem:[#allocation3 + $0x140] sm:$0xff] %vm529_vm0, %v11588_v1  ;;  %836 = vst.msk [vmem:[#allocation3 + $0x148] sm:$0xff] %vm529_vm0, %v11588_v1 }
  0x98   : > { %837 = vst.msk [vmem:[#allocation3 + $0x150] sm:$0xff] %vm529_vm0, %v11588_v1  ;;  %838 = vst.msk [vmem:[#allocation3 + $0x158] sm:$0xff] %vm529_vm0, %v11588_v1 }
  0x99   : > { %839 = vst.msk [vmem:[#allocation3 + $0x160] sm:$0xff] %vm529_vm0, %v11588_v1  ;;  %840 = vst.msk [vmem:[#allocation3 + $0x168] sm:$0xff] %vm529_vm0, %v11588_v1 }
  0x9a   : > { %841 = vst.msk [vmem:[#allocation3 + $0x170] sm:$0xff] %vm529_vm0, %v11588_v1  ;;  %842 = vst.msk [vmem:[#allocation3 + $0x178] sm:$0xff] %vm529_vm0, %v11588_v1 }
  0x9b   : > { %843 = vst.msk [vmem:[#allocation3 + $0x180] sm:$0xff] %vm529_vm0, %v11588_v1  ;;  %844 = vst.msk [vmem:[#allocation3 + $0x188] sm:$0xff] %vm529_vm0, %v11588_v1 }
  0x9c   : > { %845 = vst.msk [vmem:[#allocation3 + $0x190] sm:$0xff] %vm529_vm0, %v11588_v1  ;;  %846 = vst.msk [vmem:[#allocation3 + $0x198] sm:$0xff] %vm529_vm0, %v11588_v1 }
  0x9d   : > { %847 = vst.msk [vmem:[#allocation3 + $0x1a0] sm:$0xff] %vm529_vm0, %v11588_v1  ;;  %848 = vst.msk [vmem:[#allocation3 + $0x1a8] sm:$0xff] %vm529_vm0, %v11588_v1 }
  0x9e   : > { %849 = vst.msk [vmem:[#allocation3 + $0x1b0] sm:$0xff] %vm529_vm0, %v11588_v1  ;;  %850 = vst.msk [vmem:[#allocation3 + $0x1b8] sm:$0xff] %vm529_vm0, %v11588_v1 }
  0x9f   : > { %851 = vst.msk [vmem:[#allocation3 + $0x1c0] sm:$0xff] %vm529_vm0, %v11588_v1  ;;  %852 = vst.msk [vmem:[#allocation3 + $0x1c8] sm:$0xff] %vm529_vm0, %v11588_v1 }
  0xa0   : > { %853 = vst.msk [vmem:[#allocation3 + $0x1d0] sm:$0xff] %vm529_vm0, %v11588_v1  ;;  %854 = vst.msk [vmem:[#allocation3 + $0x1d8] sm:$0xff] %vm529_vm0, %v11588_v1 }
  0xa1   : > { %855 = vst.msk [vmem:[#allocation3 + $0x1e0] sm:$0xff] %vm529_vm0, %v11588_v1  ;;  %856 = vst.msk [vmem:[#allocation3 + $0x1e8] sm:$0xff] %vm529_vm0, %v11588_v1 }
  0xa2   : > { %857 = vst.msk [vmem:[#allocation3 + $0x1f0] sm:$0xff] %vm529_vm0, %v11588_v1  ;;  %858 = vst.msk [vmem:[#allocation3 + $0x1f8] sm:$0xff] %vm529_vm0, %v11588_v1 }
  0xa3   : > { %859 = vst.msk [vmem:[#allocation3 + $0x200] sm:$0xff] %vm529_vm0, %v11588_v1  ;;  %860 = vst.msk [vmem:[#allocation3 + $0x208] sm:$0xff] %vm529_vm0, %v11588_v1 }
  0xa4   : > { %861 = vst.msk [vmem:[#allocation3 + $0x210] sm:$0xff] %vm529_vm0, %v11588_v1  ;;  %862 = vst.msk [vmem:[#allocation3 + $0x218] sm:$0xff] %vm529_vm0, %v11588_v1 }
  0xa5   : > { %863 = vst.msk [vmem:[#allocation3 + $0x220] sm:$0xff] %vm529_vm0, %v11588_v1  ;;  %864 = vst.msk [vmem:[#allocation3 + $0x228] sm:$0xff] %vm529_vm0, %v11588_v1 }
  0xa6   : > { %865 = vst.msk [vmem:[#allocation3 + $0x230] sm:$0xff] %vm529_vm0, %v11588_v1  ;;  %866 = vst.msk [vmem:[#allocation3 + $0x238] sm:$0xff] %vm529_vm0, %v11588_v1 }
  0xa7   : > { %867 = vst.msk [vmem:[#allocation4] sm:$0xff] %vm529_vm0, %v11588_v1  ;;  %870 = vst.msk [vmem:[#allocation4 + $0x10] sm:$0xff] %vm529_vm0, %v11588_v1 }
  0xa8   : > { %872 = vst.msk [vmem:[#allocation4 + $0x20] sm:$0xff] %vm529_vm0, %v11588_v1  ;;  %874 = vst.msk [vmem:[#allocation4 + $0x30] sm:$0xff] %vm529_vm0, %v11588_v1 }
  0xa9   : > { %876 = vst.msk [vmem:[#allocation4 + $0x40] sm:$0xff] %vm529_vm0, %v11588_v1  ;;  %878 = vst.msk [vmem:[#allocation4 + $0x50] sm:$0xff] %vm529_vm0, %v11588_v1 }
  0xaa   : > { %880 = vst.msk [vmem:[#allocation4 + $0x60] sm:$0xff] %vm529_vm0, %v11588_v1  ;;  %882 = vst.msk [vmem:[#allocation4 + $0x70] sm:$0xff] %vm529_vm0, %v11588_v1 }
  0xab   : > { %884 = vst.msk [vmem:[#allocation4 + $0x80] sm:$0xff] %vm529_vm0, %v11588_v1  ;;  %886 = vst.msk [vmem:[#allocation4 + $0x90] sm:$0xff] %vm529_vm0, %v11588_v1 }
  0xac   : > { %888 = vst.msk [vmem:[#allocation4 + $0xa0] sm:$0xff] %vm529_vm0, %v11588_v1  ;;  %890 = vst.msk [vmem:[#allocation4 + $0xb0] sm:$0xff] %vm529_vm0, %v11588_v1 }
  0xad   : > { %892 = vst.msk [vmem:[#allocation4 + $0xc0] sm:$0xff] %vm529_vm0, %v11588_v1  ;;  %894 = vst.msk [vmem:[#allocation4 + $0xd0] sm:$0xff] %vm529_vm0, %v11588_v1 }
  0xae   : > { %896 = vst.msk [vmem:[#allocation5] sm:$0xff] %vm529_vm0, %v11588_v1  ;;  %897 = vst.msk [vmem:[#allocation5 + $0x8] sm:$0xff] %vm529_vm0, %v11588_v1 }
  0xaf   : > { %898 = vst.msk [vmem:[#allocation5 + $0x10] sm:$0xff] %vm529_vm0, %v11588_v1  ;;  %899 = vst.msk [vmem:[#allocation5 + $0x18] sm:$0xff] %vm529_vm0, %v11588_v1 }
  0xb0   : > { %900 = vst.msk [vmem:[#allocation5 + $0x20] sm:$0xff] %vm529_vm0, %v11588_v1  ;;  %901 = vst.msk [vmem:[#allocation5 + $0x28] sm:$0xff] %vm529_vm0, %v11588_v1 }
  0xb1   : > { %902 = vst.msk [vmem:[#allocation5 + $0x30] sm:$0xff] %vm529_vm0, %v11588_v1  ;;  %903 = vst.msk [vmem:[#allocation5 + $0x38] sm:$0xff] %vm529_vm0, %v11588_v1 }
  0xb2   : > { %536 = vst.msk [vmem:[#allocation2 + $0x28] sm:$0xf] %vm535_vm1, %v11588_v1  ;;  %542 = vst.msk [vmem:[#allocation2 + $0x58] sm:$0xf] %vm535_vm1, %v11588_v1 }
  0xb3   : > { %548 = vst.msk [vmem:[#allocation2 + $0x88] sm:$0xf] %vm535_vm1, %v11588_v1  ;;  %554 = vst.msk [vmem:[#allocation2 + $0xb8] sm:$0xf] %vm535_vm1, %v11588_v1 }
  0xb4   : > { %560 = vst.msk [vmem:[#allocation2 + $0xe8] sm:$0xf] %vm535_vm1, %v11588_v1  ;;  %566 = vst.msk [vmem:[#allocation2 + $0x118] sm:$0xf] %vm535_vm1, %v11588_v1 }
  0xb5   : > { %572 = vst.msk [vmem:[#allocation2 + $0x148] sm:$0xf] %vm535_vm1, %v11588_v1  ;;  %578 = vst.msk [vmem:[#allocation2 + $0x178] sm:$0xf] %vm535_vm1, %v11588_v1 }
  0xb6   : > { %584 = vst.msk [vmem:[#allocation2 + $0x1a8] sm:$0xf] %vm535_vm1, %v11588_v1  ;;  %590 = vst.msk [vmem:[#allocation2 + $0x1d8] sm:$0xf] %vm535_vm1, %v11588_v1 }
  0xb7   : > { %596 = vst.msk [vmem:[#allocation2 + $0x208] sm:$0xf] %vm535_vm1, %v11588_v1  ;;  %602 = vst.msk [vmem:[#allocation2 + $0x238] sm:$0xf] %vm535_vm1, %v11588_v1 }
  0xb8   : > { %608 = vst.msk [vmem:[#allocation2 + $0x268] sm:$0xf] %vm535_vm1, %v11588_v1  ;;  %614 = vst.msk [vmem:[#allocation2 + $0x298] sm:$0xf] %vm535_vm1, %v11588_v1 }
  0xb9   : > { %620 = vst.msk [vmem:[#allocation2 + $0x2c8] sm:$0xf] %vm535_vm1, %v11588_v1  ;;  %626 = vst.msk [vmem:[#allocation2 + $0x2f8] sm:$0xf] %vm535_vm1, %v11588_v1 }
  0xba   : > { %632 = vst.msk [vmem:[#allocation2 + $0x328] sm:$0xf] %vm535_vm1, %v11588_v1  ;;  %638 = vst.msk [vmem:[#allocation2 + $0x358] sm:$0xf] %vm535_vm1, %v11588_v1 }
  0xbb   : > { %644 = vst.msk [vmem:[#allocation2 + $0x388] sm:$0xf] %vm535_vm1, %v11588_v1  ;;  %650 = vst.msk [vmem:[#allocation2 + $0x3b8] sm:$0xf] %vm535_vm1, %v11588_v1 }
  0xbc   : > { %656 = vst.msk [vmem:[#allocation2 + $0x3e8] sm:$0xf] %vm535_vm1, %v11588_v1  ;;  %662 = vst.msk [vmem:[#allocation2 + $0x418] sm:$0xf] %vm535_vm1, %v11588_v1 }
  0xbd   : > { %668 = vst.msk [vmem:[#allocation2 + $0x448] sm:$0xf] %vm535_vm1, %v11588_v1  ;;  %674 = vst.msk [vmem:[#allocation2 + $0x478] sm:$0xf] %vm535_vm1, %v11588_v1 }
  0xbe   : > { %680 = vst.msk [vmem:[#allocation2 + $0x4a8] sm:$0xf] %vm535_vm1, %v11588_v1  ;;  %686 = vst.msk [vmem:[#allocation2 + $0x4d8] sm:$0xf] %vm535_vm1, %v11588_v1 }
  0xbf   : > { %692 = vst.msk [vmem:[#allocation2 + $0x508] sm:$0xf] %vm535_vm1, %v11588_v1  ;;  %698 = vst.msk [vmem:[#allocation2 + $0x538] sm:$0xf] %vm535_vm1, %v11588_v1 }
  0xc0   : > { %704 = vst.msk [vmem:[#allocation2 + $0x568] sm:$0xf] %vm535_vm1, %v11588_v1  ;;  %710 = vst.msk [vmem:[#allocation2 + $0x598] sm:$0xf] %vm535_vm1, %v11588_v1 }
  0xc1   : > { %716 = vst.msk [vmem:[#allocation2 + $0x5c8] sm:$0xf] %vm535_vm1, %v11588_v1  ;;  %722 = vst.msk [vmem:[#allocation2 + $0x5f8] sm:$0xf] %vm535_vm1, %v11588_v1 }
  0xc2   : > { %728 = vst.msk [vmem:[#allocation2 + $0x628] sm:$0xf] %vm535_vm1, %v11588_v1  ;;  %734 = vst.msk [vmem:[#allocation2 + $0x658] sm:$0xf] %vm535_vm1, %v11588_v1 }
  0xc3   : > { %740 = vst.msk [vmem:[#allocation2 + $0x688] sm:$0xf] %vm535_vm1, %v11588_v1  ;;  %746 = vst.msk [vmem:[#allocation2 + $0x6b8] sm:$0xf] %vm535_vm1, %v11588_v1 }
  0xc4   : > { %752 = vst.msk [vmem:[#allocation2 + $0x6e8] sm:$0xf] %vm535_vm1, %v11588_v1  ;;  %758 = vst.msk [vmem:[#allocation2 + $0x718] sm:$0xf] %vm535_vm1, %v11588_v1 }
  0xc5   : > { %764 = vst.msk [vmem:[#allocation2 + $0x748] sm:$0xf] %vm535_vm1, %v11588_v1  ;;  %770 = vst.msk [vmem:[#allocation2 + $0x778] sm:$0xf] %vm535_vm1, %v11588_v1 }
  0xc6   : > { %776 = vst.msk [vmem:[#allocation2 + $0x7a8] sm:$0xf] %vm535_vm1, %v11588_v1  ;;  %782 = vst.msk [vmem:[#allocation2 + $0x7d8] sm:$0xf] %vm535_vm1, %v11588_v1 }
  0xc7   : > { %788 = vst.msk [vmem:[#allocation2 + $0x808] sm:$0xf] %vm535_vm1, %v11588_v1  ;;  %794 = vst.msk [vmem:[#allocation2 + $0x838] sm:$0xf] %vm535_vm1, %v11588_v1 }
  0xc8   : > { %869 = vst.msk [vmem:[#allocation4 + $0x8] sm:$0x3f] %vm868_vm2, %v11588_v1  ;;  %871 = vst.msk [vmem:[#allocation4 + $0x18] sm:$0x3f] %vm868_vm2, %v11588_v1 }
  0xc9   : > { %873 = vst.msk [vmem:[#allocation4 + $0x28] sm:$0x3f] %vm868_vm2, %v11588_v1  ;;  %875 = vst.msk [vmem:[#allocation4 + $0x38] sm:$0x3f] %vm868_vm2, %v11588_v1 }
  0xca   : > { %877 = vst.msk [vmem:[#allocation4 + $0x48] sm:$0x3f] %vm868_vm2, %v11588_v1  ;;  %879 = vst.msk [vmem:[#allocation4 + $0x58] sm:$0x3f] %vm868_vm2, %v11588_v1 }
  0xcb   : > { %881 = vst.msk [vmem:[#allocation4 + $0x68] sm:$0x3f] %vm868_vm2, %v11588_v1  ;;  %883 = vst.msk [vmem:[#allocation4 + $0x78] sm:$0x3f] %vm868_vm2, %v11588_v1 }
  0xcc   : > { %885 = vst.msk [vmem:[#allocation4 + $0x88] sm:$0x3f] %vm868_vm2, %v11588_v1  ;;  %887 = vst.msk [vmem:[#allocation4 + $0x98] sm:$0x3f] %vm868_vm2, %v11588_v1 }
  0xcd   : > { %889 = vst.msk [vmem:[#allocation4 + $0xa8] sm:$0x3f] %vm868_vm2, %v11588_v1  ;;  %891 = vst.msk [vmem:[#allocation4 + $0xb8] sm:$0x3f] %vm868_vm2, %v11588_v1 }
  0xce   : > { %893 = vst.msk [vmem:[#allocation4 + $0xc8] sm:$0x3f] %vm868_vm2, %v11588_v1  ;;  %895 = vst.msk [vmem:[#allocation4 + $0xd8] sm:$0x3f] %vm868_vm2, %v11588_v1 }
  0xcf LB: >> { %v8868_v4 = vcombine.low %v11741_v0, %v12374_v2  ;;  %v11589_v5 = vmov 0.0   ;;  %vm11590_vm3 = vmmov 0   ;;  %s9195_s1 = smul.u32 24, %s11578_s17  ;;  %vm949_vm4 = vcmask 130048   ;;  %s11578_s17 = sphi %s12516_s17, %s912_s17  }
  0xd0   : >> { %11316 = vmatprep.subr.bf16.mxu1 %v11589_v5  ;;  %9704 = vmatprep.mubr.msk.bf16.mxu1 %vm11590_vm3, %v11589_v5  ;;  %s8784_s23 = smul.u32 48, %s11578_s17  ;;  %vm1030_vm5 = vcmask 256000   ;;  %s912_s17 = sadd.s32 1, %s11578_s17  }
  0xd1   : >> { %11317 = vmatpush3.bf16.msra.mxu1 %v8868_v4  ;;  %9698 = vmatprep.subr.bf16.mxu0 %v11589_v5  ;;  %s915_s2 = scalar_lea.vmem %s12510_s30, %s9195_s1  ;;  %p909_p11 = scmp.ge.s32.totalorder %s912_s17, 43  }
  0xd2   : >> { %9699 = vmatpush3.bf16.msra.mxu0 %v8868_v4  ;;  %9700 = vmatprep.mubr.msk.bf16.mxu0 %vm11590_vm3, %v11589_v5  ;;  %v11497_v6 = vld [vmem:[%s915_s2 + $0x8] sm:$0xff]   ;;  %v11498_v7 = vld [vmem:[%s915_s2] sm:$0xff]   ;;  %v11499_v8 = vld [vmem:[%s915_s2 + $0x10] sm:$0x3f]   ;;  %s8785_s18 = scalar_lea.vmem [#allocation2], %s8784_s23  ;;  %v1032_v33 = vlaneseq (%p909_p11)  ;;  %s12643_s19 = smov (%p909_p11), 0  }
  0xd3   : > { %v12543_v34 = vld [vmem:[%s13853_s3] sm:$0xff] (%p909_p11)  ;;  %v12548_v35 = vld [vmem:[%s13853_s3 + $0x8] sm:$0xff] (%p909_p11)  ;;  %v12553_v36 = vld [vmem:[%s13853_s3 + $0x10] sm:$0xff] (%p909_p11) }
  0xd4   : >> { %9705 = vmatmul.mubr.msk.bf16.vlgmr.msra.gmra.mrb[0].mxu1 %vm949_vm4, %v11497_v6  ;;  %v12558_v37 = vld [vmem:[%s13853_s3 + $0x18] sm:$0xff] (%p909_p11)  ;;  %v12563_v38 = vld [vmem:[%s13853_s3 + $0x20] sm:$0xff] (%p909_p11)  ;;  %v12568_v39 = vld [vmem:[%s13853_s3 + $0x28] sm:$0xff] (%p909_p11)  ;;  %v1033_v40 = vshrl.u32 (%p909_p11), %v1032_v33, 7  ;;  %v1037_v41 = vand.u32 (%p909_p11), 127, %v1032_v33 }
  0xd5   : >> { %9701 = vmatmul.mubr.msk.bf16.vlgmr.msra.gmra.mrb[0].mxu0 %vm949_vm4, %v11498_v7  ;;  %9708 = vmatprep.mubr.msk.bf16.mxu1 %vm11590_vm3, %v11589_v5  ;;  %v12573_v42 = vld [vmem:[%s13853_s3 + $0x30] sm:$0xff] (%p909_p11)  ;;  %v12578_v43 = vld [vmem:[%s13853_s3 + $0x38] sm:$0xff] (%p909_p11)  ;;  %v12583_v44 = vld [vmem:[%s13853_s3 + $0x40] sm:$0xff] (%p909_p11) }
  0xd6   : > { %v12588_v45 = vld [vmem:[%s13853_s3 + $0x48] sm:$0xff] (%p909_p11)  ;;  %v12593_v46 = vld [vmem:[%s13853_s3 + $0x50] sm:$0xff] (%p909_p11)  ;;  %v12598_v47 = vld [vmem:[%s13853_s3 + $0x58] sm:$0xff] (%p909_p11)  ;;  %v1034_v48 = vadd.s32 (%p909_p11), 8, %v1033_v40  ;;  %v1035_v49 = vadd.s32 (%p909_p11), 16, %v1033_v40  ;;  %v1038_v50 = vmul.u32 (%p909_p11), 2, %v1033_v40 }
  0xd7   : > { %v12603_v51 = vld [vmem:[%s13853_s3 + $0x60] sm:$0xff] (%p909_p11)  ;;  %v12608_v52 = vld [vmem:[%s13853_s3 + $0x68] sm:$0xff] (%p909_p11)  ;;  %v12613_v53 = vld [vmem:[%s13853_s3 + $0x70] sm:$0xff] (%p909_p11) }
  0xd8   : > { %v12618_v54 = vld [vmem:[%s13853_s3 + $0x78] sm:$0xff] (%p909_p11)  ;;  %v12623_v55 = vld [vmem:[%s13854_s4] ss:$0 sm:$0xff] (%p909_p11)  ;;  %v1039_v56 = vmul.u32 (%p909_p11), 2, %v1034_v48  ;;  %v1040_v57 = vmul.u32 (%p909_p11), 2, %v1035_v49  ;;  %vm1041_vm6 = vcmp.eq.s32.totalorder (%p909_p11), %v1037_v41, %v1038_v50  ;;  %v1050_v58 = vadd.s32 (%p909_p11), 1, %v1038_v50 }
  0xd9   : > { %v12626_v59 = vsel (%p909_p11), %vm1041_vm6, 1.0, %v11588_v1 }
  0xda   : > { %vm1042_vm7 = vcmp.eq.s32.totalorder (%p909_p11), %v1037_v41, %v1039_v56  ;;  %vm1043_vm8 = vcmp.eq.s32.totalorder (%p909_p11), %v1037_v41, %v1040_v57  ;;  %v1051_v60 = vadd.s32 (%p909_p11), 1, %v1039_v56  ;;  %v1052_v61 = vadd.s32 (%p909_p11), 1, %v1040_v57 }
  0xdb   : > { %v12629_v62 = vsel (%p909_p11), %vm1042_vm7, 1.0, %v11588_v1  ;;  %v12632_v63 = vsel (%p909_p11), %vm1043_vm8, 1.0, %v11588_v1  ;;  %vm1053_vm9 = vcmp.eq.s32.totalorder (%p909_p11), %v1037_v41, %v1050_v58 }
  0xdc   : >> { %9709 = vmatmul.mubr.msk.bf16.gmra.mrb[4].mxu1 %vm949_vm4, %v11499_v8  ;;  %vm1054_vm10 = vcmp.eq.s32.totalorder (%p909_p11), %v1037_v41, %v1051_v60  ;;  %vm1055_vm11 = vcmp.eq.s32.totalorder (%p909_p11), %v1037_v41, %v1052_v61  ;;  %v12635_v0 = vsel (%p909_p11), %vm1053_vm9, 1.0, %v11588_v1 }
  0xdd   : > { %v12638_v2 = vsel (%p909_p11), %vm1054_vm10, 1.0, %v11588_v1 }
 0x1a7   : >> { %v1001_v9 = vpop.f32.mrb[0].mxu1 }
 0x1a8   : >> { %v1002_v10 = vadd.f32 %v12379_v3, %v1001_v9  ;;  %v9706_v11 = vpop.f32.mrb[1].mxu1  ;;  %v993_v12 = vpop.f32.mrb[0].mxu0 }
 0x1a9   : >> { %v1004_v13 = vpop.f32.mrb[2].mxu1  ;;  %v994_v14 = vadd.f32 %v12379_v3, %v993_v12  ;;  %v9702_v15 = vpop.f32.mrb[1].mxu0 }
 0x1aa   : >> { %v1018_v16 = vmax.f32 %v1002_v10, 0.0  ;;  %v1005_v17 = vadd.f32 %v12379_v3, %v1004_v13  ;;  %v9707_v18 = vpop.f32.mrb[3].mxu1  ;;  %v996_v19 = vpop.f32.mrb[2].mxu0 }
 0x1ab   : >> { %v1016_v20 = vmax.f32 %v994_v14, 0.0  ;;  %v997_v21 = vadd.f32 %v12379_v3, %v996_v19  ;;  %v9703_v22 = vpop.f32.mrb[3].mxu0 }
 0x1ac   : >> { %8874 = vst.msk [vmem:[%s8785_s18 + $0x41] sm:$0xff] %vm529_vm0, %v1018_v16  ;;  %v1019_v23 = vmax.f32 %v1005_v17, 0.0 }
 0x1ad   : >> { %8872 = vst.msk [vmem:[%s8785_s18 + $0x31] sm:$0xff] %vm529_vm0, %v1016_v20  ;;  %v1017_v24 = vmax.f32 %v997_v21, 0.0 }
 0x1ae   : >> { %8875 = vst.msk [vmem:[%s8785_s18 + $0x49] sm:$0xff] %vm529_vm0, %v1019_v23 }
 0x1af   : >> { %8873 = vst.msk [vmem:[%s8785_s18 + $0x39] sm:$0xff] %vm529_vm0, %v1017_v24  ;;  %v1009_v25 = vpop.f32.mrb[4].mxu1 }
 0x1b0   : >> { %v1010_v26 = vadd.f32 %v12379_v3, %v1009_v25  ;;  %v9710_v27 = vpop.f32.mrb[5].mxu1  ;;  %911 = sbr.rel (!%p909_p11) target bundleno = 207 (0xcf), region = 206 }
 0x1b1   : >> { %v1012_v28 = vpop.f32.mrb[6].mxu1 }
 0x1b2   : >> { %v1020_v29 = vmax.f32 %v1010_v26, 0.0  ;;  %v1013_v30 = vadd.f32 %v12379_v3, %v1012_v28  ;;  %v9711_v31 = vpop.f32.mrb[7].mxu1  ;;  %v12641_v3 = vsel (%p909_p11), %vm1055_vm11, 1.0, %v11588_v1 }
 0x1b4   : >> { %8876 = vst.msk [vmem:[%s8785_s18 + $0x51] sm:$0xff] %vm529_vm0, %v1020_v29  ;;  %v1021_v32 = vmax.f32 %v1013_v30, 0.0 }
 0x1b6   : >> { %8877 = vst.msk [vmem:[%s8785_s18 + $0x59] sm:$0x7] %vm1030_vm5, %v1021_v32 }
 0x1b7 LB: >> { %v10739_v4 = vpack.c.bf16 %v12588_v45, %v12583_v44  ;;  %v10755_v5 = vpack.c.bf16 %v12608_v52, %v12603_v51  ;;  %v10743_v6 = vpack.c.bf16 %v12598_v47, %v12593_v46  ;;  %v10759_v7 = vpack.c.bf16 %v12618_v54, %v12613_v53  ;;  %s8897_s2 = smul.u32 96, %s11582_s19  ;;  %s11582_s19 = sphi %s12643_s19, %s1087_s19  }
 0x1b8   : >> { %v10747_v8 = vpack.c.bf16 %v12548_v35, %v12543_v34  ;;  %v10763_v9 = vpack.c.bf16 %v12568_v39, %v12563_v38  ;;  %v10751_v13 = vpack.c.bf16 %v12558_v37, %v12553_v36  ;;  %v10767_v14 = vpack.c.bf16 %v12578_v43, %v12573_v42  ;;  %s8793_s18 = smul.u32 24, %s11582_s19  ;;  %s1087_s19 = sadd.s32 1, %s11582_s19  }
 0x1b9   : >> { %10740 = vmatprep.subr.bf16.mxu0 %v10739_v4  ;;  %10756 = vmatprep.subr.bf16.mxu1 %v10755_v5  ;;  %s12661_s23 = scalar_lea.vmem [#allocation2], %s8897_s2  ;;  %v11591_v24 = vmov 0.0|0.0   ;;  %vm11592_vm12 = vmmov 0   ;;  %v11593_v25 = vmov 0.0   ;;  %vm1532_vm13 = vcmask 1043456   ;;  %p1084_p12 = scmp.ge.s32.totalorder %s1087_s19, 22  }
 0x1ba   : >> { %10742 = vmatpush3.bf16.msra.mxu0 %v10739_v4  ;;  %10758 = vmatpush3.bf16.msra.mxu1 %v10755_v5  ;;  %vm11594_vm14 = vmmov 1   ;;  %vm1522_vm3 = vcmask 359424   ;;  %s8794_s30 = scalar_lea.vmem [#allocation3], %s8793_s18  ;;  %v12748_v34 = vld [vmem:[%s13855_s5 + $0x20] sm:$0xff] (%p1084_p12)  ;;  %v12753_v35 = vld [vmem:[%s13855_s5 + $0x28] sm:$0xff] (%p1084_p12)  ;;  %v12758_v36 = vld [vmem:[%s13855_s5 + $0x30] sm:$0xff] (%p1084_p12) }
 0x1bb   : >> { %10744 = vmatprep.subr.bf16.mxu0 %v10743_v6  ;;  %10760 = vmatprep.subr.bf16.mxu1 %v10759_v7  ;;  %vm10779_vm15 = vmpackc.low %vm1532_vm13, %vm11594_vm14  ;;  %v12763_v37 = vld [vmem:[%s13855_s5 + $0x38] sm:$0xff] (%p1084_p12)  ;;  %v12768_v38 = vld [vmem:[%s13855_s5 + $0x40] sm:$0xff] (%p1084_p12)  ;;  %s12810_s1 = smov (%p1084_p12), 0  }
 0x1bc   : > { %v12773_v39 = vld [vmem:[%s13855_s5 + $0x48] sm:$0xff] (%p1084_p12)  ;;  %v12778_v42 = vld [vmem:[%s13855_s5 + $0x50] sm:$0xff] (%p1084_p12)  ;;  %v12783_v43 = vld [vmem:[%s13855_s5 + $0x58] sm:$0xff] (%p1084_p12) }
 0x1bd   : >> { %v8900_v10 = vld [vmem:[%s12661_s23 + $0x30] sm:$0xff]  ;;  %v8901_v11 = vld [vmem:[%s12661_s23 + $0x38] sm:$0xff]  ;;  %v8902_v12 = vld [vmem:[%s12661_s23 + $0x40] sm:$0xff] }
 0x1be   : >> { %9720 = vmatprep.mubr.msk.f32.mxu0 %vm529_vm0, %v8900_v10  ;;  %9754 = vmatprep.mubr.msk.f32.mxu1 %vm529_vm0, %v8900_v10  ;;  %v8903_v15 = vld [vmem:[%s12661_s23 + $0x48] sm:$0xff]  ;;  %v8904_v16 = vld [vmem:[%s12661_s23 + $0x50] sm:$0xff]  ;;  %v8905_v17 = vld [vmem:[%s12661_s23 + $0x58] sm:$0xf] }
 0x1bf   : >> { %10746 = vmatpush3.bf16.msra.mxu0 %v10743_v6  ;;  %10762 = vmatpush3.bf16.msra.mxu1 %v10759_v7  ;;  %v1091_v18 = vld [vmem:[%s12661_s23] sm:$0xff]  ;;  %v1092_v19 = vld [vmem:[%s12661_s23 + $0x8] sm:$0xff]  ;;  %v1093_v20 = vld [vmem:[%s12661_s23 + $0x10] sm:$0xff] }
 0x1c0   : >> { %10748 = vmatprep.subr.bf16.mxu0 %v10747_v8  ;;  %10764 = vmatprep.subr.bf16.mxu1 %v10763_v9  ;;  %v1094_v21 = vld [vmem:[%s12661_s23 + $0x18] sm:$0xff]  ;;  %v1095_v22 = vld [vmem:[%s12661_s23 + $0x20] sm:$0xff]  ;;  %v1096_v23 = vld [vmem:[%s12661_s23 + $0x28] sm:$0xf] }
 0x1c1   : > { %v12788_v44 = vld [vmem:[%s13855_s5 + $0x60] sm:$0xff] (%p1084_p12)  ;;  %v12793_v45 = vld [vmem:[%s13855_s5 + $0x68] sm:$0xff] (%p1084_p12)  ;;  %v12798_v46 = vld [vmem:[%s13855_s5 + $0x70] sm:$0xff] (%p1084_p12) }
 0x1c2   : >> { %9721 = vmatmul.mubr.msk.f32.vlgmr.msra.gmra.mrb[0].mxu0 %vm529_vm0, %v8901_v11  ;;  %9755 = vmatmul.mubr.msk.f32.vlgmr.msra.gmra.mrb[0].mxu1 %vm529_vm0, %v8901_v11  ;;  %v12803_v47 = vld [vmem:[%s13855_s5 + $0x78] sm:$0xff] (%p1084_p12)  ;;  %v12808_v51 = vld [vmem:[%s13856_s6] ss:$0 sm:$0xff] (%p1084_p12) }
 0x1c3   : >> { %10750 = vmatpush3.bf16.msra.mxu0 %v10747_v8  ;;  %10766 = vmatpush3.bf16.msra.mxu1 %v10763_v9 }
 0x1c4   : >> { %9723 = vmatprep.mubr.msk.f32.mxu0 %vm529_vm0, %v8902_v12  ;;  %9757 = vmatprep.mubr.msk.f32.mxu1 %vm529_vm0, %v8902_v12 }
 0x1c5   : >> { %10752 = vmatprep.subr.bf16.mxu0 %v10751_v13  ;;  %10768 = vmatprep.subr.bf16.mxu1 %v10767_v14 }
 0x1c6   : >> { %9724 = vmatmul.mubr.msk.f32.gmra.mrb[2].mxu0 %vm529_vm0, %v8903_v15  ;;  %9758 = vmatmul.mubr.msk.f32.gmra.mrb[2].mxu1 %vm529_vm0, %v8903_v15 }
 0x1c7   : >> { %9726 = vmatprep.mubr.msk.f32.mxu0 %vm529_vm0, %v8904_v16  ;;  %10754 = vmatpush3.bf16.msra.mxu0 %v10751_v13 }
 0x1c8   : >> { %9760 = vmatprep.mubr.msk.f32.mxu1 %vm529_vm0, %v8904_v16  ;;  %10770 = vmatpush3.bf16.msra.mxu1 %v10767_v14 }
 0x1c9   : >> { %10771 = vmatprep.subr.bf16.mxu0 %v11591_v24  ;;  %10781 = vmatprep.subr.bf16.mxu1 %v11591_v24 }
 0x1ca   : >> { %9727 = vmatmul.mubr.msk.f32.gmra.mrb[4].mxu0 %vm529_vm0, %v8905_v17  ;;  %9761 = vmatmul.mubr.msk.f32.gmra.mrb[4].mxu1 %vm529_vm0, %v8905_v17 }
 0x1cb   : >> { %9737 = vmatprep.mubr.msk.f32.mxu0 %vm529_vm0, %v1091_v18  ;;  %9771 = vmatprep.mubr.msk.f32.mxu1 %vm529_vm0, %v1091_v18 }
 0x1ce   : >> { %9738 = vmatmul.mubr.msk.f32.vlgmr.msra.gmra.mrb[0].mxu0 %vm529_vm0, %v1092_v19  ;;  %9772 = vmatmul.mubr.msk.f32.vlgmr.msra.gmra.mrb[0].mxu1 %vm529_vm0, %v1092_v19 }
 0x1cf   : >> { %9740 = vmatprep.mubr.msk.f32.mxu0 %vm529_vm0, %v1093_v20  ;;  %9774 = vmatprep.mubr.msk.f32.mxu1 %vm529_vm0, %v1093_v20 }
 0x1d2   : >> { %9741 = vmatmul.mubr.msk.f32.gmra.mrb[2].mxu0 %vm529_vm0, %v1094_v21  ;;  %9775 = vmatmul.mubr.msk.f32.gmra.mrb[2].mxu1 %vm529_vm0, %v1094_v21 }
 0x1d3   : >> { %9743 = vmatprep.mubr.msk.f32.mxu0 %vm529_vm0, %v1095_v22  ;;  %9777 = vmatprep.mubr.msk.f32.mxu1 %vm529_vm0, %v1095_v22 }
 0x1d6   : >> { %9744 = vmatmul.mubr.msk.f32.gmra.mrb[4].mxu0 %vm529_vm0, %v1096_v23  ;;  %9778 = vmatmul.mubr.msk.f32.gmra.mrb[4].mxu1 %vm529_vm0, %v1096_v23 }
 0x1d7   : >> { %9792 = vmatprep.mubr.msk.f32.mxu0 %vm11592_vm12, %v11593_v25  ;;  %9813 = vmatprep.mubr.msk.f32.mxu1 %vm11592_vm12, %v11593_v25 }
 0x2a1   : >> { %v9739_v26 = vpop.f32.mrb[0].mxu0  ;;  %v9773_v27 = vpop.f32.mrb[0].mxu1 }
 0x2a2   : >> { %v1303_v28 = vpop.f32.mrb[1].mxu0  ;;  %v1493_v29 = vpop.f32.mrb[1].mxu1 }
 0x2a3   : >> { %v10782_v30 = vpack.c.bf16 %v9739_v26, %v1303_v28  ;;  %v10772_v31 = vpack.c.bf16 %v9773_v27, %v1493_v29  ;;  %v12733_v26 = vld [vmem:[%s13855_s5 + $0x8] sm:$0xff] (%p1084_p12)  ;;  %v12738_v27 = vld [vmem:[%s13855_s5 + $0x10] sm:$0xff] (%p1084_p12)  ;;  %v12743_v28 = vld [vmem:[%s13855_s5 + $0x18] sm:$0xff] (%p1084_p12) }
 0x2a5   : >> { %v9742_v32 = vpop.f32.mrb[2].mxu0  ;;  %v9776_v33 = vpop.f32.mrb[2].mxu1  ;;  %10773 = vmatpush3.bf16.msra.mxu0 %v10772_v31  ;;  %10783 = vmatpush3.bf16.msra.mxu1 %v10782_v30 }
 0x2a6   : >> { %v1313_v40 = vpop.f32.mrb[3].mxu0  ;;  %v1503_v41 = vpop.f32.mrb[3].mxu1  ;;  %10774 = vmatprep.subr.bf16.mxu0 %v11591_v24  ;;  %10784 = vmatprep.subr.bf16.mxu1 %v11591_v24 }
 0x2a7   : >> { %v10785_v48 = vpack.c.bf16 %v9742_v32, %v1313_v40  ;;  %v10775_v49 = vpack.c.bf16 %v9776_v33, %v1503_v41 }
 0x2a9   : >> { %v9745_v50 = vpop.f32.mrb[4].mxu0  ;;  %v9779_v56 = vpop.f32.mrb[4].mxu1  ;;  %10776 = vmatpush3.bf16.msra.mxu0 %v10775_v49  ;;  %10786 = vmatpush3.bf16.msra.mxu1 %v10785_v48 }
 0x2aa   : >> { %v1323_v57 = vpop.f32.mrb[5].mxu0  ;;  %v1513_v58 = vpop.f32.mrb[5].mxu1  ;;  %10777 = vmatprep.subr.bf16.mxu0 %v11591_v24  ;;  %10787 = vmatprep.subr.bf16.mxu1 %v11591_v24 }
 0x2ab   : >> { %v10788_v60 = vpack.c.bf16 %v9745_v50, %v1323_v57  ;;  %v10778_v61 = vpack.c.bf16 %v9779_v56, %v1513_v58 }
 0x2ad   : >> { %10780 = vmatpush3.bf16.msk.msra.mxu0 %vm10779_vm15, %v10778_v61  ;;  %10790 = vmatpush3.bf16.msk.msra.mxu1 %vm10779_vm15, %v10788_v60 }
 0x2b0   : >> { %9793 = vmatmul.mubr.msk.f32.vlgmr.msra.gmra.mrb[6].mxu0 %vm1522_vm3, %v12635_v0  ;;  %9814 = vmatmul.mubr.msk.f32.vlgmr.msra.gmra.mrb[6].mxu1 %vm1522_vm3, %v12626_v59 }
 0x2b1   : >> { %9795 = vmatprep.mubr.msk.f32.mxu0 %vm11592_vm12, %v11593_v25  ;;  %9816 = vmatprep.mubr.msk.f32.mxu1 %vm11592_vm12, %v11593_v25 }
 0x2b4   : >> { %9796 = vmatmul.mubr.msk.f32.gmra.mrb[8].mxu0 %vm1522_vm3, %v12638_v2  ;;  %9817 = vmatmul.mubr.msk.f32.gmra.mrb[8].mxu1 %vm1522_vm3, %v12629_v62 }
 0x2b5   : >> { %9798 = vmatprep.mubr.msk.f32.mxu0 %vm11592_vm12, %v11593_v25  ;;  %9819 = vmatprep.mubr.msk.f32.mxu1 %vm11592_vm12, %v11593_v25  ;;  %v12728_v25 = vld [vmem:[%s13855_s5] sm:$0xff] (%p1084_p12) }
 0x2b8   : >> { %9799 = vmatmul.mubr.msk.f32.gmra.mrb[10].mxu0 %vm1522_vm3, %v12641_v3  ;;  %9820 = vmatmul.mubr.msk.f32.gmra.mrb[10].mxu1 %vm1522_vm3, %v12632_v63 }
 0x383   : >> { %v1602_v4 = vpop.f32.mrb[6].mxu0  ;;  %v1694_v5 = vpop.f32.mrb[6].mxu1 }
 0x384   : >> { %v1695_v6 = vadd.f32 %v1694_v5, %v1602_v4  ;;  %v9794_v7 = vpop.f32.mrb[7].mxu0  ;;  %v9815_v8 = vpop.f32.mrb[7].mxu1 }
 0x386   : >> { %v1714_v9 = vadd.f32 %v12623_v55, %v1695_v6 }
 0x387   : >> { %v1607_v10 = vpop.f32.mrb[8].mxu0  ;;  %v1699_v11 = vpop.f32.mrb[8].mxu1 }
 0x388   : >> { %v1717_v12 = vmax.f32 %v1714_v9, 0.0  ;;  %v1700_v13 = vadd.f32 %v1699_v11, %v1607_v10  ;;  %v9797_v14 = vpop.f32.mrb[9].mxu0  ;;  %v9818_v15 = vpop.f32.mrb[9].mxu1 }
 0x38a   : >> { %8939 = vst.msk [vmem:[%s8794_s30 + $0x19] sm:$0xff] %vm529_vm0, %v1717_v12  ;;  %v1715_v16 = vadd.f32 %v12623_v55, %v1700_v13 }
 0x38b   : >> { %v1612_v17 = vpop.f32.mrb[10].mxu0  ;;  %v1704_v18 = vpop.f32.mrb[10].mxu1 }
 0x38c   : >> { %v1718_v19 = vmax.f32 %v1715_v16, 0.0  ;;  %v1705_v20 = vadd.f32 %v1704_v18, %v1612_v17  ;;  %v9800_v21 = vpop.f32.mrb[11].mxu0  ;;  %v9821_v22 = vpop.f32.mrb[11].mxu1  ;;  %1086 = sbr.rel (!%p1084_p12) target bundleno = 439 (0x1b7), region = 217 }
 0x38e   : >> { %8940 = vst.msk [vmem:[%s8794_s30 + $0x21] sm:$0xff] %vm529_vm0, %v1718_v19  ;;  %v1716_v23 = vadd.f32 %v12623_v55, %v1705_v20 }
 0x390   : >> { %v1719_v24 = vmax.f32 %v1716_v23, 0.0 }
 0x392   : >> { %8941 = vst.msk [vmem:[%s8794_s30 + $0x29] sm:$0x3f] %vm868_vm2, %v1719_v24 }
 0x393 LB: >> { %v10792_v52 = vpack.c.bf16 %v12773_v39, %v12768_v38  ;;  %v10804_v53 = vpack.c.bf16 %v12793_v45, %v12788_v44  ;;  %v11595_v54 = vmov 0.0|0.0   ;;  %v10795_v55 = vpack.c.bf16 %v12783_v43, %v12778_v42  ;;  %s8955_s2 = smul.u32 48, %s11586_s1  ;;  %s8978_s18 = sshll.u32 %s11586_s1, 4  ;;  %s11586_s1 = sphi %s12810_s1, %s1751_s1  }
 0x394   : >> { %10791 = vmatprep.subr.bf16.mxu0 %v11595_v54  ;;  %10803 = vmatprep.subr.bf16.mxu1 %v11595_v54  ;;  %v10807_v63 = vpack.c.bf16 %v12803_v47, %v12798_v46  ;;  %vm11596_vm2 = vmmov 0   ;;  %v11597_v3 = vmov 0.0   ;;  %v10798_v30 = vpack.c.bf16 %v12733_v26, %v12728_v25  ;;  %s8803_s19 = scalar_lea.vmem [#allocation4], %s8978_s18  ;;  %s1751_s1 = sadd.s32 1, %s11586_s1  }
 0x395   : >> { %10793 = vmatpush3.bf16.msra.mxu0 %v10792_v52  ;;  %10805 = vmatpush3.bf16.msra.mxu1 %v10804_v53  ;;  %s12826_s23 = scalar_lea.vmem [#allocation3], %s8955_s2  ;;  %v10810_v31 = vpack.c.bf16 %v12753_v35, %v12748_v34  ;;  %v10801_v33 = vpack.c.bf16 %v12743_v28, %v12738_v27  ;;  %v10813_v40 = vpack.c.bf16 %v12763_v37, %v12758_v36  ;;  %vm2102_vm4 = vcmask 195584   ;;  %p1748_p13 = scmp.ge.s32.totalorder %s1751_s1, 12  }
 0x396   : >> { %10794 = vmatprep.subr.bf16.mxu0 %v11595_v54  ;;  %10806 = vmatprep.subr.bf16.mxu1 %v11595_v54  ;;  %v8985_v23 = vld [vmem:[%s13857_s7 + $0x40] sm:$0xff] (%p1748_p13)  ;;  %v8986_v24 = vld [vmem:[%s13857_s7 + $0x48] sm:$0xff] (%p1748_p13)  ;;  %v8987_v52 = vld [vmem:[%s13857_s7 + $0x50] sm:$0xff] (%p1748_p13)  ;;  %vm11599_vm5 = vmmov (%p1748_p13), 0   ;;  %vm2621_vm6 = vcmask (%p1748_p13), 1045504   ;;  %vm11600_vm7 = vmmov (%p1748_p13), 1  }
 0x397   : >> { %9830 = vmatprep.mubr.msk.f32.mxu0 %vm11596_vm2, %v11597_v3  ;;  %9864 = vmatprep.mubr.msk.f32.mxu1 %vm11596_vm2, %v11597_v3  ;;  %v12889_v53 = vpack.c.bf16 (%p1748_p13), %v8986_v24, %v8985_v23  ;;  %v2282_v26 = vld [vmem:[%s13857_s7 + $0x10] sm:$0xff] (%p1748_p13)  ;;  %v2283_v27 = vld [vmem:[%s13857_s7 + $0x18] sm:$0xff] (%p1748_p13)  ;;  %v8989_v36 = vld [vmem:[%s13857_s7 + $0x60] sm:$0xff] (%p1748_p13)  ;;  %vm2617_vm9 = vcmask (%p1748_p13), 113664   ;;  %vm2780_vm10 = vcmask (%p1748_p13), 260096   ;;  %vm5898_vm11 = vcmask (%p1748_p13), 64512  }
 0x398   : > { %v12916_v34 = vpack.c.bf16 (%p1748_p13), %v2283_v27, %v2282_v26  ;;  %v8990_v37 = vld [vmem:[%s13857_s7 + $0x68] sm:$0xff] (%p1748_p13)  ;;  %v8991_v39 = vld [vmem:[%s13857_s7 + $0x70] sm:$0xff] (%p1748_p13)  ;;  %v8992_v42 = vld [vmem:[%s13857_s7 + $0x78] sm:$0xff] (%p1748_p13)  ;;  %s9192_s30 = sshll.u32 (%p1748_p13), %s11709_s25, 4  ;;  %s8743_s17 = sshll.u32 (%p1748_p13), %s12514_s27, 4  ;;  %s13802_s17 = int_to_ptr.vmem [resolvable:$true] %s8743_s17 }
 0x399   : >> { %10796 = vmatpush3.bf16.msra.mxu0 %v10795_v55  ;;  %10808 = vmatpush3.bf16.msra.mxu1 %v10807_v63  ;;  %v8958_v29 = vld [vmem:[%s12826_s23 + $0x18] sm:$0xff]  ;;  %v8959_v32 = vld [vmem:[%s12826_s23 + $0x20] sm:$0xff]  ;;  %v8960_v41 = vld [vmem:[%s12826_s23 + $0x28] sm:$0xff]  ;;  %v12928_v38 = vpack.c.bf16 (%p1748_p13), %v8990_v37, %v8989_v36  ;;  %v12938_v44 = vpack.c.bf16 (%p1748_p13), %v8992_v42, %v8991_v39  ;;  %s13800_s29 = scalar_lea.hbm (%p1748_p13), %s13865_s15, %s9192_s30  ;;  %s11601_s2 = smov (%p1748_p13), 124  }
 0x39a   : >> { %10797 = vmatprep.subr.bf16.mxu0 %v11595_v54  ;;  %10809 = vmatprep.subr.bf16.mxu1 %v11595_v54  ;;  %v1755_v48 = vld [vmem:[%s12826_s23] sm:$0xff]  ;;  %v1756_v49 = vld [vmem:[%s12826_s23 + $0x8] sm:$0xff]  ;;  %v1757_v50 = vld [vmem:[%s12826_s23 + $0x10] sm:$0xff]  ;;  %s13886_s23 = sand.u32 (%p1748_p13), 1, %s11566_s22   ;;  %s11500_s18 = scalar_lea.vmem (%p1748_p13), %s13802_s17, 16 }
 0x39b   : > { %v8981_v45 = vld [vmem:[%s13857_s7 + $0x20] sm:$0xff] (%p1748_p13)  ;;  %v8982_v46 = vld [vmem:[%s13857_s7 + $0x28] sm:$0xff] (%p1748_p13)  ;;  %vm12974_vm8 = vmpackc.low (%p1748_p13), %vm2621_vm6, %vm11600_vm7  ;;  %s8728_s25 = scalar_lea.sflag (%p1748_p13), [#allocation8], %s13886_s23  ;;  %p11501_p0 = scmp.ne.s32.totalorder (%p1748_p13), %s13802_s17, %s11500_s18 }
 0x39c   : >> { %9831 = vmatmul.mubr.msk.f32.vlgmr.msra.gmra.mrb[0].mxu0 %vm529_vm0, %v8958_v29  ;;  %9865 = vmatmul.mubr.msk.f32.vlgmr.msra.gmra.mrb[0].mxu1 %vm529_vm0, %v8958_v29  ;;  %v12950_v47 = vpack.c.bf16 (%p1748_p13), %v8982_v46, %v8981_v45  ;;  %s11602_s1 = smov (%p1748_p13), [#allocation7]  }
 0x39d   : >> { %9833 = vmatprep.mubr.msk.f32.mxu0 %vm11596_vm2, %v11597_v3  ;;  %9867 = vmatprep.mubr.msk.f32.mxu1 %vm11596_vm2, %v11597_v3  ;;  %p11502_p1 = pnand (%p1748_p13), %p11501_p0, %p11726_p5 }
 0x39e   : >> { %10799 = vmatpush3.bf16.msra.mxu0 %v10798_v30  ;;  %10811 = vmatpush3.bf16.msra.mxu1 %v10810_v31  ;;  %v11598_v30 = vmov (%p1748_p13), 0.0|0.0  }
 0x39f   : >> { %10800 = vmatprep.subr.bf16.mxu0 %v11595_v54  ;;  %10812 = vmatprep.subr.bf16.mxu1 %v11595_v54  ;;  %v8988_v54 = vld [vmem:[%s13857_s7 + $0x58] sm:$0xff] (%p1748_p13)  ;;  %p11503_p2 = pneg (%p1748_p13), %p11502_p1 }
 0x3a0   : >> { %9834 = vmatmul.mubr.msk.f32.gmra.mrb[2].mxu0 %vm529_vm0, %v8959_v32  ;;  %9868 = vmatmul.mubr.msk.f32.gmra.mrb[2].mxu1 %vm529_vm0, %v8959_v32  ;;  %v12894_v63 = vpack.c.bf16 (%p1748_p13), %v8988_v54, %v8987_v52 }
 0x3a1   : >> { %9836 = vmatprep.mubr.msk.f32.mxu0 %vm11596_vm2, %v11597_v3  ;;  %9870 = vmatprep.mubr.msk.f32.mxu1 %vm11596_vm2, %v11597_v3 }
 0x3a2   : >> { %10802 = vmatpush3.bf16.msra.mxu0 %v10801_v33  ;;  %10814 = vmatpush3.bf16.msra.mxu1 %v10813_v40 }
 0x3a4   : >> { %9837 = vmatmul.mubr.msk.f32.gmra.mrb[4].mxu0 %vm529_vm0, %v8960_v41  ;;  %9871 = vmatmul.mubr.msk.f32.gmra.mrb[4].mxu1 %vm529_vm0, %v8960_v41 }
 0x3a5   : >> { %9847 = vmatprep.mubr.msk.f32.mxu0 %vm11596_vm2, %v11597_v3  ;;  %9881 = vmatprep.mubr.msk.f32.mxu1 %vm11596_vm2, %v11597_v3 }
 0x3a8   : >> { %9848 = vmatmul.mubr.msk.f32.vlgmr.msra.gmra.mrb[0].mxu0 %vm529_vm0, %v1755_v48  ;;  %9882 = vmatmul.mubr.msk.f32.vlgmr.msra.gmra.mrb[0].mxu1 %vm529_vm0, %v1755_v48 }
 0x3a9   : >> { %9850 = vmatprep.mubr.msk.f32.mxu0 %vm11596_vm2, %v11597_v3  ;;  %9884 = vmatprep.mubr.msk.f32.mxu1 %vm11596_vm2, %v11597_v3 }
 0x3ac   : >> { %9851 = vmatmul.mubr.msk.f32.gmra.mrb[2].mxu0 %vm529_vm0, %v1756_v49  ;;  %9885 = vmatmul.mubr.msk.f32.gmra.mrb[2].mxu1 %vm529_vm0, %v1756_v49 }
 0x3ad   : >> { %9853 = vmatprep.mubr.msk.f32.mxu0 %vm11596_vm2, %v11597_v3  ;;  %9887 = vmatprep.mubr.msk.f32.mxu1 %vm11596_vm2, %v11597_v3  ;;  %v8984_v3 = vld [vmem:[%s13857_s7 + $0x38] sm:$0xff] (%p1748_p13) }
 0x3b0   : >> { %9854 = vmatmul.mubr.msk.f32.gmra.mrb[4].mxu0 %vm529_vm0, %v1757_v50  ;;  %9888 = vmatmul.mubr.msk.f32.gmra.mrb[4].mxu1 %vm529_vm0, %v1757_v50 }
 0x3b1   : >> { %9896 = vmatprep.mubr.msk.f32.mxu1 %vm2102_vm4, %v12635_v0  ;;  %9905 = vmatprep.mubr.msk.f32.mxu0 %vm2102_vm4, %v12626_v59 }
 0x47b   : >> { %v1928_v56 = vpop.f32.mrb[0].mxu0  ;;  %v2088_v57 = vpop.f32.mrb[0].mxu1 }
 0x47c   : >> { %v9849_v58 = vpop.f32.mrb[1].mxu0  ;;  %v9883_v60 = vpop.f32.mrb[1].mxu1 }
 0x47f   : >> { %v1933_v61 = vpop.f32.mrb[2].mxu0  ;;  %v2093_v4 = vpop.f32.mrb[2].mxu1 }
 0x480   : >> { %v10819_v5 = vpack.c.bf16 %v1933_v61, %v1928_v56  ;;  %v10815_v6 = vpack.c.bf16 %v2093_v4, %v2088_v57  ;;  %v9852_v7 = vpop.f32.mrb[3].mxu0  ;;  %v9886_v8 = vpop.f32.mrb[3].mxu1  ;;  %v13019_v4 = vld [vmem:[%s13858_s8] ss:$0 sm:$0xff] (%p1748_p13) }
 0x482   : >> { %10816 = vmatprep.subr.bf16.mxu1 %v10815_v6  ;;  %10820 = vmatprep.subr.bf16.mxu0 %v10819_v5 }
 0x483   : >> { %v1938_v9 = vpop.f32.mrb[4].mxu0  ;;  %v2098_v10 = vpop.f32.mrb[4].mxu1  ;;  %10818 = vmatpush3.bf16.msra.mxu1 %v10815_v6  ;;  %10822 = vmatpush3.bf16.msra.mxu0 %v10819_v5 }
 0x484   : >> { %v9855_v11 = vpop.f32.mrb[5].mxu0  ;;  %v9889_v12 = vpop.f32.mrb[5].mxu1  ;;  %9894 = vmatprep.subr.mxu1 %v2098_v10  ;;  %9903 = vmatprep.subr.mxu0 %v1938_v9 }
 0x487   : >> { %9895 = vmatpush3.msra.mxu1 %v2098_v10  ;;  %9904 = vmatpush3.msra.mxu0 %v1938_v9 }
 0x488   : >> { %9897 = vmatmul.mubr.msk.f32.vlgmr.msra.gmra.mrb[6].mxu1 %vm2102_vm4, %v12638_v2  ;;  %9906 = vmatmul.mubr.msk.f32.vlgmr.msra.gmra.mrb[6].mxu0 %vm2102_vm4, %v12629_v62  ;;  %v2280_v62 = vld [vmem:[%s13857_s7] sm:$0xff] (%p1748_p13)  ;;  %v2281_v2 = vld [vmem:[%s13857_s7 + $0x8] sm:$0xff] (%p1748_p13) }
 0x489   : > { %10824 = vmatprep.subr.bf16.mxu1 (%p1748_p13), %v12889_v53  ;;  %v12906_v25 = vpack.c.bf16 (%p1748_p13), %v2281_v2, %v2280_v62  ;;  %10855 = vmatprep.subr.bf16.mxu0 (%p1748_p13), %v11598_v30 }
 0x48a   : > { %10826 = vmatpush3.bf16.msra.mxu1 (%p1748_p13), %v12889_v53  ;;  %9956 = vmatprep.mubr.msk.f32.mxu0 (%p1748_p13), %vm11599_vm5, %v11588_v1 }
 0x48b   : > { %10828 = vmatprep.subr.bf16.mxu1 (%p1748_p13), %v12894_v63 }
 0x48e   : > { %10830 = vmatpush3.bf16.msra.mxu1 (%p1748_p13), %v12894_v63 }
 0x48f   : > { %10832 = vmatprep.subr.bf16.mxu1 (%p1748_p13), %v12906_v25 }
 0x55b   : >> { %v9898_v13 = vpop.f32.mrb[6].mxu1  ;;  %v9907_v14 = vpop.f32.mrb[6].mxu0 }
 0x55c   : >> { %v2262_v15 = vadd.f32 %v9907_v14, %v9898_v13  ;;  %v2175_v16 = vpop.f32.mrb[7].mxu1  ;;  %v2256_v17 = vpop.f32.mrb[7].mxu0 }
 0x55d   : >> { %v2257_v18 = vadd.f32 %v2256_v17, %v2175_v16  ;;  %1750 = sbr.rel (!%p1748_p13) target bundleno = 915 (0x393), region = 228 }
 0x55e   : >> { %v2272_v19 = vadd.f32 %v12808_v51, %v2262_v15 }
 0x55f   : >> { %v2271_v20 = vadd.f32 %v12808_v51, %v2257_v18  ;;  %v8983_v51 = vld [vmem:[%s13857_s7 + $0x30] sm:$0xff] (%p1748_p13) }
 0x560   : >> { %v2274_v21 = vmax.f32 %v2272_v19, 0.0  ;;  %v12960_v29 = vpack.c.bf16 (%p1748_p13), %v8984_v3, %v8983_v51 }
 0x561   : >> { %v2273_v22 = vmax.f32 %v2271_v20, 0.0 }
 0x562   : >> { %8980 = vst.msk [vmem:[%s8803_s19 + $0x19] sm:$0xf] %vm535_vm1, %v2274_v21 }
 0x563   : >> { %8979 = vst.msk [vmem:[%s8803_s19 + $0x11] sm:$0xff] %vm529_vm0, %v2273_v22  ;;  %s11504_s19 = sshll.u32 (%p1748_p13), %s11602_s1, 4  ;;  %s11505_s19 = int_to_ptr.vmem [resolvable:$false] %s11504_s19 }
 0x564   : > { %s11506_s30 = scalar_lea.vmem %s11505_s19, 32  ;;  %p11507_p3 = scmp.lt.s32.totalorder %s13802_s17, %s11505_s19 }
 0x565   : > { %p11508_p4 = scmp.lt.s32.totalorder %s11506_s30, %s11500_s18 }
 0x567   : > { %p11509_p7 = por %p11508_p4, %p11507_p3 }
 0x569   : > { %p11510_p8 = pnand %p11509_p7, %p11503_p2 }
 0x56a   : > { %v2303_v55 = vld [vmem:[#allocation4 + $0x10] sm:$0xff]  ;;  %v2304_v28 = vld [vmem:[#allocation4 + $0x18] sm:$0x3f]  ;;  %v2300_v35 = vld [vmem:[#allocation4] sm:$0xff] }
 0x56b   : > { %9916 = vmatprep.mubr.msk.f32.mxu1 %vm529_vm0, %v2303_v55  ;;  %v2301_v43 = vld [vmem:[#allocation4 + $0x8] sm:$0x3f]  ;;  %v2786_v41 = vld [vmem:[#allocation4 + $0x30] sm:$0xff]  ;;  %v2787_v48 = vld [vmem:[#allocation4 + $0x38] sm:$0x3f] }
 0x56c   : > { %9917 = vmatmul.mubr.msk.f32.vlgmr.msra.gmra.mrb[0].mxu1 %vm529_vm0, %v2304_v28  ;;  %v2783_v49 = vld [vmem:[#allocation4 + $0x20] sm:$0xff]  ;;  %v2784_v58 = vld [vmem:[#allocation4 + $0x28] sm:$0x3f]  ;;  %v3254_v13 = vld [vmem:[#allocation4 + $0x50] sm:$0xff] }
 0x56d   : > { %10834 = vmatpush3.bf16.msra.mxu1 %v12906_v25  ;;  %9927 = vmatprep.mubr.msk.f32.mxu1 %vm529_vm0, %v2300_v35  ;;  %v3255_v14 = vld [vmem:[#allocation4 + $0x58] sm:$0x3f]  ;;  %v3251_v15 = vld [vmem:[#allocation4 + $0x40] sm:$0xff]  ;;  %v3252_v19 = vld [vmem:[#allocation4 + $0x48] sm:$0x3f] }
 0x56e   : > { %10836 = vmatprep.subr.bf16.mxu1 %v12916_v34  ;;  %v3722_v26 = vld [vmem:[#allocation4 + $0x70] sm:$0xff]  ;;  %v3723_v27 = vld [vmem:[#allocation4 + $0x78] sm:$0x3f]  ;;  %v3720_v39 = vld [vmem:[#allocation4 + $0x68] sm:$0x3f] }
 0x571   : > { %10838 = vmatpush3.bf16.msra.mxu1 %v12916_v34 }
 0x572   : > { %10840 = vmatprep.subr.bf16.mxu1 %v12928_v38 }
 0x574   : > { %9928 = vmatmul.mubr.msk.f32.vlgmr.msra.gmra.mrb[0].mxu1 %vm529_vm0, %v2301_v43 }
 0x575   : > { %10842 = vmatpush3.bf16.msra.mxu1 %v12928_v38  ;;  %9938 = vmatprep.mubr.msk.f32.mxu1 %vm529_vm0, %v2303_v55 }
 0x576   : > { %10844 = vmatprep.subr.bf16.mxu1 %v12938_v44 }
 0x579   : > { %10846 = vmatpush3.bf16.msra.mxu1 %v12938_v44 }
 0x57a   : > { %10848 = vmatprep.subr.bf16.mxu1 %v12950_v47 }
 0x57c   : > { %9939 = vmatmul.mubr.msk.f32.vlgmr.msra.gmra.mrb[2].mxu1 %vm529_vm0, %v2304_v28  ;;  %v3719_v28 = vld [vmem:[#allocation4 + $0x60] sm:$0xff] }
 0x57d   : > { %10850 = vmatpush3.bf16.msra.mxu1 %v12950_v47  ;;  %9949 = vmatprep.mubr.msk.f32.mxu1 %vm529_vm0, %v2300_v35 }
 0x57e   : > { %10852 = vmatprep.subr.bf16.mxu1 %v12960_v29 }
 0x581   : > { %10854 = vmatpush3.bf16.msra.mxu1 %v12960_v29 }
 0x582   : > { %10859 = vmatprep.subr.bf16.mxu1 %v11598_v30 }
 0x584   : > { %9950 = vmatmul.mubr.msk.f32.vlgmr.msra.gmra.mrb[2].mxu1 %vm529_vm0, %v2301_v43 }
 0x585   : > { %9963 = vmatprep.mubr.msk.f32.mxu1 %vm11599_vm5, %v11588_v1 }
 0x647   : > { %v9929_v31 = vpop.f32.mrb[0].mxu1 }
 0x648   : > { %v2458_v32 = vpop.f32.mrb[1].mxu1 }
 0x649   : > { %v10860_v40 = vpack.c.bf16 %v9929_v31, %v2458_v32 }
 0x64b   : > { %10862 = vmatpush3.bf16.msk.msra.mxu1 %vm12974_vm8, %v10860_v40 }
 0x64c   : > { %10864 = vmatprep.subr.bf16.mxu1 %v12889_v53 }
 0x64e   : > { %9964 = vmatmul.mubr.msk.f32.vlgmr.msra.gmra.mrb[4].mxu1 %vm2617_vm9, %v12626_v59 }
 0x64f   : > { %10866 = vmatpush3.bf16.msra.mxu1 %v12889_v53  ;;  %9974 = vmatprep.mubr.msk.f32.mxu1 %vm529_vm0, %v2786_v41 }
 0x650   : > { %10868 = vmatprep.subr.bf16.mxu1 %v12894_v63 }
 0x653   : > { %10870 = vmatpush3.bf16.msra.mxu1 %v12894_v63 }
 0x654   : > { %10872 = vmatprep.subr.bf16.mxu1 %v12906_v25 }
 0x656   : > { %9975 = vmatmul.mubr.msk.f32.vlgmr.msra.gmra.mrb[6].mxu1 %vm529_vm0, %v2787_v48 }
 0x657   : > { %v9951_v50 = vpop.f32.mrb[2].mxu1  ;;  %10874 = vmatpush3.bf16.msra.mxu1 %v12906_v25  ;;  %9985 = vmatprep.mubr.msk.f32.mxu1 %vm529_vm0, %v2783_v49 }
 0x658   : > { %v2608_v56 = vpop.f32.mrb[3].mxu1  ;;  %10876 = vmatprep.subr.bf16.mxu1 %v12916_v34 }
 0x659   : > { %v10856_v57 = vpack.c.bf16 %v9951_v50, %v2608_v56  ;;  %v4187_v50 = vld [vmem:[#allocation4 + $0x80] sm:$0xff] }
 0x65b   : > { %10858 = vmatpush3.bf16.msk.msra.mxu0 %vm12974_vm8, %v10856_v57  ;;  %10878 = vmatpush3.bf16.msra.mxu1 %v12916_v34 }
 0x65c   : > { %10880 = vmatprep.subr.bf16.mxu1 %v12928_v38  ;;  %10895 = vmatprep.subr.bf16.mxu0 %v11598_v30 }
 0x65e   : > { %9957 = vmatmul.mubr.msk.f32.vlgmr.msra.gmra.mrb[0].mxu0 %vm2617_vm9, %v12635_v0  ;;  %9986 = vmatmul.mubr.msk.f32.vlgmr.msra.gmra.mrb[6].mxu1 %vm529_vm0, %v2784_v58 }
 0x65f   : > { %10882 = vmatpush3.bf16.msra.mxu1 %v12928_v38  ;;  %9996 = vmatprep.mubr.msk.f32.mxu1 %vm529_vm0, %v2786_v41 }
 0x660   : > { %10884 = vmatprep.subr.bf16.mxu1 %v12938_v44  ;;  %10014 = vmatprep.mubr.msk.f32.mxu0 %vm11599_vm5, %v11588_v1 }
 0x663   : > { %10886 = vmatpush3.bf16.msra.mxu1 %v12938_v44 }
 0x664   : > { %10888 = vmatprep.subr.bf16.mxu1 %v12950_v47 }
 0x666   : > { %9997 = vmatmul.mubr.msk.f32.vlgmr.msra.gmra.mrb[8].mxu1 %vm529_vm0, %v2787_v48  ;;  %v4190_v48 = vld [vmem:[#allocation4 + $0x90] sm:$0xff] }
 0x667   : > { %10890 = vmatpush3.bf16.msra.mxu1 %v12950_v47  ;;  %10007 = vmatprep.mubr.msk.f32.mxu1 %vm529_vm0, %v2783_v49  ;;  %v4191_v49 = vld [vmem:[#allocation4 + $0x98] sm:$0x3f] }
 0x668   : > { %10892 = vmatprep.subr.bf16.mxu1 %v12960_v29 }
 0x66b   : > { %10894 = vmatpush3.bf16.msra.mxu1 %v12960_v29 }
 0x66c   : > { %10899 = vmatprep.subr.bf16.mxu1 %v11598_v30 }
 0x66e   : > { %10008 = vmatmul.mubr.msk.f32.vlgmr.msra.gmra.mrb[8].mxu1 %vm529_vm0, %v2784_v58 }
 0x66f   : > { %10021 = vmatprep.mubr.msk.f32.mxu1 %vm11599_vm5, %v11588_v1 }
 0x721   : > { %v2767_v60 = vpop.f32.mrb[4].mxu1 }
 0x722   : > { %v9965_v61 = vpop.f32.mrb[5].mxu1 }
 0x731   : > { %v2691_v5 = vpop.f32.mrb[0].mxu0  ;;  %v9987_v6 = vpop.f32.mrb[6].mxu1 }
 0x732   : > { %v2768_v7 = vadd.f32 %v2767_v60, %v2691_v5  ;;  %v2941_v8 = vpop.f32.mrb[7].mxu1  ;;  %v9958_v9 = vpop.f32.mrb[1].mxu0  ;;  %v4188_v60 = vld [vmem:[#allocation4 + $0x88] sm:$0x3f] }
 0x733   : > { %v10900_v10 = vpack.c.bf16 %v9987_v6, %v2941_v8 }
 0x734   : > { %v2777_v11 = vadd.f32 %v13019_v4, %v2768_v7 }
 0x735   : > { %10902 = vmatpush3.bf16.msk.msra.mxu1 %vm12974_vm8, %v10900_v10 }
 0x736   : > { %v2778_v12 = vmax.f32 %v2777_v11, 0.0  ;;  %10904 = vmatprep.subr.bf16.mxu1 %v12889_v53 }
 0x738   : > { %2781 = vst.msk [vmem:[#allocation5 + $0x9] sm:$0x7f] %vm2780_vm10, %v2778_v12  ;;  %10022 = vmatmul.mubr.msk.f32.vlgmr.msra.gmra.mrb[10].mxu1 %vm2617_vm9, %v12626_v59 }
 0x739   : > { %10906 = vmatpush3.bf16.msra.mxu1 %v12889_v53  ;;  %10032 = vmatprep.mubr.msk.f32.mxu1 %vm529_vm0, %v3254_v13 }
 0x73a   : > { %10908 = vmatprep.subr.bf16.mxu1 %v12894_v63 }
 0x73d   : > { %10910 = vmatpush3.bf16.msra.mxu1 %v12894_v63 }
 0x73e   : > { %10912 = vmatprep.subr.bf16.mxu1 %v12906_v25 }
 0x740   : > { %10033 = vmatmul.mubr.msk.f32.vlgmr.msra.gmra.mrb[12].mxu1 %vm529_vm0, %v3255_v14 }
 0x741   : > { %v10009_v16 = vpop.f32.mrb[8].mxu1  ;;  %10914 = vmatpush3.bf16.msra.mxu1 %v12906_v25  ;;  %10043 = vmatprep.mubr.msk.f32.mxu1 %vm529_vm0, %v3251_v15 }
 0x742   : > { %v3091_v17 = vpop.f32.mrb[9].mxu1  ;;  %10916 = vmatprep.subr.bf16.mxu1 %v12916_v34 }
 0x743   : > { %v10896_v18 = vpack.c.bf16 %v10009_v16, %v3091_v17  ;;  %v4655_v16 = vld [vmem:[#allocation4 + $0xa0] sm:$0xff] }
 0x745   : > { %10898 = vmatpush3.bf16.msk.msra.mxu0 %vm12974_vm8, %v10896_v18  ;;  %10918 = vmatpush3.bf16.msra.mxu1 %v12916_v34 }
 0x746   : > { %10920 = vmatprep.subr.bf16.mxu1 %v12928_v38  ;;  %10935 = vmatprep.subr.bf16.mxu0 %v11598_v30 }
 0x748   : > { %10015 = vmatmul.mubr.msk.f32.vlgmr.msra.gmra.mrb[2].mxu0 %vm2617_vm9, %v12635_v0  ;;  %10044 = vmatmul.mubr.msk.f32.vlgmr.msra.gmra.mrb[12].mxu1 %vm529_vm0, %v3252_v19 }
 0x749   : > { %10922 = vmatpush3.bf16.msra.mxu1 %v12928_v38  ;;  %10054 = vmatprep.mubr.msk.f32.mxu1 %vm529_vm0, %v3254_v13 }
 0x74a   : > { %10924 = vmatprep.subr.bf16.mxu1 %v12938_v44  ;;  %10072 = vmatprep.mubr.msk.f32.mxu0 %vm11599_vm5, %v11588_v1 }
 0x74d   : > { %10926 = vmatpush3.bf16.msra.mxu1 %v12938_v44 }
 0x74e   : > { %10928 = vmatprep.subr.bf16.mxu1 %v12950_v47 }
 0x750   : > { %10055 = vmatmul.mubr.msk.f32.vlgmr.msra.gmra.mrb[14].mxu1 %vm529_vm0, %v3255_v14  ;;  %v4658_v14 = vld [vmem:[#allocation4 + $0xb0] sm:$0xff] }
 0x751   : > { %10930 = vmatpush3.bf16.msra.mxu1 %v12950_v47  ;;  %10065 = vmatprep.mubr.msk.f32.mxu1 %vm529_vm0, %v3251_v15  ;;  %v4659_v15 = vld [vmem:[#allocation4 + $0xb8] sm:$0x3f] }
 0x752   : > { %10932 = vmatprep.subr.bf16.mxu1 %v12960_v29 }
 0x755   : > { %10934 = vmatpush3.bf16.msra.mxu1 %v12960_v29 }
 0x756   : > { %10939 = vmatprep.subr.bf16.mxu1 %v11598_v30 }
 0x758   : > { %10066 = vmatmul.mubr.msk.f32.vlgmr.msra.gmra.mrb[14].mxu1 %vm529_vm0, %v3252_v19 }
 0x759   : > { %10079 = vmatprep.mubr.msk.f32.mxu1 %vm11599_vm5, %v11588_v1 }
 0x80b   : > { %v3242_v20 = vpop.f32.mrb[10].mxu1 }
 0x80c   : > { %v10023_v21 = vpop.f32.mrb[11].mxu1 }
 0x81b   : > { %v3169_v22 = vpop.f32.mrb[2].mxu0  ;;  %v10045_v23 = vpop.f32.mrb[12].mxu1 }
 0x81c   : > { %v3243_v24 = vadd.f32 %v3242_v20, %v3169_v22  ;;  %v3409_v52 = vpop.f32.mrb[13].mxu1  ;;  %v10016_v54 = vpop.f32.mrb[3].mxu0  ;;  %v4656_v20 = vld [vmem:[#allocation4 + $0xa8] sm:$0x3f] }
 0x81d   : > { %v10940_v55 = vpack.c.bf16 %v10045_v23, %v3409_v52 }
 0x81e   : > { %v3246_v62 = vadd.f32 %v13019_v4, %v3243_v24 }
 0x81f   : > { %10942 = vmatpush3.bf16.msk.msra.mxu1 %vm12974_vm8, %v10940_v55 }
 0x820   : > { %v3247_v2 = vmax.f32 %v3246_v62, 0.0  ;;  %10960 = vmatprep.subr.bf16.mxu1 %v12928_v38 }
 0x822   : > { %3249 = vst.msk [vmem:[#allocation5 + $0x11] sm:$0x7f] %vm2780_vm10, %v3247_v2  ;;  %10080 = vmatmul.mubr.msk.f32.vlgmr.msra.gmra.mrb[16].mxu1 %vm2617_vm9, %v12626_v59 }
 0x823   : > { %10962 = vmatpush3.bf16.msra.mxu1 %v12928_v38  ;;  %10112 = vmatprep.mubr.msk.f32.mxu1 %vm529_vm0, %v3722_v26 }
 0x824   : > { %10964 = vmatprep.subr.bf16.mxu1 %v12938_v44 }
 0x827   : > { %10966 = vmatpush3.bf16.msra.mxu1 %v12938_v44 }
 0x828   : > { %10968 = vmatprep.subr.bf16.mxu1 %v12950_v47 }
 0x82a   : > { %10113 = vmatmul.mubr.msk.f32.vlgmr.msra.gmra.mrb[18].mxu1 %vm529_vm0, %v3723_v27 }
 0x82b   : > { %v10067_v35 = vpop.f32.mrb[14].mxu1  ;;  %10970 = vmatpush3.bf16.msra.mxu1 %v12950_v47  ;;  %10123 = vmatprep.mubr.msk.f32.mxu1 %vm529_vm0, %v3719_v28 }
 0x82c   : > { %v3559_v36 = vpop.f32.mrb[15].mxu1  ;;  %10972 = vmatprep.subr.bf16.mxu1 %v12960_v29 }
 0x82d   : > { %v10936_v37 = vpack.c.bf16 %v10067_v35, %v3559_v36  ;;  %v5123_v35 = vld [vmem:[#allocation4 + $0xc0] sm:$0xff] }
 0x82f   : > { %10938 = vmatpush3.bf16.msk.msra.mxu0 %vm12974_vm8, %v10936_v37  ;;  %10974 = vmatpush3.bf16.msra.mxu1 %v12960_v29 }
 0x830   : > { %10944 = vmatprep.subr.bf16.mxu0 %v12889_v53  ;;  %10979 = vmatprep.subr.bf16.mxu1 %v11598_v30 }
 0x832   : > { %10073 = vmatmul.mubr.msk.f32.vlgmr.msra.gmra.mrb[4].mxu0 %vm2617_vm9, %v12635_v0  ;;  %10124 = vmatmul.mubr.msk.f32.vlgmr.msra.gmra.mrb[18].mxu1 %vm529_vm0, %v3720_v39 }
 0x833   : > { %10946 = vmatpush3.bf16.msra.mxu0 %v12889_v53  ;;  %10090 = vmatprep.mubr.msk.f32.mxu0 %vm529_vm0, %v3722_v26 }
 0x834   : > { %10948 = vmatprep.subr.bf16.mxu0 %v12894_v63  ;;  %10137 = vmatprep.mubr.msk.f32.mxu1 %vm11599_vm5, %v11588_v1 }
 0x837   : > { %10950 = vmatpush3.bf16.msra.mxu0 %v12894_v63 }
 0x838   : > { %10952 = vmatprep.subr.bf16.mxu0 %v12906_v25 }
 0x83a   : > { %10091 = vmatmul.mubr.msk.f32.vlgmr.msra.gmra.mrb[6].mxu0 %vm529_vm0, %v3723_v27  ;;  %v5126_v27 = vld [vmem:[#allocation4 + $0xd0] sm:$0xff] }
 0x83b   : > { %10954 = vmatpush3.bf16.msra.mxu0 %v12906_v25  ;;  %10101 = vmatprep.mubr.msk.f32.mxu0 %vm529_vm0, %v3719_v28  ;;  %v5127_v28 = vld [vmem:[#allocation4 + $0xd8] sm:$0x3f] }
 0x83c   : > { %10956 = vmatprep.subr.bf16.mxu0 %v12916_v34 }
 0x83f   : > { %10958 = vmatpush3.bf16.msra.mxu0 %v12916_v34 }
 0x840   : > { %10975 = vmatprep.subr.bf16.mxu0 %v11598_v30 }
 0x842   : > { %10102 = vmatmul.mubr.msk.f32.vlgmr.msra.gmra.mrb[6].mxu0 %vm529_vm0, %v3720_v39 }
 0x843   : > { %10130 = vmatprep.mubr.msk.f32.mxu0 %vm11599_vm5, %v11588_v1 }
 0x8f5   : > { %v3710_v42 = vpop.f32.mrb[16].mxu1 }
 0x8f6   : > { %v10081_v43 = vpop.f32.mrb[17].mxu1 }
 0x8f7   : > { %v9086_v43 = vld [vmem:[%s13859_s9 + $0x60] sm:$0xff] }
 0x905   : > { %v3637_v45 = vpop.f32.mrb[4].mxu0  ;;  %v10125_v46 = vpop.f32.mrb[18].mxu1 }
 0x906   : > { %v3711_v51 = vadd.f32 %v3710_v42, %v3637_v45  ;;  %v10074_v3 = vpop.f32.mrb[5].mxu0  ;;  %v4027_v31 = vpop.f32.mrb[19].mxu1 }
 0x907   : > { %v10976_v32 = vpack.c.bf16 %v10125_v46, %v4027_v31  ;;  %v9088_v31 = vld [vmem:[%s13859_s9 + $0x70] sm:$0xff] }
 0x908   : > { %v3714_v40 = vadd.f32 %v13019_v4, %v3711_v51 }
 0x909   : > { %10978 = vmatpush3.bf16.msk.msra.mxu0 %vm12974_vm8, %v10976_v32  ;;  %v9089_v32 = vld [vmem:[%s13859_s9 + $0x78] sm:$0xff] }
 0x90a   : > { %v3715_v41 = vmax.f32 %v3714_v40, 0.0  ;;  %10984 = vmatprep.subr.bf16.mxu0 %v12889_v53  ;;  %v13243_v40 = vpack.c.bf16 %v9089_v32, %v9088_v31 }
 0x90c   : > { %3717 = vst.msk [vmem:[#allocation5 + $0x19] sm:$0x7f] %vm2780_vm10, %v3715_v41  ;;  %10131 = vmatmul.mubr.msk.f32.vlgmr.msra.gmra.mrb[8].mxu0 %vm2617_vm9, %v12635_v0  ;;  %v9078_v41 = vld [vmem:[%s13859_s9 + $0x20] sm:$0xff] }
 0x90d   : > { %10986 = vmatpush3.bf16.msra.mxu0 %v12889_v53  ;;  %10148 = vmatprep.mubr.msk.f32.mxu0 %vm529_vm0, %v4190_v48 }
 0x90e   : > { %10988 = vmatprep.subr.bf16.mxu0 %v12894_v63 }
 0x911   : > { %10990 = vmatpush3.bf16.msra.mxu0 %v12894_v63 }
 0x912   : > { %10992 = vmatprep.subr.bf16.mxu0 %v12906_v25 }
 0x914   : > { %10149 = vmatmul.mubr.msk.f32.vlgmr.msra.gmra.mrb[10].mxu0 %vm529_vm0, %v4191_v49 }
 0x915   : > { %v10103_v56 = vpop.f32.mrb[6].mxu0  ;;  %10994 = vmatpush3.bf16.msra.mxu0 %v12906_v25  ;;  %10159 = vmatprep.mubr.msk.f32.mxu0 %vm529_vm0, %v4187_v50 }
 0x916   : > { %v3877_v57 = vpop.f32.mrb[7].mxu0  ;;  %10996 = vmatprep.subr.bf16.mxu0 %v12916_v34 }
 0x917   : > { %v10980_v58 = vpack.c.bf16 %v10103_v56, %v3877_v57  ;;  %v9081_v56 = vld [vmem:[%s13859_s9 + $0x38] sm:$0xff]  ;;  %v5611_v57 = vld [vmem:[#allocation5 + $0x8] sm:$0xff] }
 0x919   : > { %10982 = vmatpush3.bf16.msk.msra.mxu1 %vm12974_vm8, %v10980_v58  ;;  %10998 = vmatpush3.bf16.msra.mxu0 %v12916_v34 }
 0x91a   : > { %11000 = vmatprep.subr.bf16.mxu1 %v12928_v38  ;;  %11015 = vmatprep.subr.bf16.mxu0 %v11598_v30 }
 0x91c   : > { %10138 = vmatmul.mubr.msk.f32.vlgmr.msra.gmra.mrb[20].mxu1 %vm2617_vm9, %v12626_v59  ;;  %10160 = vmatmul.mubr.msk.f32.vlgmr.msra.gmra.mrb[10].mxu0 %vm529_vm0, %v4188_v60 }
 0x91d   : > { %11002 = vmatpush3.bf16.msra.mxu1 %v12928_v38  ;;  %10170 = vmatprep.mubr.msk.f32.mxu1 %vm529_vm0, %v4190_v48  ;;  %v9079_v48 = vld [vmem:[%s13859_s9 + $0x28] sm:$0xff] }
 0x91e   : > { %11004 = vmatprep.subr.bf16.mxu1 %v12938_v44  ;;  %10188 = vmatprep.mubr.msk.f32.mxu0 %vm11599_vm5, %v11588_v1 }
 0x921   : > { %11006 = vmatpush3.bf16.msra.mxu1 %v12938_v44 }
 0x922   : > { %11008 = vmatprep.subr.bf16.mxu1 %v12950_v47 }
 0x924   : > { %10171 = vmatmul.mubr.msk.f32.vlgmr.msra.gmra.mrb[22].mxu1 %vm529_vm0, %v4191_v49  ;;  %v13255_v49 = vpack.c.bf16 %v9079_v48, %v9078_v41 }
 0x925   : > { %11010 = vmatpush3.bf16.msra.mxu1 %v12950_v47  ;;  %10181 = vmatprep.mubr.msk.f32.mxu1 %vm529_vm0, %v4187_v50  ;;  %v9080_v50 = vld [vmem:[%s13859_s9 + $0x30] sm:$0xff] }
 0x926   : > { %11012 = vmatprep.subr.bf16.mxu1 %v12960_v29 }
 0x929   : > { %11014 = vmatpush3.bf16.msra.mxu1 %v12960_v29 }
 0x92a   : > { %11019 = vmatprep.subr.bf16.mxu1 %v11598_v30 }
 0x92c   : > { %10182 = vmatmul.mubr.msk.f32.vlgmr.msra.gmra.mrb[22].mxu1 %vm529_vm0, %v4188_v60  ;;  %v13266_v60 = vpack.c.bf16 %v9081_v56, %v9080_v50 }
 0x92d   : > { %10195 = vmatprep.mubr.msk.f32.mxu1 %vm11599_vm5, %v11588_v1 }
 0x9df   : > { %v4105_v61 = vpop.f32.mrb[8].mxu0 }
 0x9e0   : > { %v10132_v5 = vpop.f32.mrb[9].mxu0 }
 0x9e1   : > { %v9082_v5 = vld [vmem:[%s13859_s9 + $0x40] sm:$0xff] }
 0x9ef   : > { %v4178_v6 = vpop.f32.mrb[20].mxu1  ;;  %v10161_v7 = vpop.f32.mrb[10].mxu0 }
 0x9f0   : > { %v4179_v8 = vadd.f32 %v4178_v6, %v4105_v61  ;;  %v10139_v9 = vpop.f32.mrb[21].mxu1  ;;  %v4345_v10 = vpop.f32.mrb[11].mxu0  ;;  %v9083_v6 = vld [vmem:[%s13859_s9 + $0x48] sm:$0xff] }
 0x9f1   : > { %v11020_v11 = vpack.c.bf16 %v10161_v7, %v4345_v10  ;;  %v13280_v9 = vpack.c.bf16 %v9083_v6, %v9082_v5  ;;  %v9084_v10 = vld [vmem:[%s13859_s9 + $0x50] sm:$0xff] }
 0x9f2   : > { %v4182_v12 = vadd.f32 %v13019_v4, %v4179_v8  ;;  %v5610_v8 = vld [vmem:[#allocation5] sm:$0xff] }
 0x9f3   : > { %11022 = vmatpush3.bf16.msk.msra.mxu1 %vm12974_vm8, %v11020_v11  ;;  %v9085_v11 = vld [vmem:[%s13859_s9 + $0x58] sm:$0xff] }
 0x9f4   : > { %v4183_v13 = vmax.f32 %v4182_v12, 0.0  ;;  %11040 = vmatprep.subr.bf16.mxu1 %v12928_v38  ;;  %v13294_v33 = vpack.c.bf16 %v9085_v11, %v9084_v10  ;;  %v5590_v12 = vld [vmem:[%s13859_s9] sm:$0xff]  ;;  %v7352_v11 = vld [vmem:[%s13861_s11 + $0x10] sm:$0xff] }
 0x9f6   : > { %4185 = vst.msk [vmem:[#allocation5 + $0x21] sm:$0x7f] %vm2780_vm10, %v4183_v13  ;;  %10196 = vmatmul.mubr.msk.f32.vlgmr.msra.gmra.mrb[24].mxu1 %vm2617_vm9, %v12626_v59  ;;  %v5591_v13 = vld [vmem:[%s13859_s9 + $0x8] sm:$0xff] }
 0x9f7   : > { %11042 = vmatpush3.bf16.msra.mxu1 %v12928_v38  ;;  %10228 = vmatprep.mubr.msk.f32.mxu1 %vm529_vm0, %v4658_v14 }
 0x9f8   : > { %11044 = vmatprep.subr.bf16.mxu1 %v12938_v44 }
 0x9fb   : > { %11046 = vmatpush3.bf16.msra.mxu1 %v12938_v44 }
 0x9fc   : > { %11048 = vmatprep.subr.bf16.mxu1 %v12950_v47 }
 0x9fe   : > { %10229 = vmatmul.mubr.msk.f32.vlgmr.msra.gmra.mrb[26].mxu1 %vm529_vm0, %v4659_v15 }
 0x9ff   : > { %v10183_v17 = vpop.f32.mrb[22].mxu1  ;;  %11050 = vmatpush3.bf16.msra.mxu1 %v12950_v47  ;;  %10239 = vmatprep.mubr.msk.f32.mxu1 %vm529_vm0, %v4655_v16 }
 0xa00   : > { %v4495_v18 = vpop.f32.mrb[23].mxu1  ;;  %11052 = vmatprep.subr.bf16.mxu1 %v12960_v29 }
 0xa01   : > { %v11016_v19 = vpack.c.bf16 %v10183_v17, %v4495_v18 }
 0xa03   : > { %11018 = vmatpush3.bf16.msk.msra.mxu0 %vm12974_vm8, %v11016_v19  ;;  %11054 = vmatpush3.bf16.msra.mxu1 %v12960_v29 }
 0xa04   : > { %11024 = vmatprep.subr.bf16.mxu0 %v12889_v53  ;;  %11059 = vmatprep.subr.bf16.mxu1 %v11598_v30 }
 0xa06   : > { %10189 = vmatmul.mubr.msk.f32.vlgmr.msra.gmra.mrb[12].mxu0 %vm2617_vm9, %v12635_v0  ;;  %10240 = vmatmul.mubr.msk.f32.vlgmr.msra.gmra.mrb[26].mxu1 %vm529_vm0, %v4656_v20 }
 0xa07   : > { %11026 = vmatpush3.bf16.msra.mxu0 %v12889_v53  ;;  %10206 = vmatprep.mubr.msk.f32.mxu0 %vm529_vm0, %v4658_v14  ;;  %v13308_v14 = vpack.c.bf16 %v5591_v13, %v5590_v12 }
 0xa08   : > { %11028 = vmatprep.subr.bf16.mxu0 %v12894_v63  ;;  %10253 = vmatprep.mubr.msk.f32.mxu1 %vm11599_vm5, %v11588_v1 }
 0xa0b   : > { %11030 = vmatpush3.bf16.msra.mxu0 %v12894_v63 }
 0xa0c   : > { %11032 = vmatprep.subr.bf16.mxu0 %v12906_v25 }
 0xa0e   : > { %10207 = vmatmul.mubr.msk.f32.vlgmr.msra.gmra.mrb[14].mxu0 %vm529_vm0, %v4659_v15  ;;  %v5592_v15 = vld [vmem:[%s13859_s9 + $0x10] sm:$0xff] }
 0xa0f   : > { %11034 = vmatpush3.bf16.msra.mxu0 %v12906_v25  ;;  %10217 = vmatprep.mubr.msk.f32.mxu0 %vm529_vm0, %v4655_v16  ;;  %v5593_v16 = vld [vmem:[%s13859_s9 + $0x18] sm:$0xff] }
 0xa10   : > { %11036 = vmatprep.subr.bf16.mxu0 %v12916_v34  ;;  %v13319_v17 = vpack.c.bf16 %v5593_v16, %v5592_v15  ;;  %v9117_v15 = vld [vmem:[%s13861_s11 + $0x28] sm:$0xff] }
 0xa13   : > { %11038 = vmatpush3.bf16.msra.mxu0 %v12916_v34 }
 0xa14   : > { %11055 = vmatprep.subr.bf16.mxu0 %v11598_v30 }
 0xa16   : > { %10218 = vmatmul.mubr.msk.f32.vlgmr.msra.gmra.mrb[14].mxu0 %vm529_vm0, %v4656_v20 }
 0xa17   : > { %10246 = vmatprep.mubr.msk.f32.mxu0 %vm11599_vm5, %v11588_v1 }
 0xac9   : > { %v4646_v21 = vpop.f32.mrb[24].mxu1 }
 0xaca   : > { %v10197_v22 = vpop.f32.mrb[25].mxu1 }
 0xad9   : > { %v4573_v23 = vpop.f32.mrb[12].mxu0  ;;  %v10241_v24 = vpop.f32.mrb[26].mxu1 }
 0xada   : > { %v4647_v52 = vadd.f32 %v4646_v21, %v4573_v23  ;;  %v10190_v54 = vpop.f32.mrb[13].mxu0  ;;  %v4963_v55 = vpop.f32.mrb[27].mxu1 }
 0xadb   : > { %v11056_v62 = vpack.c.bf16 %v10241_v24, %v4963_v55  ;;  %v6053_v55 = vld [vmem:[#allocation5 + $0x18] sm:$0xff] }
 0xadc   : > { %v4650_v2 = vadd.f32 %v13019_v4, %v4647_v52 }
 0xadd   : > { %11058 = vmatpush3.bf16.msk.msra.mxu0 %vm12974_vm8, %v11056_v62 }
 0xade   : > { %v4651_v26 = vmax.f32 %v4650_v2, 0.0  ;;  %11064 = vmatprep.subr.bf16.mxu0 %v12889_v53  ;;  %v6052_v2 = vld [vmem:[#allocation5 + $0x10] sm:$0xff] }
 0xae0   : > { %4653 = vst.msk [vmem:[#allocation5 + $0x29] sm:$0x7f] %vm2780_vm10, %v4651_v26  ;;  %10247 = vmatmul.mubr.msk.f32.vlgmr.msra.gmra.mrb[16].mxu0 %vm2617_vm9, %v12635_v0 }
 0xae1   : > { %11066 = vmatpush3.bf16.msra.mxu0 %v12889_v53  ;;  %10264 = vmatprep.mubr.msk.f32.mxu0 %vm529_vm0, %v5126_v27 }
 0xae2   : > { %11068 = vmatprep.subr.bf16.mxu0 %v12894_v63 }
 0xae5   : > { %11070 = vmatpush3.bf16.msra.mxu0 %v12894_v63  ;;  %v5124_v63 = vld [vmem:[#allocation4 + $0xc8] sm:$0x3f] }
 0xae6   : > { %11072 = vmatprep.subr.bf16.mxu0 %v12906_v25 }
 0xae8   : > { %10265 = vmatmul.mubr.msk.f32.vlgmr.msra.gmra.mrb[18].mxu0 %vm529_vm0, %v5127_v28 }
 0xae9   : > { %v10219_v36 = vpop.f32.mrb[14].mxu0  ;;  %11074 = vmatpush3.bf16.msra.mxu0 %v12906_v25  ;;  %10275 = vmatprep.mubr.msk.f32.mxu0 %vm529_vm0, %v5123_v35 }
 0xaea   : > { %v4813_v37 = vpop.f32.mrb[15].mxu0  ;;  %11076 = vmatprep.subr.bf16.mxu0 %v12916_v34 }
 0xaeb   : > { %v11060_v53 = vpack.c.bf16 %v10219_v36, %v4813_v37 }
 0xaed   : > { %11062 = vmatpush3.bf16.msk.msra.mxu1 %vm12974_vm8, %v11060_v53  ;;  %11078 = vmatpush3.bf16.msra.mxu0 %v12916_v34 }
 0xaee   : > { %11080 = vmatprep.subr.bf16.mxu1 %v12928_v38  ;;  %11095 = vmatprep.subr.bf16.mxu0 %v11598_v30 }
 0xaf0   : > { %10254 = vmatmul.mubr.msk.f32.vlgmr.msra.gmra.mrb[28].mxu1 %vm2617_vm9, %v12626_v59  ;;  %10276 = vmatmul.mubr.msk.f32.vlgmr.msra.gmra.mrb[18].mxu0 %vm529_vm0, %v5124_v63 }
 0xaf1   : > { %11082 = vmatpush3.bf16.msra.mxu1 %v12928_v38  ;;  %10286 = vmatprep.mubr.msk.f32.mxu1 %vm529_vm0, %v5126_v27 }
 0xaf2   : > { %11084 = vmatprep.subr.bf16.mxu1 %v12938_v44  ;;  %10304 = vmatprep.mubr.msk.f32.mxu0 %vm11599_vm5, %v11588_v1 }
 0xaf5   : > { %11086 = vmatpush3.bf16.msra.mxu1 %v12938_v44 }
 0xaf6   : > { %11088 = vmatprep.subr.bf16.mxu1 %v12950_v47 }
 0xaf8   : > { %10287 = vmatmul.mubr.msk.f32.vlgmr.msra.gmra.mrb[30].mxu1 %vm529_vm0, %v5127_v28  ;;  %v13372_v28 = vld [vmem:[%s13860_s10] ss:$0 sm:$0xff] }
 0xaf9   : > { %11090 = vmatpush3.bf16.msra.mxu1 %v12950_v47  ;;  %10297 = vmatprep.mubr.msk.f32.mxu1 %vm529_vm0, %v5123_v35 }
 0xafa   : > { %11092 = vmatprep.subr.bf16.mxu1 %v12960_v29 }
 0xafd   : > { %11094 = vmatpush3.bf16.msra.mxu1 %v12960_v29  ;;  %v9087_v29 = vld [vmem:[%s13859_s9 + $0x68] sm:$0xff] }
 0xafe   : > { %11099 = vmatprep.subr.bf16.mxu1 %v11598_v30  ;;  %v13230_v51 = vpack.c.bf16 %v9087_v29, %v9086_v43 }
 0xb00   : > { %10298 = vmatmul.mubr.msk.f32.vlgmr.msra.gmra.mrb[30].mxu1 %vm529_vm0, %v5124_v63 }
 0xb01   : > { %10311 = vmatprep.mubr.msk.f32.mxu1 %vm11599_vm5, %v11588_v1 }
 0xbb3   : > { %v5041_v25 = vpop.f32.mrb[16].mxu0 }
 0xbb4   : > { %v10248_v34 = vpop.f32.mrb[17].mxu0 }
 0xbc3   : > { %v5114_v38 = vpop.f32.mrb[28].mxu1  ;;  %v10277_v44 = vpop.f32.mrb[18].mxu0 }
 0xbc4   : > { %v5115_v39 = vadd.f32 %v5114_v38, %v5041_v25  ;;  %v10255_v42 = vpop.f32.mrb[29].mxu1  ;;  %v5281_v47 = vpop.f32.mrb[19].mxu0  ;;  %v6485_v38 = vld [vmem:[#allocation5 + $0x28] sm:$0xff] }
 0xbc5   : > { %v11100_v45 = vpack.c.bf16 %v10277_v44, %v5281_v47 }
 0xbc6   : > { %v5118_v46 = vadd.f32 %v13019_v4, %v5115_v39  ;;  %v6484_v39 = vld [vmem:[#allocation5 + $0x20] sm:$0xff] }
 0xbc7   : > { %11102 = vmatpush3.bf16.msk.msra.mxu1 %vm12974_vm8, %v11100_v45 }
 0xbc8   : > { %v5119_v3 = vmax.f32 %v5118_v46, 0.0  ;;  %11115 = vmatprep.subr.bf16.mxu1 %v11598_v30 }
 0xbca   : > { %5121 = vst.msk [vmem:[#allocation5 + $0x31] sm:$0x7f] %vm2780_vm10, %v5119_v3  ;;  %10312 = vmatmul.mubr.msk.f32.vlgmr.msra.gmra.mrb[32].mxu1 %vm2617_vm9, %v12626_v59 }
 0xbcb   : > { %11117 = vmatpush3.bf16.msra.mxu1 %v13230_v51  ;;  %10344 = vmatprep.mubr.msk.f32.mxu1 %vm11599_vm5, %v11588_v1 }
 0xbcc   : > { %11118 = vmatprep.subr.bf16.mxu1 %v11598_v30 }
 0xbcf   : > { %11120 = vmatpush3.bf16.msra.mxu1 %v13243_v40 }
 0xbd0   : > { %11121 = vmatprep.subr.bf16.mxu1 %v11598_v30 }
 0xbd1   : > { %v6916_v56 = vld [vmem:[#allocation5 + $0x30] sm:$0xff] }
 0xbd2   : > { %10345 = vmatmul.mubr.msk.f32.vlgmr.msra.gmra.mrb[34].mxu1 %vm529_vm0, %v5611_v57 }
 0xbd3   : > { %v10299_v58 = vpop.f32.mrb[30].mxu1  ;;  %11123 = vmatpush3.bf16.msra.mxu1 %v13255_v49  ;;  %10355 = vmatprep.mubr.msk.f32.mxu1 %vm11599_vm5, %v11588_v1 }
 0xbd4   : > { %v5431_v61 = vpop.f32.mrb[31].mxu1  ;;  %11124 = vmatprep.subr.bf16.mxu1 %v11598_v30 }
 0xbd5   : > { %v11096_v7 = vpack.c.bf16 %v10299_v58, %v5431_v61 }
 0xbd7   : > { %11098 = vmatpush3.bf16.msk.msra.mxu0 %vm12974_vm8, %v11096_v7  ;;  %11126 = vmatpush3.bf16.msra.mxu1 %v13266_v60 }
 0xbd8   : > { %11103 = vmatprep.subr.bf16.mxu0 %v11598_v30  ;;  %10363 = vmatprep.subr.mxu1 %v11588_v1 }
 0xbda   : > { %10305 = vmatmul.mubr.msk.f32.vlgmr.msra.gmra.mrb[20].mxu0 %vm2617_vm9, %v12635_v0  ;;  %10356 = vmatmul.mubr.msk.f32.vlgmr.msra.gmra.mrb[34].mxu1 %vm529_vm0, %v5610_v8 }
 0xbdb   : > { %11105 = vmatpush3.bf16.msra.mxu0 %v13280_v9  ;;  %10322 = vmatprep.mubr.msk.f32.mxu0 %vm11599_vm5, %v11588_v1 }
 0xbdc   : > { %11106 = vmatprep.subr.bf16.mxu0 %v11598_v30  ;;  %10365 = vmatprep.mubr.msk.f32.mxu1 %vm11599_vm5, %v11588_v1 }
 0xbdf   : > { %11108 = vmatpush3.bf16.msra.mxu0 %v13294_v33 }
 0xbe0   : > { %11109 = vmatprep.subr.bf16.mxu0 %v11598_v30 }
 0xbe2   : > { %10323 = vmatmul.mubr.msk.f32.vlgmr.msra.gmra.mrb[22].mxu0 %vm529_vm0, %v5611_v57 }
 0xbe3   : > { %11111 = vmatpush3.bf16.msra.mxu0 %v13308_v14  ;;  %10333 = vmatprep.mubr.msk.f32.mxu0 %vm11599_vm5, %v11588_v1 }
 0xbe4   : > { %11112 = vmatprep.subr.bf16.mxu0 %v11598_v30 }
 0xbe7   : > { %11114 = vmatpush3.bf16.msra.mxu0 %v13319_v17 }
 0xbe8   : > { %10358 = vmatprep.subr.mxu0 %v11588_v1 }
 0xbea   : > { %10334 = vmatmul.mubr.msk.f32.vlgmr.msra.gmra.mrb[22].mxu0 %vm529_vm0, %v5610_v8  ;;  %v7350_v8 = vld [vmem:[%s13861_s11] sm:$0xff] }
 0xbeb   : > { %10360 = vmatprep.mubr.msk.f32.mxu0 %vm11599_vm5, %v11588_v1 }
 0xc9d   : > { %v5582_v18 = vpop.f32.mrb[32].mxu1 }
 0xc9e   : > { %v10313_v19 = vpop.f32.mrb[33].mxu1 }
 0xcad   : > { %v5509_v20 = vpop.f32.mrb[20].mxu0  ;;  %v5894_v21 = vpop.f32.mrb[34].mxu1 }
 0xcae   : > { %v5583_v22 = vadd.f32 %v5582_v18, %v5509_v20  ;;  %v10306_v23 = vpop.f32.mrb[21].mxu0  ;;  %v10357_v24 = vpop.f32.mrb[35].mxu1  ;;  %10359 = vmatpush3.msra.mxu0 %v5894_v21  ;;  %v9121_v20 = vld [vmem:[%s13861_s11 + $0x40] sm:$0xff]  ;;  %v9122_v21 = vld [vmem:[%s13861_s11 + $0x48] sm:$0xff] }
 0xcaf   : > { %11127 = vmatprep.subr.bf16.mxu0 %v11598_v30  ;;  %10361 = vmatmul.mubr.msk.f32.vlgmr.msra.gmra.mrb[24].mxu0 %vm5898_vm11, %v12635_v0  ;;  %v9123_v23 = vld [vmem:[%s13861_s11 + $0x50] sm:$0xff]  ;;  %v9124_v24 = vld [vmem:[%s13861_s11 + $0x58] sm:$0xff] }
 0xcb0   : > { %v5586_v52 = vadd.f32 %v13019_v4, %v5583_v22  ;;  %11129 = vmatpush3.bf16.msra.mxu0 %v13280_v9  ;;  %10376 = vmatprep.mubr.msk.f32.mxu0 %vm11599_vm5, %v11588_v1  ;;  %v11212_v22 = vpack.c.bf16 %v9122_v21, %v9121_v20 }
 0xcb1   : > { %11130 = vmatprep.subr.bf16.mxu0 %v11598_v30 }
 0xcb2   : > { %v5587_v54 = vmax.f32 %v5586_v52, 0.0 }
 0xcb4   : > { %5589 = vst.msk [vmem:[#allocation5 + $0x39] sm:$0x7f] %vm2780_vm10, %v5587_v54  ;;  %11132 = vmatpush3.bf16.msra.mxu0 %v13294_v33  ;;  %v11215_v54 = vpack.c.bf16 %v9124_v24, %v9123_v23  ;;  %v9167_v23 = vld [vmem:[%s13861_s11 + $0x168] sm:$0xff] }
 0xcb5   : > { %11133 = vmatprep.subr.bf16.mxu0 %v11598_v30 }
 0xcb7   : > { %10377 = vmatmul.mubr.msk.f32.vlgmr.msra.gmra.mrb[26].mxu0 %vm529_vm0, %v6053_v55 }
 0xcb8   : > { %11135 = vmatpush3.bf16.msra.mxu0 %v13308_v14  ;;  %10387 = vmatprep.mubr.msk.f32.mxu0 %vm11599_vm5, %v11588_v1 }
 0xcb9   : > { %11136 = vmatprep.subr.bf16.mxu0 %v11598_v30 }
 0xcbb   : > { %v6917_v48 = vld [vmem:[#allocation5 + $0x38] sm:$0xff] }
 0xcbc   : > { %11138 = vmatpush3.bf16.msra.mxu0 %v13319_v17 }
 0xcbd   : > { %v5754_v4 = vpop.f32.mrb[22].mxu0  ;;  %10412 = vmatprep.subr.mxu0 %v11588_v1 }
 0xcbe   : > { %v10335_v62 = vpop.f32.mrb[23].mxu0  ;;  %10364 = vmatpush3.msra.mxu1 %v5754_v4  ;;  %v9127_v4 = vld [vmem:[%s13861_s11 + $0x68] sm:$0xff] }
 0xcbf   : > { %10366 = vmatmul.mubr.msk.f32.vlgmr.msra.gmra.mrb[36].mxu1 %vm5898_vm11, %v12626_v59  ;;  %10388 = vmatmul.mubr.msk.f32.vlgmr.msra.gmra.mrb[26].mxu0 %vm529_vm0, %v6052_v2 }
 0xcc0   : > { %11139 = vmatprep.subr.bf16.mxu1 %v11598_v30  ;;  %10398 = vmatprep.mubr.msk.f32.mxu1 %vm11599_vm5, %v11588_v1 }
 0xcc1   : > { %11141 = vmatpush3.bf16.msra.mxu1 %v13230_v51  ;;  %10414 = vmatprep.mubr.msk.f32.mxu0 %vm11599_vm5, %v11588_v1 }
 0xcc2   : > { %11142 = vmatprep.subr.bf16.mxu1 %v11598_v30 }
 0xcc5   : > { %11144 = vmatpush3.bf16.msra.mxu1 %v13243_v40 }
 0xcc6   : > { %11145 = vmatprep.subr.bf16.mxu1 %v11598_v30 }
 0xcc8   : > { %10399 = vmatmul.mubr.msk.f32.vlgmr.msra.gmra.mrb[38].mxu1 %vm529_vm0, %v6053_v55  ;;  %v9126_v55 = vld [vmem:[%s13861_s11 + $0x60] sm:$0xff] }
 0xcc9   : > { %11147 = vmatpush3.bf16.msra.mxu1 %v13255_v49  ;;  %10409 = vmatprep.mubr.msk.f32.mxu1 %vm11599_vm5, %v11588_v1  ;;  %v11218_v62 = vpack.c.bf16 %v9127_v4, %v9126_v55 }
 0xcca   : > { %11148 = vmatprep.subr.bf16.mxu1 %v11598_v30 }
 0xccd   : > { %11150 = vmatpush3.bf16.msra.mxu1 %v13266_v60 }
 0xcce   : > { %10417 = vmatprep.subr.mxu1 %v11588_v1 }
 0xcd0   : > { %10410 = vmatmul.mubr.msk.f32.vlgmr.msra.gmra.mrb[38].mxu1 %vm529_vm0, %v6052_v2  ;;  %v9128_v2 = vld [vmem:[%s13861_s11 + $0x70] sm:$0xff] }
 0xcd1   : > { %10419 = vmatprep.mubr.msk.f32.mxu1 %vm11599_vm5, %v11588_v1 }
 0xd82   : > { %v5967_v26 = vpop.f32.mrb[24].mxu0 }
 0xd83   : > { %v10362_v27 = vpop.f32.mrb[25].mxu0 }
 0xd92   : > { %v6039_v35 = vpop.f32.mrb[36].mxu1  ;;  %v6196_v36 = vpop.f32.mrb[26].mxu0 }
 0xd93   : > { %v6040_v37 = vadd.f32 %v6039_v35, %v5967_v26  ;;  %v10367_v53 = vpop.f32.mrb[37].mxu1  ;;  %v10389_v63 = vpop.f32.mrb[27].mxu0  ;;  %10418 = vmatpush3.msra.mxu1 %v6196_v36  ;;  %v9129_v26 = vld [vmem:[%s13861_s11 + $0x78] sm:$0xff]  ;;  %v9131_v36 = vld [vmem:[%s13861_s11 + $0x80] sm:$0xff] }
 0xd94   : > { %11163 = vmatprep.subr.bf16.mxu1 %v11598_v30  ;;  %10420 = vmatmul.mubr.msk.f32.vlgmr.msra.gmra.mrb[40].mxu1 %vm5898_vm11, %v12626_v59  ;;  %v11221_v35 = vpack.c.bf16 %v9129_v26, %v9128_v2  ;;  %v9133_v63 = vld [vmem:[%s13861_s11 + $0x90] sm:$0xff]  ;;  %v9172_v2 = vld [vmem:[%s13861_s11 + $0x188] sm:$0xff] }
 0xd95   : > { %v6049_v25 = vadd.f32 %v13372_v28, %v6040_v37  ;;  %11165 = vmatpush3.bf16.msra.mxu1 %v13230_v51  ;;  %10452 = vmatprep.mubr.msk.f32.mxu1 %vm11599_vm5, %v11588_v1  ;;  %v9132_v37 = vld [vmem:[%s13861_s11 + $0x88] sm:$0xff] }
 0xd96   : > { %11166 = vmatprep.subr.bf16.mxu1 %v11598_v30  ;;  %v11224_v53 = vpack.c.bf16 %v9132_v37, %v9131_v36 }
 0xd97   : > { %v6050_v34 = vmax.f32 %v6049_v25, 0.0  ;;  %v9134_v25 = vld [vmem:[%s13861_s11 + $0x98] sm:$0xff] }
 0xd99   : > { %6051 = vst.msk [vmem:[#allocation6] sm:$0xf] %vm535_vm1, %v6050_v34  ;;  %11168 = vmatpush3.bf16.msra.mxu1 %v13243_v40 }
 0xd9a   : > { %11169 = vmatprep.subr.bf16.mxu1 %v11598_v30 }
 0xd9c   : > { %10453 = vmatmul.mubr.msk.f32.vlgmr.msra.gmra.mrb[42].mxu1 %vm529_vm0, %v6485_v38 }
 0xd9d   : > { %11171 = vmatpush3.bf16.msra.mxu1 %v13255_v49  ;;  %10463 = vmatprep.mubr.msk.f32.mxu1 %vm11599_vm5, %v11588_v1 }
 0xd9e   : > { %11172 = vmatprep.subr.bf16.mxu1 %v11598_v30 }
 0xda0   : > { %v7349_v18 = vld [vmem:[#allocation6] sm:$0x1]  ;;  %v7428_v52 = vld [vmem:[#allocation6 + $0x1] sm:$0x1]  ;;  %v7508_v27 = vld [vmem:[#allocation6 + $0x2] sm:$0x1] }
 0xda1   : > { %11174 = vmatpush3.bf16.msra.mxu1 %v13266_v60  ;;  %v7588_v34 = vld [vmem:[#allocation6 + $0x3] sm:$0x1] }
 0xda2   : > { %10471 = vmatprep.subr.mxu1 %v11588_v1 }
 0xda3   : > { %v6336_v44 = vpop.f32.mrb[38].mxu1 }
 0xda4   : > { %v10411_v42 = vpop.f32.mrb[39].mxu1  ;;  %10413 = vmatpush3.msra.mxu0 %v6336_v44  ;;  %10464 = vmatmul.mubr.msk.f32.vlgmr.msra.gmra.mrb[42].mxu1 %vm529_vm0, %v6484_v39  ;;  %v9136_v44 = vld [vmem:[%s13861_s11 + $0xa0] sm:$0xff] }
 0xda5   : > { %10415 = vmatmul.mubr.msk.f32.vlgmr.msra.gmra.mrb[28].mxu0 %vm5898_vm11, %v12635_v0  ;;  %11151 = vmatprep.subr.bf16.mxu0 %v11598_v30 }
 0xda6   : > { %11153 = vmatpush3.bf16.msra.mxu0 %v13280_v9  ;;  %10430 = vmatprep.mubr.msk.f32.mxu0 %vm11599_vm5, %v11588_v1 }
 0xda7   : > { %11154 = vmatprep.subr.bf16.mxu0 %v11598_v30  ;;  %10473 = vmatprep.mubr.msk.f32.mxu1 %vm11599_vm5, %v11588_v1 }
 0xdaa   : > { %11156 = vmatpush3.bf16.msra.mxu0 %v13294_v33 }
 0xdab   : > { %11157 = vmatprep.subr.bf16.mxu0 %v11598_v30 }
 0xdad   : > { %10431 = vmatmul.mubr.msk.f32.vlgmr.msra.gmra.mrb[30].mxu0 %vm529_vm0, %v6485_v38  ;;  %v11227_v38 = vpack.c.bf16 %v9134_v25, %v9133_v63  ;;  %v8630_v63 = vld [vmem:[%s13863_s13 + $0x8] sm:$0xff]  ;;  %v8631_v25 = vld [vmem:[%s13863_s13 + $0x10] sm:$0xff] }
 0xdae   : > { %11159 = vmatpush3.bf16.msra.mxu0 %v13308_v14  ;;  %10441 = vmatprep.mubr.msk.f32.mxu0 %vm11599_vm5, %v11588_v1 }
 0xdaf   : > { %11160 = vmatprep.subr.bf16.mxu0 %v11598_v30 }
 0xdb2   : > { %11162 = vmatpush3.bf16.msra.mxu0 %v13319_v17 }
 0xdb3   : > { %10466 = vmatprep.subr.mxu0 %v11588_v1 }
 0xdb5   : > { %10442 = vmatmul.mubr.msk.f32.vlgmr.msra.gmra.mrb[30].mxu0 %vm529_vm0, %v6484_v39  ;;  %v9137_v39 = vld [vmem:[%s13861_s11 + $0xa8] sm:$0xff] }
 0xdb6   : > { %10468 = vmatprep.mubr.msk.f32.mxu0 %vm11599_vm5, %v11588_v1  ;;  %v11230_v42 = vpack.c.bf16 %v9137_v39, %v9136_v44  ;;  %v8633_v39 = vld [vmem:[%s13863_s13 + $0x20] sm:$0xff] }
 0xe67   : > { %v6476_v47 = vpop.f32.mrb[40].mxu1 }
 0xe68   : > { %v10421_v43 = vpop.f32.mrb[41].mxu1 }
 0xe69   : > { %v9139_v43 = vld [vmem:[%s13861_s11 + $0xb8] sm:$0xff] }
 0xe77   : > { %v6768_v29 = vpop.f32.mrb[42].mxu1 }
 0xe78   : > { %v6406_v45 = vpop.f32.mrb[28].mxu0  ;;  %v10465_v46 = vpop.f32.mrb[43].mxu1  ;;  %10467 = vmatpush3.msra.mxu0 %v6768_v29 }
 0xe79   : > { %v6477_v3 = vadd.f32 %v6476_v47, %v6406_v45  ;;  %v10416_v31 = vpop.f32.mrb[29].mxu0  ;;  %11175 = vmatprep.subr.bf16.mxu0 %v11598_v30  ;;  %10469 = vmatmul.mubr.msk.f32.vlgmr.msra.gmra.mrb[32].mxu0 %vm5898_vm11, %v12635_v0  ;;  %v9138_v47 = vld [vmem:[%s13861_s11 + $0xb0] sm:$0xff]  ;;  %v9141_v46 = vld [vmem:[%s13861_s11 + $0xc0] sm:$0xff] }
 0xe7a   : > { %11177 = vmatpush3.bf16.msra.mxu0 %v13280_v9  ;;  %10484 = vmatprep.mubr.msk.f32.mxu0 %vm11599_vm5, %v11588_v1  ;;  %v7351_v9 = vld [vmem:[%s13861_s11 + $0x8] sm:$0xff]  ;;  %v11233_v45 = vpack.c.bf16 %v9139_v43, %v9138_v47  ;;  %v8635_v43 = vld [vmem:[%s13863_s13 + $0x30] sm:$0xff] }
 0xe7b   : > { %v6480_v32 = vadd.f32 %v13372_v28, %v6477_v3  ;;  %11178 = vmatprep.subr.bf16.mxu0 %v11598_v30  ;;  %v11200_v10 = vpack.c.bf16 %v7351_v9, %v7350_v8  ;;  %v9142_v3 = vld [vmem:[%s13861_s11 + $0xc8] sm:$0xff]  ;;  %v9154_v8 = vld [vmem:[%s13861_s11 + $0x118] sm:$0xff] }
 0xe7c   : > { %v11236_v31 = vpack.c.bf16 %v9142_v3, %v9141_v46  ;;  %v8637_v46 = vld [vmem:[%s13863_s13 + $0x40] sm:$0xff]  ;;  %v8638_v3 = vld [vmem:[%s13863_s13 + $0x48] sm:$0xff] }
 0xe7d   : > { %v6481_v41 = vmax.f32 %v6480_v32, 0.0  ;;  %v9143_v32 = vld [vmem:[%s13861_s11 + $0xd0] sm:$0xff] }
 0xe7e   : > { %11180 = vmatpush3.bf16.msra.mxu0 %v13294_v33  ;;  %v7353_v33 = vld [vmem:[%s13861_s11 + $0x18] sm:$0xff] }
 0xe7f   : > { %6483 = vst.msk [vmem:[#allocation6 + $0x4] sm:$0xf] %vm535_vm1, %v6481_v41  ;;  %11181 = vmatprep.subr.bf16.mxu0 %v11598_v30  ;;  %v11203_v13 = vpack.c.bf16 %v7353_v33, %v7352_v11  ;;  %v9144_v41 = vld [vmem:[%s13861_s11 + $0xd8] sm:$0xff]  ;;  %v9157_v11 = vld [vmem:[%s13861_s11 + $0x128] sm:$0xff] }
 0xe81   : > { %10485 = vmatmul.mubr.msk.f32.vlgmr.msra.gmra.mrb[34].mxu0 %vm529_vm0, %v6917_v48 }
 0xe82   : > { %11183 = vmatpush3.bf16.msra.mxu0 %v13308_v14  ;;  %10495 = vmatprep.mubr.msk.f32.mxu0 %vm11599_vm5, %v11588_v1  ;;  %v9116_v14 = vld [vmem:[%s13861_s11 + $0x20] sm:$0xff] }
 0xe83   : > { %11184 = vmatprep.subr.bf16.mxu0 %v11598_v30  ;;  %v11206_v16 = vpack.c.bf16 %v9117_v15, %v9116_v14 }
 0xe86   : > { %11186 = vmatpush3.bf16.msra.mxu0 %v13319_v17  ;;  %v9119_v17 = vld [vmem:[%s13861_s11 + $0x38] sm:$0xff]  ;;  %v7668_v29 = vld [vmem:[#allocation6 + $0x4] sm:$0x1]  ;;  %v7908_v9 = vld [vmem:[#allocation6 + $0x7] sm:$0x1] }
 0xe87   : > { %10520 = vmatprep.subr.mxu0 %v11588_v1 }
 0xe88   : > { %v6628_v50 = vpop.f32.mrb[30].mxu0 }
 0xe89   : > { %v10443_v57 = vpop.f32.mrb[31].mxu0  ;;  %10472 = vmatpush3.msra.mxu1 %v6628_v50  ;;  %10496 = vmatmul.mubr.msk.f32.vlgmr.msra.gmra.mrb[34].mxu0 %vm529_vm0, %v6916_v56  ;;  %v11239_v50 = vpack.c.bf16 %v9144_v41, %v9143_v32  ;;  %v8639_v32 = vld [vmem:[%s13863_s13 + $0x50] sm:$0xff]  ;;  %v8640_v41 = vld [vmem:[%s13863_s13 + $0x58] sm:$0xff] }
 0xe8a   : > { %10474 = vmatmul.mubr.msk.f32.vlgmr.msra.gmra.mrb[44].mxu1 %vm5898_vm11, %v12626_v59  ;;  %11187 = vmatprep.subr.bf16.mxu1 %v11598_v30  ;;  %v9147_v57 = vld [vmem:[%s13861_s11 + $0xe8] sm:$0xff] }
 0xe8b   : > { %11189 = vmatpush3.bf16.msra.mxu1 %v13230_v51  ;;  %10506 = vmatprep.mubr.msk.f32.mxu1 %vm11599_vm5, %v11588_v1 }
 0xe8c   : > { %11190 = vmatprep.subr.bf16.mxu1 %v11598_v30  ;;  %10522 = vmatprep.mubr.msk.f32.mxu0 %vm11599_vm5, %v11588_v1 }
 0xe8f   : > { %11192 = vmatpush3.bf16.msra.mxu1 %v13243_v40 }
 0xe90   : > { %11193 = vmatprep.subr.bf16.mxu1 %v11598_v30 }
 0xe92   : > { %10507 = vmatmul.mubr.msk.f32.vlgmr.msra.gmra.mrb[46].mxu1 %vm529_vm0, %v6917_v48  ;;  %v7748_v48 = vld [vmem:[#allocation6 + $0x5] sm:$0x1] }
 0xe93   : > { %11195 = vmatpush3.bf16.msra.mxu1 %v13255_v49  ;;  %10517 = vmatprep.mubr.msk.f32.mxu1 %vm11599_vm5, %v11588_v1 }
 0xe94   : > { %11196 = vmatprep.subr.bf16.mxu1 %v11598_v30 }
 0xe97   : > { %11198 = vmatpush3.bf16.msra.mxu1 %v13266_v60 }
 0xe98   : > { %10525 = vmatprep.subr.mxu1 %v11588_v1 }
 0xe9a   : > { %10518 = vmatmul.mubr.msk.f32.vlgmr.msra.gmra.mrb[46].mxu1 %vm529_vm0, %v6916_v56  ;;  %v9146_v56 = vld [vmem:[%s13861_s11 + $0xe0] sm:$0xff] }
 0xe9b   : > { %10527 = vmatprep.mubr.msk.f32.mxu1 %vm11599_vm5, %v11588_v1 }
 0xf4c   : > { %v6838_v51 = vpop.f32.mrb[32].mxu0 }
 0xf4d   : > { %v10470_v40 = vpop.f32.mrb[33].mxu0 }
 0xf4e   : > { %v9148_v40 = vld [vmem:[%s13861_s11 + $0xf0] sm:$0xff] }
 0xf5c   : > { %v7060_v58 = vpop.f32.mrb[34].mxu0 }
 0xf5d   : > { %v6908_v61 = vpop.f32.mrb[44].mxu1  ;;  %v10497_v5 = vpop.f32.mrb[35].mxu0  ;;  %10526 = vmatpush3.msra.mxu1 %v7060_v58  ;;  %v9149_v58 = vld [vmem:[%s13861_s11 + $0xf8] sm:$0xff] }
 0xf5e   : > { %v6909_v49 = vadd.f32 %v6908_v61, %v6838_v51  ;;  %v10475_v6 = vpop.f32.mrb[45].mxu1  ;;  %10528 = vmatmul.mubr.msk.f32.vlgmr.msra.gmra.mrb[48].mxu1 %vm5898_vm11, %v12626_v59  ;;  %11295 = vmatprep.subr.bf16.mxu1 %v11598_v30  ;;  %v11242_v51 = vpack.c.bf16 %v9147_v57, %v9146_v56  ;;  %v7828_v61 = vld [vmem:[#allocation6 + $0x6] sm:$0x1]  ;;  %v11245_v5 = vpack.c.bf16 %v9149_v58, %v9148_v40 }
 0xf5f   : > { %10736 = vmatprep.mubr.msk.f32.mxu1 %vm11599_vm5, %v11588_v1  ;;  %v9152_v6 = vld [vmem:[%s13861_s11 + $0x108] sm:$0xff] }
 0xf60   : > { %v6912_v60 = vadd.f32 %v13372_v28, %v6909_v49  ;;  %v9151_v49 = vld [vmem:[%s13861_s11 + $0x100] sm:$0xff] }
 0xf62   : > { %v6913_v7 = vmax.f32 %v6912_v60, 0.0  ;;  %v11248_v60 = vpack.c.bf16 %v9152_v6, %v9151_v49  ;;  %v9177_v49 = vld [vmem:[%s13861_s11 + $0x1a8] sm:$0xff] }
 0xf64   : > { %6915 = vst.msk [vmem:[#allocation6 + $0x8] sm:$0xf] %vm535_vm1, %v6913_v7  ;;  %v9153_v7 = vld [vmem:[%s13861_s11 + $0x110] sm:$0xff] }
 0xf6b   : > { %v7988_v14 = vld [vmem:[#allocation6 + $0x8] sm:$0x1]  ;;  %v8068_v20 = vld [vmem:[#allocation6 + $0x9] sm:$0x1]  ;;  %v8148_v55 = vld [vmem:[#allocation6 + $0xa] sm:$0x1] }
 0xf6c   : > { %v8228_v36 = vld [vmem:[#allocation6 + $0xb] sm:$0x1] }
 0xf6d   : > { %v7200_v59 = vpop.f32.mrb[46].mxu1 }
 0xf6e   : > { %v10519_v12 = vpop.f32.mrb[47].mxu1  ;;  %10521 = vmatpush3.msra.mxu0 %v7200_v59  ;;  %v9156_v59 = vld [vmem:[%s13861_s11 + $0x120] sm:$0xff] }
 0xf6f   : > { %10523 = vmatmul.mubr.msk.f32.vlgmr.msra.gmra.mrb[36].mxu0 %vm5898_vm11, %v12635_v0  ;;  %11199 = vmatprep.subr.bf16.mxu0 %v11598_v30  ;;  %v9118_v0 = vld [vmem:[%s13861_s11 + $0x30] sm:$0xff]  ;;  %v11254_v33 = vpack.c.bf16 %v9157_v11, %v9156_v59 }
 0xf70   : > { %11201 = vmatpush3.bf16.msra.mxu0 %v11200_v10  ;;  %10538 = vmatprep.mubr.msk.f32.mxu0 %vm11599_vm5, %v11588_v1  ;;  %v11209_v19 = vpack.c.bf16 %v9119_v17, %v9118_v0  ;;  %v11251_v10 = vpack.c.bf16 %v9154_v8, %v9153_v7  ;;  %v9158_v12 = vld [vmem:[%s13861_s11 + $0x130] sm:$0xff]  ;;  %v9162_v0 = vld [vmem:[%s13861_s11 + $0x148] sm:$0xff] }
 0xf71   : > { %11202 = vmatprep.subr.bf16.mxu0 %v11598_v30  ;;  %v9183_v11 = vld [vmem:[%s13861_s11 + $0x1d0] sm:$0xff] }
 0xf74   : > { %11204 = vmatpush3.bf16.msra.mxu0 %v11203_v13  ;;  %v9159_v13 = vld [vmem:[%s13861_s11 + $0x138] sm:$0xff] }
 0xf75   : > { %11205 = vmatprep.subr.bf16.mxu0 %v11598_v30  ;;  %v11257_v15 = vpack.c.bf16 %v9159_v13, %v9158_v12 }
 0xf77   : > { %10539 = vmatmul.mubr.msk.f32.vlgmr.msra.gmra.mrb[38].mxu0 %vm529_vm0, %v7349_v18  ;;  %v9163_v18 = vld [vmem:[%s13861_s11 + $0x150] sm:$0xff] }
 0xf78   : > { %11207 = vmatpush3.bf16.msra.mxu0 %v11206_v16  ;;  %10549 = vmatprep.mubr.msk.f32.mxu0 %vm11599_vm5, %v11588_v1  ;;  %v9161_v16 = vld [vmem:[%s13861_s11 + $0x140] sm:$0xff] }
 0xf79   : > { %11208 = vmatprep.subr.bf16.mxu0 %v11598_v30  ;;  %v11260_v17 = vpack.c.bf16 %v9162_v0, %v9161_v16  ;;  %v9188_v0 = vld [vmem:[%s13861_s11 + $0x1f0] sm:$0xff] }
 0xf7c   : > { %11210 = vmatpush3.bf16.msra.mxu0 %v11209_v19  ;;  %v9164_v19 = vld [vmem:[%s13861_s11 + $0x158] sm:$0xff] }
 0xf7d   : > { %11211 = vmatprep.subr.bf16.mxu0 %v11598_v30  ;;  %v11263_v21 = vpack.c.bf16 %v9164_v19, %v9163_v18 }
 0xf7f   : > { %10550 = vmatmul.mubr.msk.f32.vlgmr.msra.gmra.mrb[38].mxu0 %vm529_vm0, %v7428_v52  ;;  %v9168_v52 = vld [vmem:[%s13861_s11 + $0x170] sm:$0xff] }
 0xf80   : > { %11213 = vmatpush3.bf16.msra.mxu0 %v11212_v22  ;;  %10560 = vmatprep.mubr.msk.f32.mxu0 %vm11599_vm5, %v11588_v1  ;;  %v9166_v22 = vld [vmem:[%s13861_s11 + $0x160] sm:$0xff] }
 0xf81   : > { %11214 = vmatprep.subr.bf16.mxu0 %v11598_v30  ;;  %v11266_v24 = vpack.c.bf16 %v9167_v23, %v9166_v22  ;;  %v8642_v22 = vld [vmem:[%s13863_s13 + $0x68] sm:$0xff] }
 0xf84   : > { %11216 = vmatpush3.bf16.msra.mxu0 %v11215_v54  ;;  %v9169_v54 = vld [vmem:[%s13861_s11 + $0x178] sm:$0xff] }
 0xf85   : > { %11217 = vmatprep.subr.bf16.mxu0 %v11598_v30  ;;  %v11269_v4 = vpack.c.bf16 %v9169_v54, %v9168_v52 }
 0xf87   : > { %10561 = vmatmul.mubr.msk.f32.vlgmr.msra.gmra.mrb[38].mxu0 %vm529_vm0, %v7508_v27  ;;  %v9173_v27 = vld [vmem:[%s13861_s11 + $0x190] sm:$0xff] }
 0xf88   : > { %11219 = vmatpush3.bf16.msra.mxu0 %v11218_v62  ;;  %10571 = vmatprep.mubr.msk.f32.mxu0 %vm11599_vm5, %v11588_v1  ;;  %v9171_v62 = vld [vmem:[%s13861_s11 + $0x180] sm:$0xff] }
 0xf89   : > { %11220 = vmatprep.subr.bf16.mxu0 %v11598_v30  ;;  %v11272_v26 = vpack.c.bf16 %v9172_v2, %v9171_v62 }
 0xf8c   : > { %11222 = vmatpush3.bf16.msra.mxu0 %v11221_v35  ;;  %v9174_v35 = vld [vmem:[%s13861_s11 + $0x198] sm:$0xff] }
 0xf8d   : > { %11223 = vmatprep.subr.bf16.mxu0 %v11598_v30  ;;  %v11275_v37 = vpack.c.bf16 %v9174_v35, %v9173_v27 }
 0xf8f   : > { %10572 = vmatmul.mubr.msk.f32.vlgmr.msra.gmra.mrb[38].mxu0 %vm529_vm0, %v7588_v34 }
 0xf90   : > { %11225 = vmatpush3.bf16.msra.mxu0 %v11224_v53  ;;  %10582 = vmatprep.mubr.msk.f32.mxu0 %vm11599_vm5, %v11588_v1  ;;  %v8629_v53 = vld [vmem:[%s13863_s13] sm:$0xff] }
 0xf91   : > { %11226 = vmatprep.subr.bf16.mxu0 %v11598_v30  ;;  %v11296_v34 = vpack.c.bf16 %v8630_v63, %v8629_v53 }
 0xf93   : > { %11297 = vmatpush3.bf16.msra.mxu1 %v11296_v34 }
 0xf94   : > { %11228 = vmatpush3.bf16.msra.mxu0 %v11227_v38  ;;  %v8632_v38 = vld [vmem:[%s13863_s13 + $0x18] sm:$0xff]  ;;  %11298 = vmatprep.subr.bf16.mxu1 %v11598_v30 }
 0xf95   : > { %11229 = vmatprep.subr.bf16.mxu0 %v11598_v30  ;;  %v11299_v44 = vpack.c.bf16 %v8632_v38, %v8631_v25 }
 0xf97   : > { %10583 = vmatmul.mubr.msk.f32.vlgmr.msra.gmra.mrb[38].mxu0 %vm529_vm0, %v7668_v29  ;;  %11300 = vmatpush3.bf16.msra.mxu1 %v11299_v44  ;;  %v8636_v29 = vld [vmem:[%s13863_s13 + $0x38] sm:$0xff] }
 0xf98   : > { %11231 = vmatpush3.bf16.msra.mxu0 %v11230_v42  ;;  %10593 = vmatprep.mubr.msk.f32.mxu0 %vm11599_vm5, %v11588_v1  ;;  %v8634_v42 = vld [vmem:[%s13863_s13 + $0x28] sm:$0xff] }
 0xf99   : > { %11232 = vmatprep.subr.bf16.mxu0 %v11598_v30  ;;  %v11302_v47 = vpack.c.bf16 %v8634_v42, %v8633_v39  ;;  %11301 = vmatprep.subr.bf16.mxu1 %v11598_v30 }
 0xf9b   : > { %11303 = vmatpush3.bf16.msra.mxu1 %v11302_v47 }
 0xf9c   : > { %11234 = vmatpush3.bf16.msra.mxu0 %v11233_v45  ;;  %v11305_v45 = vpack.c.bf16 %v8636_v29, %v8635_v43  ;;  %11304 = vmatprep.subr.bf16.mxu1 %v11598_v30 }
 0xf9d   : > { %11235 = vmatprep.subr.bf16.mxu0 %v11598_v30 }
 0xf9f   : > { %10594 = vmatmul.mubr.msk.f32.vlgmr.msra.gmra.mrb[38].mxu0 %vm529_vm0, %v7748_v48  ;;  %11306 = vmatpush3.bf16.msra.mxu1 %v11305_v45  ;;  %v11311_v48 = vpack.c.bf16 %v8640_v41, %v8639_v32 }
 0xfa0   : > { %11237 = vmatpush3.bf16.msra.mxu0 %v11236_v31  ;;  %10604 = vmatprep.mubr.msk.f32.mxu0 %vm11599_vm5, %v11588_v1  ;;  %v11308_v31 = vpack.c.bf16 %v8638_v3, %v8637_v46 }
 0xfa1   : > { %11238 = vmatprep.subr.bf16.mxu0 %v11598_v30  ;;  %11307 = vmatprep.subr.bf16.mxu1 %v11598_v30 }
 0xfa3   : > { %11309 = vmatpush3.bf16.msra.mxu1 %v11308_v31 }
 0xfa4   : > { %11240 = vmatpush3.bf16.msra.mxu0 %v11239_v50  ;;  %11310 = vmatprep.subr.bf16.mxu1 %v11598_v30 }
 0xfa5   : > { %11241 = vmatprep.subr.bf16.mxu0 %v11598_v30 }
 0xfa7   : > { %10605 = vmatmul.mubr.msk.f32.vlgmr.msra.gmra.mrb[38].mxu0 %vm529_vm0, %v7828_v61  ;;  %11312 = vmatpush3.bf16.msra.mxu1 %v11311_v48 }
 0xfa8   : > { %11243 = vmatpush3.bf16.msra.mxu0 %v11242_v51  ;;  %10615 = vmatprep.mubr.msk.f32.mxu0 %vm11599_vm5, %v11588_v1 }
 0xfa9   : > { %11244 = vmatprep.subr.bf16.mxu0 %v11598_v30  ;;  %11313 = vmatprep.subr.bf16.mxu1 %v11598_v30 }
 0xfac   : > { %11246 = vmatpush3.bf16.msra.mxu0 %v11245_v5  ;;  %v9176_v5 = vld [vmem:[%s13861_s11 + $0x1a0] sm:$0xff] }
 0xfad   : > { %11247 = vmatprep.subr.bf16.mxu0 %v11598_v30  ;;  %v11278_v6 = vpack.c.bf16 %v9177_v49, %v9176_v5 }
 0xfaf   : > { %10616 = vmatmul.mubr.msk.f32.vlgmr.msra.gmra.mrb[38].mxu0 %vm529_vm0, %v7908_v9  ;;  %v9181_v9 = vld [vmem:[%s13861_s11 + $0x1c0] sm:$0xff] }
 0xfb0   : > { %11249 = vmatpush3.bf16.msra.mxu0 %v11248_v60  ;;  %10626 = vmatprep.mubr.msk.f32.mxu0 %vm11599_vm5, %v11588_v1  ;;  %v9178_v60 = vld [vmem:[%s13861_s11 + $0x1b0] sm:$0xff] }
 0xfb1   : > { %11250 = vmatprep.subr.bf16.mxu0 %v11598_v30 }
 0xfb4   : > { %11252 = vmatpush3.bf16.msra.mxu0 %v11251_v10  ;;  %v9182_v10 = vld [vmem:[%s13861_s11 + $0x1c8] sm:$0xff] }
 0xfb5   : > { %11253 = vmatprep.subr.bf16.mxu0 %v11598_v30  ;;  %v11284_v59 = vpack.c.bf16 %v9182_v10, %v9181_v9 }
 0xfb7   : > { %10627 = vmatmul.mubr.msk.f32.vlgmr.msra.gmra.mrb[38].mxu0 %vm529_vm0, %v7988_v14  ;;  %v9186_v14 = vld [vmem:[%s13861_s11 + $0x1e0] sm:$0xff] }
 0xfb8   : > { %11255 = vmatpush3.bf16.msra.mxu0 %v11254_v33  ;;  %10637 = vmatprep.mubr.msk.f32.mxu0 %vm11599_vm5, %v11588_v1  ;;  %v9184_v33 = vld [vmem:[%s13861_s11 + $0x1d8] sm:$0xff] }
 0xfb9   : > { %11256 = vmatprep.subr.bf16.mxu0 %v11598_v30  ;;  %v11287_v13 = vpack.c.bf16 %v9184_v33, %v9183_v11 }
 0xfbc   : > { %11258 = vmatpush3.bf16.msra.mxu0 %v11257_v15  ;;  %v9187_v15 = vld [vmem:[%s13861_s11 + $0x1e8] sm:$0xff] }
 0xfbd   : > { %11259 = vmatprep.subr.bf16.mxu0 %v11598_v30  ;;  %v11290_v16 = vpack.c.bf16 %v9187_v15, %v9186_v14 }
 0xfbf   : > { %10638 = vmatmul.mubr.msk.f32.vlgmr.msra.gmra.mrb[38].mxu0 %vm529_vm0, %v8068_v20 }
 0xfc0   : > { %11261 = vmatpush3.bf16.msra.mxu0 %v11260_v17  ;;  %10648 = vmatprep.mubr.msk.f32.mxu0 %vm11599_vm5, %v11588_v1  ;;  %v9189_v17 = vld [vmem:[%s13861_s11 + $0x1f8] sm:$0xff] }
 0xfc1   : > { %11262 = vmatprep.subr.bf16.mxu0 %v11598_v30  ;;  %v11293_v19 = vpack.c.bf16 %v9189_v17, %v9188_v0 }
 0xfc4   : > { %11264 = vmatpush3.bf16.msra.mxu0 %v11263_v21  ;;  %v8641_v21 = vld [vmem:[%s13863_s13 + $0x60] sm:$0xff] }
 0xfc5   : > { %11265 = vmatprep.subr.bf16.mxu0 %v11598_v30  ;;  %v11314_v23 = vpack.c.bf16 %v8642_v22, %v8641_v21 }
 0xfc7   : > { %10649 = vmatmul.mubr.msk.f32.vlgmr.msra.gmra.mrb[38].mxu0 %vm529_vm0, %v8148_v55  ;;  %11315 = vmatpush3.bf16.msra.mxu1 %v11314_v23 }
 0xfc8   : > { %11267 = vmatpush3.bf16.msra.mxu0 %v11266_v24  ;;  %10659 = vmatprep.mubr.msk.f32.mxu0 %vm11599_vm5, %v11588_v1  ;;  %v7348_v24 = vld [vmem:[%s13862_s12] sm:$0x1] }
 0xfc9   : > { %11268 = vmatprep.subr.bf16.mxu0 %v11598_v30  ;;  %10734 = vmatprep.subr.mxu1 %v11588_v1 }
 0xfcc   : > { %11270 = vmatpush3.bf16.msra.mxu0 %v11269_v4 }
 0xfcd   : > { %11271 = vmatprep.subr.bf16.mxu0 %v11598_v30 }
 0xfcf   : > { %10660 = vmatmul.mubr.msk.f32.vlgmr.msra.gmra.mrb[38].mxu0 %vm529_vm0, %v8228_v36 }
 0xfd0   : > { %11273 = vmatpush3.bf16.msra.mxu0 %v11272_v26  ;;  %10670 = vmatprep.mubr.msk.f32.mxu0 %vm11599_vm5, %v11588_v1 }
 0xfd1   : > { %11274 = vmatprep.subr.bf16.mxu0 %v11598_v30 }
 0xfd4   : > { %11276 = vmatpush3.bf16.msra.mxu0 %v11275_v37 }
 0xfd5   : > { %11277 = vmatprep.subr.bf16.mxu0 %v11598_v30 }
0x1031   : > { %v7340_v50 = vpop.f32.mrb[48].mxu1 }
0x1032   : > { %v10529_v56 = vpop.f32.mrb[49].mxu1 }
0x1042   : > { %v7270_v57 = vpop.f32.mrb[36].mxu0 }
0x1043   : > { %v7341_v51 = vadd.f32 %v7340_v50, %v7270_v57  ;;  %v10524_v40 = vpop.f32.mrb[37].mxu0 }
0x1045   : > { %v7344_v58 = vadd.f32 %v13372_v28, %v7341_v51  ;;  %v9179_v28 = vld [vmem:[%s13861_s11 + $0x1b8] sm:$0xff] }
0x1046   : > { %v11281_v8 = vpack.c.bf16 %v9179_v28, %v9178_v60 }
0x1047   : > { %v7345_v61 = vmax.f32 %v7344_v58, 0.0 }
0x1049   : > { %7347 = vst.msk [vmem:[#allocation6 + $0xc] sm:$0xf] %vm535_vm1, %v7345_v61  ;;  %vm8719_vm1 = vcmask 24576  }
0x1050   : > { %v8308_v7 = vld [vmem:[#allocation6 + $0xc] sm:$0x1]  ;;  %v8388_v12 = vld [vmem:[#allocation6 + $0xd] sm:$0x1]  ;;  %v8468_v18 = vld [vmem:[#allocation6 + $0xe] sm:$0x1] }
0x1051   : > { %10671 = vmatmul.mubr.msk.f32.vlgmr.msra.gmra.mrb[38].mxu0 %vm529_vm0, %v8308_v7  ;;  %v8548_v20 = vld [vmem:[#allocation6 + $0xf] sm:$0x1] }
0x1052   : > { %11279 = vmatpush3.bf16.msra.mxu0 %v11278_v6  ;;  %10681 = vmatprep.mubr.msk.f32.mxu0 %vm11599_vm5, %v11588_v1 }
0x1053   : > { %11280 = vmatprep.subr.bf16.mxu0 %v11598_v30 }
0x1056   : > { %11282 = vmatpush3.bf16.msra.mxu0 %v11281_v8 }
0x1057   : > { %11283 = vmatprep.subr.bf16.mxu0 %v11598_v30 }
0x1059   : > { %10682 = vmatmul.mubr.msk.f32.vlgmr.msra.gmra.mrb[38].mxu0 %vm529_vm0, %v8388_v12 }
0x105a   : > { %11285 = vmatpush3.bf16.msra.mxu0 %v11284_v59  ;;  %10692 = vmatprep.mubr.msk.f32.mxu0 %vm11599_vm5, %v11588_v1 }
0x105b   : > { %11286 = vmatprep.subr.bf16.mxu0 %v11598_v30 }
0x105e   : > { %11288 = vmatpush3.bf16.msra.mxu0 %v11287_v13 }
0x105f   : > { %11289 = vmatprep.subr.bf16.mxu0 %v11598_v30 }
0x1061   : > { %10693 = vmatmul.mubr.msk.f32.vlgmr.msra.gmra.mrb[38].mxu0 %vm529_vm0, %v8468_v18 }
0x1062   : > { %11291 = vmatpush3.bf16.msra.mxu0 %v11290_v16  ;;  %10703 = vmatprep.mubr.msk.f32.mxu0 %vm11599_vm5, %v11588_v1  ;;  %v8644_v1 = vld [vmem:[%s13864_s14] sm:$0x1] }
0x1063   : > { %11292 = vmatprep.subr.bf16.mxu0 %v11598_v30  ;;  %v8643_v30 = vld [vmem:[%s13863_s13 + $0x70] sm:$0xff] }
0x1064   : > { %10735 = vmatpush3.msra.mxu1 %v8643_v30 }
0x1066   : > { %11294 = vmatpush3.bf16.msra.mxu0 %v11293_v19 }
0x1069   : > { %10704 = vmatmul.mubr.msk.f32.vlgmr.msra.gmra.mrb[38].mxu0 %vm529_vm0, %v8548_v20  ;;  %vm8645_vm0 = vcmask 982016  }
0x113c   : > { %v8623_v52 = vpop.f32.mrb[38].mxu0 }
0x113d   : > { %v11344_v54 = vadd.f32 %v8623_v52, %v7348_v24  ;;  %v10705_v55 = vpop.f32.mrb[39].mxu0 }
0x113f   : > { %v8628_v4 = vmax.f32 %v11344_v54, 0.0 }
0x1141   : > { %10737 = vmatmul.mubr.msk.f32.vlgmr.msra.gmra.mrb[50].mxu1 %vm8645_vm0, %v8628_v4 }
0x1214   : > { %v8715_v62 = vpop.f32.mrb[50].mxu1 }
0x1215   : > { %v8716_v2 = vadd.f32 %v8715_v62, %v8644_v1  ;;  %v10738_v26 = vpop.f32.mrb[51].mxu1 }
0x1217   : > { %8720 = vst.msk [vmem:[%s12514_s27] sm:$0x1] %vm8719_vm1, %v8716_v2  ;;  %8722 = vrot.lane.b32.xlu0 %v8716_v2, %s11601_s2 }
0x1218   : > { %11513 = shalt.err (!%p11510_p8)
}
0x1219   : > { %s11514_s27 = scalar_lea.hbm %s13800_s29, 16  ;;  %s11518_s2 = scalar_lea.hbm %s13865_s15, 32 }
0x121a   : > { %p11515_p9 = scmp.ne.s32.totalorder %s13800_s29, %s11514_s27  ;;  %p11519_p12 = scmp.lt.u32.totalorder %s13800_s29, %s13865_s15 }
0x121b   : > { %p11520_p13 = scmp.lt.u32.totalorder %s11518_s2, %s11514_s27  ;;  %p11522_p1 = scmp.lt.u32.totalorder %s11514_s27, %s13800_s29 }
0x121c   : > { %p11516_p10 = pnand %p11515_p9, %p11726_p5 }
0x121d   : > { %p11521_p0 = por %p11520_p13, %p11519_p12 }
0x121e   : > { %p11517_p11 = pneg %p11516_p10 }
0x121f   : > { %p11523_p2 = por %p11522_p1, %p11521_p0 }
0x1221   : > { %p11524_p3 = pnand %p11523_p2, %p11517_p11 }
0x1223   : > { %11527 = shalt.err (!%p11524_p3)
}
0x1224   : > { %11420 = dma.vmem_to_hbm [thread:$0]  (%p11726_p5), %s13802_s17, 16, %s13800_s29, %s8728_s25   ;;  %vm8725_vm12 = vcmask 0  }
0x1225   : > { %s13887_s30 = scalar_lea.vmem %s13866_s16, %s12384_s20 }
0x1289   : > { %v8723_v27 = vpop.permute.xlu0 %8722 }
0x128a   : > { %8726 = vst.msk [vmem:[%s13887_s30] sm:$0x1] %vm8725_vm12, %v8723_v27 }
0x128b PF: > { %p11426_p4 = scmp.ge.s32.totalorder %s11574_s24, 2  ;;  %s8758_s26 = sand.u32 1, %s11562_s21  }
0x128c   : > { %s8759_s0 = scalar_lea.sflag [#allocation8], %s8758_s26 }
0x128d   : > { %p11423_p7 = pnand %p11426_p4, %p11730_p6 }
0x128f   : > { %11557 = dma.done.wait (!%p11423_p7), %s8759_s0, 16  }
0x1290   : > { %11559 = vsyncadd (!%p11423_p7), %s8759_s0, 4294967280  ;;  %s13889_s24 = sld [smem:[#allocation11_spill]]  ;;  %s13890_s17 = sld [smem:[#allocation10_spill]] }
0x1291   : > { %s13891_s23 = sld [smem:[#allocation12_spill]]  ;;  %s13892_s21 = smov %s11566_s22 }
0x1296   : > { %p27_p5 = scmp.ge.s32.totalorder %s13889_s24, 4   ;;  %s13893_s22 = smov %s13890_s17 }
0x1298   :  { %29 = sbr.rel (!%p27_p5) target bundleno = 7 (0x7), region = 239 }
0x129f   :  { %8769 = vsyncpa [#allocation8], 1 }
0x12a0   :  { %8771 = vsyncpa [#allocation8 + $0x1], 1 }

</bundles_post_ra>
